<compile_context>
chip_gen: v7x
topology: tpu7x:2x2x1
jax: 0.10.0
libtpu: 0.0.40
codegen_flags: <defaults>
</compile_context>

<pallas_src>
import functools
import math

import jax
import jax.numpy as jnp
from jax import lax
from jax.experimental import pallas as pl
from jax.experimental.pallas import tpu as pltpu


def _gelu_tanh(x):
    # GPT-2 "gelu_new" (tanh approximation).
    return 0.5 * x * (1.0 + jnp.tanh(math.sqrt(2.0 / math.pi) * (x + 0.044715 * x * x * x)))


def _layernorm(v, g, b, eps):
    mu = jnp.mean(v, axis=-1, keepdims=True)
    var = jnp.mean((v - mu) ** 2, axis=-1, keepdims=True)
    return (v - mu) * lax.rsqrt(var + eps) * g + b


def gpt2_block_kernel(
        x_ref,
        ln1_g_ref, ln1_b_ref,
        wq_ref, bq_ref, wkv_ref, bkv_ref, wo_ref, bo_ref,
        ln2_g_ref, ln2_b_ref,
        w1_ref, b1_ref, w2_ref, b2_ref,
        out_ref,
        k_scr, v_scr, qh_scr, ocat_scr,
        *, num_heads, head_size, eps, kv_chunk):
    qi = pl.program_id(1)
    H = num_heads * head_size
    hd = head_size
    S = x_ref.shape[1]
    tq = out_ref.shape[1]
    bf16 = jnp.bfloat16
    f32 = jnp.float32
    NEG = jnp.float32(-1e30)

    # ---- once per batch row: chunked LN1 + fused K/V projection into head-major
    #      bf16 scratch.  Chunking over S bounds the f32 transients (v7x VMEM).
    @pl.when(qi == 0)
    def _():
        def kv_body(c, carry):
            roff = pl.multiple_of(c * kv_chunk, kv_chunk)
            xc = x_ref[0, pl.ds(roff, kv_chunk), :]                  # (kvc, H) f32
            lnc = _layernorm(xc, ln1_g_ref[...], ln1_b_ref[...], eps)
            kv = jnp.dot(lnc.astype(bf16), wkv_ref[...],
                         preferred_element_type=f32) + bkv_ref[...]  # (kvc, 2H)
            kv = kv.astype(bf16)
            for h in range(num_heads):                               # static relayout scatter
                k_scr[h, pl.ds(roff, kv_chunk), :] = kv[:, h * hd:(h + 1) * hd]
                v_scr[h, pl.ds(roff, kv_chunk), :] = kv[:, H + h * hd:H + (h + 1) * hd]
            return carry
        lax.fori_loop(0, S // kv_chunk, kv_body, 0)

    # ---- per query tile: LN1 + Q projection (1/sqrt(hd) folded into wq/bq) ----
    q0 = pl.multiple_of(qi * tq, tq)
    x_tile = x_ref[0, pl.ds(q0, tq), :]                              # (tq, H) f32
    ln1x_t = _layernorm(x_tile, ln1_g_ref[...], ln1_b_ref[...], eps)
    q = jnp.dot(ln1x_t.astype(bf16), wq_ref[...],
                preferred_element_type=f32) + bq_ref[...]
    q = q.astype(bf16)                                               # (tq, H)
    for h in range(num_heads):                                       # head-major staging
        qh_scr[h] = q[:, h * hd:(h + 1) * hd]
    qh = qh_scr[...]                                                 # (nh, tq, hd) bf16

    # In-kernel causal bias for the diagonal KV block only (iota, no HBM slab).
    rows = lax.broadcasted_iota(jnp.int32, (tq, tq), 0)
    cols = lax.broadcasted_iota(jnp.int32, (tq, tq), 1)
    diag_bias = jnp.where(rows >= cols, 0.0, NEG).astype(f32)        # (tq, tq) f32

    # ---- flash-style attention over KV blocks 0..qi (causal block skipping) ----
    m0 = jnp.full((num_heads, tq, 1), -jnp.inf, f32)
    l0 = jnp.zeros((num_heads, tq, 1), f32)
    a0 = jnp.zeros((num_heads, tq, hd), f32)

    def kv_block(kj, carry):
        m, l, acc = carry
        koff = pl.multiple_of(kj * tq, tq)
        k_blk = k_scr[:, pl.ds(koff, tq), :]                         # (nh, tq, hd) bf16
        v_blk = v_scr[:, pl.ds(koff, tq), :]
        s = jnp.einsum('nqd,nkd->nqk', qh, k_blk,
                       preferred_element_type=f32)                   # (nh, tq, tq) f32
        # mask applies only to the diagonal block (kj == qi); earlier blocks are
        # fully visible, later blocks are never visited.
        s = s + (diag_bias * (kj == qi).astype(f32))[None, :, :]
        m_new = jnp.maximum(m, jnp.max(s, axis=-1, keepdims=True))
        alpha = jnp.exp(m - m_new)
        p = jnp.exp(s - m_new)                                       # f32 exp (v5e-safe)
        l_new = alpha * l + jnp.sum(p, axis=-1, keepdims=True)
        acc_new = alpha * acc + jnp.einsum('nqk,nkd->nqd', p.astype(bf16), v_blk,
                                           preferred_element_type=f32)
        return m_new, l_new, acc_new

    _, l_f, acc_f = lax.fori_loop(0, qi + 1, kv_block, (m0, l0, a0))
    o = (acc_f * pl.reciprocal(l_f, approx=True)).astype(bf16)       # (nh, tq, hd)

    # Lane-contiguous head concat, then ONE full-depth output projection matmul.
    for h in range(num_heads):
        ocat_scr[:, h * hd:(h + 1) * hd] = o[h]
    attn = jnp.dot(ocat_scr[...], wo_ref[...],
                   preferred_element_type=f32) + bo_ref[...]         # (tq, H) f32

    x1 = x_tile + attn                                               # residual in f32

    # ---- MLP ----
    ln2x = _layernorm(x1, ln2_g_ref[...], ln2_b_ref[...], eps)
    h1 = jnp.dot(ln2x.astype(bf16), w1_ref[...],
                 preferred_element_type=f32) + b1_ref[...]
    g = _gelu_tanh(h1)
    h2 = jnp.dot(g.astype(bf16), w2_ref[...],
                 preferred_element_type=f32) + b2_ref[...]

    out_ref[0] = (x1 + h2).astype(out_ref.dtype)                     # dropout(p=0.0) == identity


def _chip_defaults():
    """Per-generation VMEM limit and default q tile.  Fail-safe on detection errors."""
    try:
        info = pltpu.get_tpu_info()
        cap = None
        for name in ("vmem_capacity_bytes", "vmem_size_bytes", "vmem_bytes"):
            cap = getattr(info, name, None)
            if cap:
                break
        if cap:
            cap = int(cap)
            if cap <= 80 * 1024 * 1024:          # v7x-class (64 MiB / TC)
                return 52 * 1024 * 1024, 128
            return 104 * 1024 * 1024, 256        # v5e / v6e (128 MiB)
    except Exception:
        pass
    return None, 128


def gpt2_block_tp(x, params, *, num_heads, eps=1e-5, q_tile=None):
    """x: (B, S, H) f32.  params: dict of pre-transposed (in, out) weights."""
    B, S, H = x.shape
    assert H % num_heads == 0
    head_size = H // num_heads
    vmem_limit, default_q_tile = _chip_defaults()
    if q_tile is None:
        q_tile = default_q_tile
    tq = S if S <= q_tile else q_tile
    assert S % tq == 0 and (tq == S or tq % 8 == 0)
    nq = S // tq
    scale = 1.0 / math.sqrt(head_size)
    bf16 = jnp.bfloat16

    # KV-projection chunk size (largest nice divisor of S, bounded at 512 rows).
    kv_chunk = S
    for cand in (512, 256, 128):
        if S > cand and S % cand == 0:
            kv_chunk = cand
            break

    # ---- trace-time parameter prep: bf16 MXU weights, folded q-scale ----
    wqkv, bqkv = params["wqkv"], params["bqkv"]
    wq = (wqkv[:, :H] * scale).astype(bf16)              # (H, H)
    bq = (bqkv[:, :H] * scale).astype(jnp.float32)       # (1, H)
    wkv = wqkv[:, H:].astype(bf16)                       # (H, 2H)
    bkv = bqkv[:, H:].astype(jnp.float32)                # (1, 2H)
    wo = params["wo"].astype(bf16)                       # (H, H) flat (full-depth projection)
    w1 = params["w1"].astype(bf16)
    w2 = params["w2"].astype(bf16)

    # Advisory cost estimate (attention halved by causal block skipping).
    flops = 24 * B * S * H * H + 2 * B * S * S * H
    transcendentals = B * num_heads * S * S // 2 + 4 * B * S * H
    bytes_accessed = 2 * B * S * H * 4 + 24 * H * H + 20 * H * 4

    kernel = functools.partial(gpt2_block_kernel, num_heads=num_heads,
                               head_size=head_size, eps=eps, kv_chunk=kv_chunk)

    cp_kwargs = dict(dimension_semantics=("parallel", "arbitrary"))
    if vmem_limit is not None:
        cp_kwargs["vmem_limit_bytes"] = int(vmem_limit)
    compiler_params = pltpu.CompilerParams(**cp_kwargs)

    def run(single_buffer):
        def rep(arr):
            n = arr.ndim
            idx = lambda b, q, _n=n: (0,) * _n
            if single_buffer:
                # grid-invariant weights: single buffer halves weight VMEM footprint
                return pl.BlockSpec(arr.shape, idx, pipeline_mode=pl.Buffered(1))
            return pl.BlockSpec(arr.shape, idx)

        in_specs = [
            pl.BlockSpec((1, S, H), lambda b, q: (b, 0, 0)),   # x, full sequence (sliced in-kernel)
            rep(params["ln1_g"]), rep(params["ln1_b"]),
            rep(wq), rep(bq), rep(wkv), rep(bkv), rep(wo), rep(params["bo"]),
            rep(params["ln2_g"]), rep(params["ln2_b"]),
            rep(w1), rep(params["b1"]), rep(w2), rep(params["b2"]),
        ]

        return pl.pallas_call(
            kernel,
            out_shape=jax.ShapeDtypeStruct((B, S, H), jnp.float32),
            grid=(B, nq),
            in_specs=in_specs,
            out_specs=pl.BlockSpec((1, tq, H), lambda b, q: (b, q, 0)),
            scratch_shapes=[
                pltpu.VMEM((num_heads, S, head_size), bf16),    # K, head-major
                pltpu.VMEM((num_heads, S, head_size), bf16),    # V, head-major
                pltpu.VMEM((num_heads, tq, head_size), bf16),   # Q tile, head-major
                pltpu.VMEM((tq, H), bf16),                      # attention-out concat
            ],
            compiler_params=compiler_params,
            cost_estimate=pl.CostEstimate(flops=int(flops),
                                          transcendentals=int(transcendentals),
                                          bytes_accessed=int(bytes_accessed)),
        )(x,
          params["ln1_g"], params["ln1_b"],
          wq, bq, wkv, bkv, wo, params["bo"],
          params["ln2_g"], params["ln2_b"],
          w1, params["b1"], w2, params["b2"])

    # Prefer single-buffered invariant weights; fall back to default double
    # buffering if this JAX/libtpu build rejects pl.Buffered(1) on BlockSpec.
    try:
        out = run(True)
        jax.block_until_ready(out)
        return out
    except Exception:
        return run(False)


# ---------------- pure-JAX reference (same math, f32, for sanity check) ----------------
def _reference(x, p, num_heads, eps=1e-5):
    B, S, H = x.shape
    hd = H // num_heads

    def ln(v, g, b):
        mu = v.mean(-1, keepdims=True)
        var = ((v - mu) ** 2).mean(-1, keepdims=True)
        return (v - mu) / jnp.sqrt(var + eps) * g + b

    hp = jax.lax.Precision.HIGHEST
    ln1x = ln(x, p["ln1_g"], p["ln1_b"])
    qkv = jnp.einsum("bsh,ho->bso", ln1x, p["wqkv"], precision=hp) + p["bqkv"]
    q, k, v = jnp.split(qkv, 3, axis=-1)
    q = q.reshape(B, S, num_heads, hd).transpose(0, 2, 1, 3)
    k = k.reshape(B, S, num_heads, hd).transpose(0, 2, 1, 3)
    v = v.reshape(B, S, num_heads, hd).transpose(0, 2, 1, 3)
    s = jnp.einsum("bhqd,bhkd->bhqk", q, k, precision=hp) / math.sqrt(hd)
    mask = jnp.tril(jnp.ones((S, S), bool))
    s = jnp.where(mask, s, -1e30)
    pattn = jax.nn.softmax(s, axis=-1)
    o = jnp.einsum("bhqk,bhkd->bhqd", pattn, v, precision=hp)
    o = o.transpose(0, 2, 1, 3).reshape(B, S, H)
    attn_out = jnp.einsum("bsh,ho->bso", o, p["wo"], precision=hp) + p["bo"]
    x1 = x + attn_out
    ln2x = ln(x1, p["ln2_g"], p["ln2_b"])
    h1 = jnp.einsum("bsh,hf->bsf", ln2x, p["w1"], precision=hp) + p["b1"]
    g = _gelu_tanh(h1)
    h2 = jnp.einsum("bsf,fh->bsh", g, p["w2"], precision=hp) + p["b2"]
    return x1 + h2


if __name__ == "__main__":
    B, S, H, NH = 2, 8, 32, 4
    key = jax.random.PRNGKey(0)
    ks = jax.random.split(key, 8)

    # Deterministic synthetic parameters (PyTorch Linear weights are (out,in);
    # stored here already transposed to (in,out) for the kernel's x @ W).
    params = {
        "ln1_g": jnp.ones((1, H), jnp.float32),
        "ln1_b": jnp.zeros((1, H), jnp.float32),
        "wqkv": 0.02 * jax.random.normal(ks[0], (H, 3 * H), jnp.float32),
        "bqkv": 0.02 * jax.random.normal(ks[1], (1, 3 * H), jnp.float32),
        "wo":   0.02 * jax.random.normal(ks[2], (H, H), jnp.float32),
        "bo":   0.02 * jax.random.normal(ks[3], (1, H), jnp.float32),
        "ln2_g": jnp.ones((1, H), jnp.float32),
        "ln2_b": jnp.zeros((1, H), jnp.float32),
        "w1":   0.02 * jax.random.normal(ks[4], (H, 4 * H), jnp.float32),
        "b1":   0.02 * jax.random.normal(ks[5], (1, 4 * H), jnp.float32),
        "w2":   0.02 * jax.random.normal(ks[6], (4 * H, H), jnp.float32),
        "b2":   0.02 * jax.random.normal(ks[7], (1, H), jnp.float32),
    }

    x = jax.random.normal(jax.random.PRNGKey(1), (B, S, H), jnp.float32)

    out = gpt2_block_tp(x, params, num_heads=NH)
    out = jax.block_until_ready(out)

    ref = _reference(x, params, NH)
    assert out.shape == (B, S, H)
    assert bool(jnp.all(jnp.isfinite(out)))
    # bf16 MXU inputs (f32 accumulation) + approx reciprocal -> slightly looser tolerance.
    assert bool(jnp.allclose(out, ref, atol=1e-2, rtol=1e-2)), "mismatch vs reference"

    print("KERNEL_OK")
</pallas_src>

<mosaic_0001>
module attributes {stable_mosaic.version = 11 : i64} {
  func.func @gpt2_block_kernel(%arg0: i32, %arg1: i32, %arg2: memref<1x8x32xf32, #tpu.memory_space<vmem>>, %arg3: memref<1x32xf32, #tpu.memory_space<vmem>>, %arg4: memref<1x32xf32, #tpu.memory_space<vmem>>, %arg5: memref<32x32xbf16, #tpu.memory_space<vmem>>, %arg6: memref<1x32xf32, #tpu.memory_space<vmem>>, %arg7: memref<32x64xbf16, #tpu.memory_space<vmem>>, %arg8: memref<1x64xf32, #tpu.memory_space<vmem>>, %arg9: memref<32x32xbf16, #tpu.memory_space<vmem>>, %arg10: memref<1x32xf32, #tpu.memory_space<vmem>>, %arg11: memref<1x32xf32, #tpu.memory_space<vmem>>, %arg12: memref<1x32xf32, #tpu.memory_space<vmem>>, %arg13: memref<32x128xbf16, #tpu.memory_space<vmem>>, %arg14: memref<1x128xf32, #tpu.memory_space<vmem>>, %arg15: memref<128x32xbf16, #tpu.memory_space<vmem>>, %arg16: memref<1x32xf32, #tpu.memory_space<vmem>>, %arg17: memref<1x8x32xf32, #tpu.memory_space<vmem>>, %arg18: memref<4x8x8xbf16, #tpu.memory_space<vmem>>, %arg19: memref<4x8x8xbf16, #tpu.memory_space<vmem>>, %arg20: memref<4x8x8xbf16, #tpu.memory_space<vmem>>, %arg21: memref<8x32xbf16, #tpu.memory_space<vmem>>) attributes {dimension_semantics = [#tpu.dimension_semantics<parallel>, #tpu.dimension_semantics<arbitrary>], iteration_bounds = array<i64: 2, 1>, scalar_prefetch = 0 : i64, scratch_operands = 4 : i64, tpu.core_type = #tpu.core_type<tc>, window_params = [{transform_indices = @transform_0, window_bounds = array<i64: 1, 8, 32>}, {pipeline_mode = #tpu.pipeline_mode<synchronous>, transform_indices = @transform_1, window_bounds = array<i64: 1, 32>}, {pipeline_mode = #tpu.pipeline_mode<synchronous>, transform_indices = @transform_2, window_bounds = array<i64: 1, 32>}, {pipeline_mode = #tpu.pipeline_mode<synchronous>, transform_indices = @transform_3, window_bounds = array<i64: 32, 32>}, {pipeline_mode = #tpu.pipeline_mode<synchronous>, transform_indices = @transform_4, window_bounds = array<i64: 1, 32>}, {pipeline_mode = #tpu.pipeline_mode<synchronous>, transform_indices = @transform_5, window_bounds = array<i64: 32, 64>}, {pipeline_mode = #tpu.pipeline_mode<synchronous>, transform_indices = @transform_6, window_bounds = array<i64: 1, 64>}, {pipeline_mode = #tpu.pipeline_mode<synchronous>, transform_indices = @transform_7, window_bounds = array<i64: 32, 32>}, {pipeline_mode = #tpu.pipeline_mode<synchronous>, transform_indices = @transform_8, window_bounds = array<i64: 1, 32>}, {pipeline_mode = #tpu.pipeline_mode<synchronous>, transform_indices = @transform_9, window_bounds = array<i64: 1, 32>}, {pipeline_mode = #tpu.pipeline_mode<synchronous>, transform_indices = @transform_10, window_bounds = array<i64: 1, 32>}, {pipeline_mode = #tpu.pipeline_mode<synchronous>, transform_indices = @transform_11, window_bounds = array<i64: 32, 128>}, {pipeline_mode = #tpu.pipeline_mode<synchronous>, transform_indices = @transform_12, window_bounds = array<i64: 1, 128>}, {pipeline_mode = #tpu.pipeline_mode<synchronous>, transform_indices = @transform_13, window_bounds = array<i64: 128, 32>}, {pipeline_mode = #tpu.pipeline_mode<synchronous>, transform_indices = @transform_14, window_bounds = array<i64: 1, 32>}, {transform_indices = @transform_15, window_bounds = array<i64: 1, 8, 32>}]} {
    %c0_i32 = arith.constant 0 : i32
    %0 = arith.cmpi eq, %arg1, %c0_i32 : i32
    %1 = arith.extui %0 : i1 to i32
    %c0_i32_0 = arith.constant 0 : i32
    %2 = arith.cmpi ne, %1, %c0_i32_0 : i32
    scf.if %2 {
      %c0_i32_72 = arith.constant 0 : i32
      %c8_i32_73 = arith.constant 8 : i32
      %145 = arith.muli %c0_i32_72, %c8_i32_73 : i32
      %146 = tpu.assume_multiple %145, 8 : i32
      %c0_74 = arith.constant 0 : index
      %147 = arith.index_cast %146 : i32 to index
      %c0_75 = arith.constant 0 : index
      %148 = vector.load %arg2[%c0_74, %147, %c0_75] : memref<1x8x32xf32, #tpu.memory_space<vmem>>, vector<1x8x32xf32>
      %149 = vector.shape_cast %148 : vector<1x8x32xf32> to vector<8x32xf32>
      %c0_76 = arith.constant 0 : index
      %c0_77 = arith.constant 0 : index
      %150 = vector.load %arg3[%c0_76, %c0_77] : memref<1x32xf32, #tpu.memory_space<vmem>>, vector<1x32xf32>
      %c0_78 = arith.constant 0 : index
      %c0_79 = arith.constant 0 : index
      %151 = vector.load %arg4[%c0_78, %c0_79] : memref<1x32xf32, #tpu.memory_space<vmem>>, vector<1x32xf32>
      %cst_80 = arith.constant dense<0.000000e+00> : vector<8xf32>
      %152 = vector.multi_reduction <add>, %149, %cst_80 [1] : vector<8x32xf32> to vector<8xf32>
      %153 = vector.shape_cast %152 : vector<8xf32> to vector<8x1xf32>
      %cst_81 = arith.constant 3.200000e+01 : f32
      %154 = vector.broadcast %cst_81 : f32 to vector<8x1xf32>
      %155 = arith.divf %153, %154 : vector<8x1xf32>
      %156 = vector.broadcast %155 : vector<8x1xf32> to vector<8x32xf32>
      %157 = arith.subf %149, %156 : vector<8x32xf32>
      %158 = arith.mulf %157, %157 : vector<8x32xf32>
      %cst_82 = arith.constant dense<0.000000e+00> : vector<8xf32>
      %159 = vector.multi_reduction <add>, %158, %cst_82 [1] : vector<8x32xf32> to vector<8xf32>
      %160 = vector.shape_cast %159 : vector<8xf32> to vector<8x1xf32>
      %cst_83 = arith.constant 3.200000e+01 : f32
      %161 = vector.broadcast %cst_83 : f32 to vector<8x1xf32>
      %162 = arith.divf %160, %161 : vector<8x1xf32>
      %163 = vector.broadcast %155 : vector<8x1xf32> to vector<8x32xf32>
      %164 = arith.subf %149, %163 : vector<8x32xf32>
      %cst_84 = arith.constant 9.99999974E-6 : f32
      %165 = vector.broadcast %cst_84 : f32 to vector<8x1xf32>
      %166 = arith.addf %162, %165 : vector<8x1xf32>
      %167 = math.rsqrt %166 : vector<8x1xf32>
      %168 = vector.broadcast %167 : vector<8x1xf32> to vector<8x32xf32>
      %169 = arith.mulf %164, %168 : vector<8x32xf32>
      %170 = vector.broadcast %150 : vector<1x32xf32> to vector<8x32xf32>
      %171 = arith.mulf %169, %170 : vector<8x32xf32>
      %172 = vector.broadcast %151 : vector<1x32xf32> to vector<8x32xf32>
      %173 = arith.addf %171, %172 : vector<8x32xf32>
      %174 = arith.truncf %173 : vector<8x32xf32> to vector<8x32xbf16>
      %c0_85 = arith.constant 0 : index
      %c0_86 = arith.constant 0 : index
      %175 = vector.load %arg7[%c0_85, %c0_86] : memref<32x64xbf16, #tpu.memory_space<vmem>>, vector<32x64xbf16>
      %cst_87 = arith.constant dense<0.000000e+00> : vector<8x64xf32>
      %176 = tpu.matmul %174, %175, %cst_87 {dimension_numbers = #tpu.dot_dimension_numbers<[1], [0], [0], [1], [0, 0, 1, 1], [], []>} : vector<8x32xbf16>, vector<32x64xbf16>, vector<8x64xf32> -> vector<8x64xf32>
      %c0_88 = arith.constant 0 : index
      %c0_89 = arith.constant 0 : index
      %177 = vector.load %arg8[%c0_88, %c0_89] : memref<1x64xf32, #tpu.memory_space<vmem>>, vector<1x64xf32>
      %178 = vector.broadcast %177 : vector<1x64xf32> to vector<8x64xf32>
      %179 = arith.addf %176, %178 : vector<8x64xf32>
      %180 = arith.truncf %179 : vector<8x64xf32> to vector<8x64xbf16>
      %181 = vector.extract_strided_slice %180 {offsets = [0, 0], sizes = [8, 8], strides = [1, 1]} : vector<8x64xbf16> to vector<8x8xbf16>
      %c0_90 = arith.constant 0 : index
      %182 = arith.index_cast %146 : i32 to index
      %c0_91 = arith.constant 0 : index
      %183 = vector.load %arg18[%c0_90, %182, %c0_91] : memref<4x8x8xbf16, #tpu.memory_space<vmem>>, vector<1x8x8xbf16>
      %184 = vector.shape_cast %183 : vector<1x8x8xbf16> to vector<8x8xbf16>
      %185 = vector.shape_cast %181 : vector<8x8xbf16> to vector<1x8x8xbf16>
      tpu.vector_store %arg18[%c0_90, %182, %c0_91], %185 {strides = array<i32>} : memref<4x8x8xbf16, #tpu.memory_space<vmem>>, vector<1x8x8xbf16>,
      %186 = vector.extract_strided_slice %180 {offsets = [0, 32], sizes = [8, 8], strides = [1, 1]} : vector<8x64xbf16> to vector<8x8xbf16>
      %c0_92 = arith.constant 0 : index
      %187 = arith.index_cast %146 : i32 to index
      %c0_93 = arith.constant 0 : index
      %188 = vector.load %arg19[%c0_92, %187, %c0_93] : memref<4x8x8xbf16, #tpu.memory_space<vmem>>, vector<1x8x8xbf16>
      %189 = vector.shape_cast %188 : vector<1x8x8xbf16> to vector<8x8xbf16>
      %190 = vector.shape_cast %186 : vector<8x8xbf16> to vector<1x8x8xbf16>
      tpu.vector_store %arg19[%c0_92, %187, %c0_93], %190 {strides = array<i32>} : memref<4x8x8xbf16, #tpu.memory_space<vmem>>, vector<1x8x8xbf16>,
      %191 = vector.extract_strided_slice %180 {offsets = [0, 8], sizes = [8, 8], strides = [1, 1]} : vector<8x64xbf16> to vector<8x8xbf16>
      %c1_94 = arith.constant 1 : index
      %192 = arith.index_cast %146 : i32 to index
      %c0_95 = arith.constant 0 : index
      %193 = vector.load %arg18[%c1_94, %192, %c0_95] : memref<4x8x8xbf16, #tpu.memory_space<vmem>>, vector<1x8x8xbf16>
      %194 = vector.shape_cast %193 : vector<1x8x8xbf16> to vector<8x8xbf16>
      %195 = vector.shape_cast %191 : vector<8x8xbf16> to vector<1x8x8xbf16>
      tpu.vector_store %arg18[%c1_94, %192, %c0_95], %195 {strides = array<i32>} : memref<4x8x8xbf16, #tpu.memory_space<vmem>>, vector<1x8x8xbf16>,
      %196 = vector.extract_strided_slice %180 {offsets = [0, 40], sizes = [8, 8], strides = [1, 1]} : vector<8x64xbf16> to vector<8x8xbf16>
      %c1_96 = arith.constant 1 : index
      %197 = arith.index_cast %146 : i32 to index
      %c0_97 = arith.constant 0 : index
      %198 = vector.load %arg19[%c1_96, %197, %c0_97] : memref<4x8x8xbf16, #tpu.memory_space<vmem>>, vector<1x8x8xbf16>
      %199 = vector.shape_cast %198 : vector<1x8x8xbf16> to vector<8x8xbf16>
      %200 = vector.shape_cast %196 : vector<8x8xbf16> to vector<1x8x8xbf16>
      tpu.vector_store %arg19[%c1_96, %197, %c0_97], %200 {strides = array<i32>} : memref<4x8x8xbf16, #tpu.memory_space<vmem>>, vector<1x8x8xbf16>,
      %201 = vector.extract_strided_slice %180 {offsets = [0, 16], sizes = [8, 8], strides = [1, 1]} : vector<8x64xbf16> to vector<8x8xbf16>
      %c2_98 = arith.constant 2 : index
      %202 = arith.index_cast %146 : i32 to index
      %c0_99 = arith.constant 0 : index
      %203 = vector.load %arg18[%c2_98, %202, %c0_99] : memref<4x8x8xbf16, #tpu.memory_space<vmem>>, vector<1x8x8xbf16>
      %204 = vector.shape_cast %203 : vector<1x8x8xbf16> to vector<8x8xbf16>
      %205 = vector.shape_cast %201 : vector<8x8xbf16> to vector<1x8x8xbf16>
      tpu.vector_store %arg18[%c2_98, %202, %c0_99], %205 {strides = array<i32>} : memref<4x8x8xbf16, #tpu.memory_space<vmem>>, vector<1x8x8xbf16>,
      %206 = vector.extract_strided_slice %180 {offsets = [0, 48], sizes = [8, 8], strides = [1, 1]} : vector<8x64xbf16> to vector<8x8xbf16>
      %c2_100 = arith.constant 2 : index
      %207 = arith.index_cast %146 : i32 to index
      %c0_101 = arith.constant 0 : index
      %208 = vector.load %arg19[%c2_100, %207, %c0_101] : memref<4x8x8xbf16, #tpu.memory_space<vmem>>, vector<1x8x8xbf16>
      %209 = vector.shape_cast %208 : vector<1x8x8xbf16> to vector<8x8xbf16>
      %210 = vector.shape_cast %206 : vector<8x8xbf16> to vector<1x8x8xbf16>
      tpu.vector_store %arg19[%c2_100, %207, %c0_101], %210 {strides = array<i32>} : memref<4x8x8xbf16, #tpu.memory_space<vmem>>, vector<1x8x8xbf16>,
      %211 = vector.extract_strided_slice %180 {offsets = [0, 24], sizes = [8, 8], strides = [1, 1]} : vector<8x64xbf16> to vector<8x8xbf16>
      %c3_102 = arith.constant 3 : index
      %212 = arith.index_cast %146 : i32 to index
      %c0_103 = arith.constant 0 : index
      %213 = vector.load %arg18[%c3_102, %212, %c0_103] : memref<4x8x8xbf16, #tpu.memory_space<vmem>>, vector<1x8x8xbf16>
      %214 = vector.shape_cast %213 : vector<1x8x8xbf16> to vector<8x8xbf16>
      %215 = vector.shape_cast %211 : vector<8x8xbf16> to vector<1x8x8xbf16>
      tpu.vector_store %arg18[%c3_102, %212, %c0_103], %215 {strides = array<i32>} : memref<4x8x8xbf16, #tpu.memory_space<vmem>>, vector<1x8x8xbf16>,
      %216 = vector.extract_strided_slice %180 {offsets = [0, 56], sizes = [8, 8], strides = [1, 1]} : vector<8x64xbf16> to vector<8x8xbf16>
      %c3_104 = arith.constant 3 : index
      %217 = arith.index_cast %146 : i32 to index
      %c0_105 = arith.constant 0 : index
      %218 = vector.load %arg19[%c3_104, %217, %c0_105] : memref<4x8x8xbf16, #tpu.memory_space<vmem>>, vector<1x8x8xbf16>
      %219 = vector.shape_cast %218 : vector<1x8x8xbf16> to vector<8x8xbf16>
      %220 = vector.shape_cast %216 : vector<8x8xbf16> to vector<1x8x8xbf16>
      tpu.vector_store %arg19[%c3_104, %217, %c0_105], %220 {strides = array<i32>} : memref<4x8x8xbf16, #tpu.memory_space<vmem>>, vector<1x8x8xbf16>,
      %c1_i32_106 = arith.constant 1 : i32
    } else {
    }
    %c8_i32 = arith.constant 8 : i32
    %3 = arith.muli %arg1, %c8_i32 : i32
    %4 = tpu.assume_multiple %3, 8 : i32
    %c0 = arith.constant 0 : index
    %5 = arith.index_cast %4 : i32 to index
    %c0_1 = arith.constant 0 : index
    %6 = vector.load %arg2[%c0, %5, %c0_1] : memref<1x8x32xf32, #tpu.memory_space<vmem>>, vector<1x8x32xf32>
    %7 = vector.shape_cast %6 : vector<1x8x32xf32> to vector<8x32xf32>
    %c0_2 = arith.constant 0 : index
    %c0_3 = arith.constant 0 : index
    %8 = vector.load %arg3[%c0_2, %c0_3] : memref<1x32xf32, #tpu.memory_space<vmem>>, vector<1x32xf32>
    %c0_4 = arith.constant 0 : index
    %c0_5 = arith.constant 0 : index
    %9 = vector.load %arg4[%c0_4, %c0_5] : memref<1x32xf32, #tpu.memory_space<vmem>>, vector<1x32xf32>
    %cst = arith.constant dense<0.000000e+00> : vector<8xf32>
    %10 = vector.multi_reduction <add>, %7, %cst [1] : vector<8x32xf32> to vector<8xf32>
    %11 = vector.shape_cast %10 : vector<8xf32> to vector<8x1xf32>
    %cst_6 = arith.constant 3.200000e+01 : f32
    %12 = vector.broadcast %cst_6 : f32 to vector<8x1xf32>
    %13 = arith.divf %11, %12 : vector<8x1xf32>
    %14 = vector.broadcast %13 : vector<8x1xf32> to vector<8x32xf32>
    %15 = arith.subf %7, %14 : vector<8x32xf32>
    %16 = arith.mulf %15, %15 : vector<8x32xf32>
    %cst_7 = arith.constant dense<0.000000e+00> : vector<8xf32>
    %17 = vector.multi_reduction <add>, %16, %cst_7 [1] : vector<8x32xf32> to vector<8xf32>
    %18 = vector.shape_cast %17 : vector<8xf32> to vector<8x1xf32>
    %cst_8 = arith.constant 3.200000e+01 : f32
    %19 = vector.broadcast %cst_8 : f32 to vector<8x1xf32>
    %20 = arith.divf %18, %19 : vector<8x1xf32>
    %21 = vector.broadcast %13 : vector<8x1xf32> to vector<8x32xf32>
    %22 = arith.subf %7, %21 : vector<8x32xf32>
    %cst_9 = arith.constant 9.99999974E-6 : f32
    %23 = vector.broadcast %cst_9 : f32 to vector<8x1xf32>
    %24 = arith.addf %20, %23 : vector<8x1xf32>
    %25 = math.rsqrt %24 : vector<8x1xf32>
    %26 = vector.broadcast %25 : vector<8x1xf32> to vector<8x32xf32>
    %27 = arith.mulf %22, %26 : vector<8x32xf32>
    %28 = vector.broadcast %8 : vector<1x32xf32> to vector<8x32xf32>
    %29 = arith.mulf %27, %28 : vector<8x32xf32>
    %30 = vector.broadcast %9 : vector<1x32xf32> to vector<8x32xf32>
    %31 = arith.addf %29, %30 : vector<8x32xf32>
    %32 = arith.truncf %31 : vector<8x32xf32> to vector<8x32xbf16>
    %c0_10 = arith.constant 0 : index
    %c0_11 = arith.constant 0 : index
    %33 = vector.load %arg5[%c0_10, %c0_11] : memref<32x32xbf16, #tpu.memory_space<vmem>>, vector<32x32xbf16>
    %cst_12 = arith.constant dense<0.000000e+00> : vector<8x32xf32>
    %34 = tpu.matmul %32, %33, %cst_12 {dimension_numbers = #tpu.dot_dimension_numbers<[1], [0], [0], [1], [0, 0, 1, 1], [], []>} : vector<8x32xbf16>, vector<32x32xbf16>, vector<8x32xf32> -> vector<8x32xf32>
    %c0_13 = arith.constant 0 : index
    %c0_14 = arith.constant 0 : index
    %35 = vector.load %arg6[%c0_13, %c0_14] : memref<1x32xf32, #tpu.memory_space<vmem>>, vector<1x32xf32>
    %36 = vector.broadcast %35 : vector<1x32xf32> to vector<8x32xf32>
    %37 = arith.addf %34, %36 : vector<8x32xf32>
    %38 = arith.truncf %37 : vector<8x32xf32> to vector<8x32xbf16>
    %39 = vector.extract_strided_slice %38 {offsets = [0, 0], sizes = [8, 8], strides = [1, 1]} : vector<8x32xbf16> to vector<8x8xbf16>
    %c0_15 = arith.constant 0 : index
    %c0_16 = arith.constant 0 : index
    %c0_17 = arith.constant 0 : index
    %40 = vector.load %arg20[%c0_15, %c0_16, %c0_17] : memref<4x8x8xbf16, #tpu.memory_space<vmem>>, vector<1x8x8xbf16>
    %41 = vector.shape_cast %40 : vector<1x8x8xbf16> to vector<8x8xbf16>
    %42 = vector.shape_cast %39 : vector<8x8xbf16> to vector<1x8x8xbf16>
    tpu.vector_store %arg20[%c0_15, %c0_16, %c0_17], %42 {strides = array<i32>} : memref<4x8x8xbf16, #tpu.memory_space<vmem>>, vector<1x8x8xbf16>,
    %43 = vector.extract_strided_slice %38 {offsets = [0, 8], sizes = [8, 8], strides = [1, 1]} : vector<8x32xbf16> to vector<8x8xbf16>
    %c1 = arith.constant 1 : index
    %c0_18 = arith.constant 0 : index
    %c0_19 = arith.constant 0 : index
    %44 = vector.load %arg20[%c1, %c0_18, %c0_19] : memref<4x8x8xbf16, #tpu.memory_space<vmem>>, vector<1x8x8xbf16>
    %45 = vector.shape_cast %44 : vector<1x8x8xbf16> to vector<8x8xbf16>
    %46 = vector.shape_cast %43 : vector<8x8xbf16> to vector<1x8x8xbf16>
    tpu.vector_store %arg20[%c1, %c0_18, %c0_19], %46 {strides = array<i32>} : memref<4x8x8xbf16, #tpu.memory_space<vmem>>, vector<1x8x8xbf16>,
    %47 = vector.extract_strided_slice %38 {offsets = [0, 16], sizes = [8, 8], strides = [1, 1]} : vector<8x32xbf16> to vector<8x8xbf16>
    %c2 = arith.constant 2 : index
    %c0_20 = arith.constant 0 : index
    %c0_21 = arith.constant 0 : index
    %48 = vector.load %arg20[%c2, %c0_20, %c0_21] : memref<4x8x8xbf16, #tpu.memory_space<vmem>>, vector<1x8x8xbf16>
    %49 = vector.shape_cast %48 : vector<1x8x8xbf16> to vector<8x8xbf16>
    %50 = vector.shape_cast %47 : vector<8x8xbf16> to vector<1x8x8xbf16>
    tpu.vector_store %arg20[%c2, %c0_20, %c0_21], %50 {strides = array<i32>} : memref<4x8x8xbf16, #tpu.memory_space<vmem>>, vector<1x8x8xbf16>,
    %51 = vector.extract_strided_slice %38 {offsets = [0, 24], sizes = [8, 8], strides = [1, 1]} : vector<8x32xbf16> to vector<8x8xbf16>
    %c3 = arith.constant 3 : index
    %c0_22 = arith.constant 0 : index
    %c0_23 = arith.constant 0 : index
    %52 = vector.load %arg20[%c3, %c0_22, %c0_23] : memref<4x8x8xbf16, #tpu.memory_space<vmem>>, vector<1x8x8xbf16>
    %53 = vector.shape_cast %52 : vector<1x8x8xbf16> to vector<8x8xbf16>
    %54 = vector.shape_cast %51 : vector<8x8xbf16> to vector<1x8x8xbf16>
    tpu.vector_store %arg20[%c3, %c0_22, %c0_23], %54 {strides = array<i32>} : memref<4x8x8xbf16, #tpu.memory_space<vmem>>, vector<1x8x8xbf16>,
    %c0_24 = arith.constant 0 : index
    %c0_25 = arith.constant 0 : index
    %c0_26 = arith.constant 0 : index
    %55 = vector.load %arg20[%c0_24, %c0_25, %c0_26] : memref<4x8x8xbf16, #tpu.memory_space<vmem>>, vector<4x8x8xbf16>
    %56 = tpu.iota {dimensions = array<i32: 0>} : vector<8x8xi32>
    %57 = tpu.iota {dimensions = array<i32: 1>} : vector<8x8xi32>
    %58 = arith.cmpi sge, %56, %57 : vector<8x8xi32>
    %cst_27 = arith.constant 0.000000e+00 : f32
    %cst_28 = arith.constant -1.000000e+30 : f32
    %59 = vector.broadcast %cst_27 : f32 to vector<8x8xf32>
    %60 = vector.broadcast %cst_28 : f32 to vector<8x8xf32>
    %61 = arith.select %58, %59, %60 : vector<8x8xi1>, vector<8x8xf32>
    %cst_29 = arith.constant 0xFF800000 : f32
    %62 = vector.broadcast %cst_29 : f32 to vector<4x8x1xf32>
    %cst_30 = arith.constant 0.000000e+00 : f32
    %63 = vector.broadcast %cst_30 : f32 to vector<4x8x1xf32>
    %cst_31 = arith.constant 0.000000e+00 : f32
    %64 = vector.broadcast %cst_31 : f32 to vector<4x8x8xf32>
    %c1_i32 = arith.constant 1 : i32
    %65 = arith.addi %arg1, %c1_i32 : i32
    %c0_i32_32 = arith.constant 0 : i32
    %66 = arith.subi %65, %c0_i32_32 : i32
    %67 = arith.addi %c0_i32_32, %66 : i32
    %c1_i32_33 = arith.constant 1 : i32
    %68:3 = scf.for %arg22 = %c0_i32_32 to %67 step %c1_i32_33 iter_args(%arg23 = %62, %arg24 = %63, %arg25 = %64) -> (vector<4x8x1xf32>, vector<4x8x1xf32>, vector<4x8x8xf32>)  : i32 {
      %c8_i32_72 = arith.constant 8 : i32
      %145 = arith.muli %arg22, %c8_i32_72 : i32
      %146 = tpu.assume_multiple %145, 8 : i32
      %c0_73 = arith.constant 0 : index
      %147 = arith.index_cast %146 : i32 to index
      %c0_74 = arith.constant 0 : index
      %148 = vector.load %arg18[%c0_73, %147, %c0_74] : memref<4x8x8xbf16, #tpu.memory_space<vmem>>, vector<4x8x8xbf16>
      %c0_75 = arith.constant 0 : index
      %149 = arith.index_cast %146 : i32 to index
      %c0_76 = arith.constant 0 : index
      %150 = vector.load %arg19[%c0_75, %149, %c0_76] : memref<4x8x8xbf16, #tpu.memory_space<vmem>>, vector<4x8x8xbf16>
      "tpu.trace_start"() <{level = 10 : i32, message = "nqd,nkd->nqk"}> : () -> ()
      %cst_77 = arith.constant dense<0.000000e+00> : vector<4x8x8xf32>
      %151 = tpu.matmul %55, %148, %cst_77 {dimension_numbers = #tpu.dot_dimension_numbers<[2], [2], [1], [1], [0, 0, 0, 1, 1, 1], [0], [0]>} : vector<4x8x8xbf16>, vector<4x8x8xbf16>, vector<4x8x8xf32> -> vector<4x8x8xf32>
      "tpu.trace_stop"() : () -> ()
      %152 = arith.cmpi eq, %arg22, %arg1 : i32
      %153 = arith.extui %152 : i1 to i32
      %154 = arith.sitofp %153 : i32 to f32
      %155 = vector.broadcast %154 : f32 to vector<8x8xf32>
      %156 = arith.mulf %61, %155 : vector<8x8xf32>
      %157 = vector.shape_cast %156 : vector<8x8xf32> to vector<1x8x8xf32>
      %158 = vector.broadcast %157 : vector<1x8x8xf32> to vector<4x8x8xf32>
      %159 = arith.addf %151, %158 : vector<4x8x8xf32>
      %cst_78 = arith.constant dense<0xFF800000> : vector<4x8xf32>
      %160 = vector.multi_reduction <maximumf>, %159, %cst_78 [2] : vector<4x8x8xf32> to vector<4x8xf32>
      %161 = vector.shape_cast %160 : vector<4x8xf32> to vector<4x8x1xf32>
      %162 = arith.maximumf %arg23, %161 : vector<4x8x1xf32>
      %163 = arith.subf %arg23, %162 : vector<4x8x1xf32>
      %164 = math.exp %163 : vector<4x8x1xf32>
      %165 = vector.broadcast %162 : vector<4x8x1xf32> to vector<4x8x8xf32>
      %166 = arith.subf %159, %165 : vector<4x8x8xf32>
      %167 = math.exp %166 : vector<4x8x8xf32>
      %168 = arith.mulf %164, %arg24 : vector<4x8x1xf32>
      %cst_79 = arith.constant dense<0.000000e+00> : vector<4x8xf32>
      %169 = vector.multi_reduction <add>, %167, %cst_79 [2] : vector<4x8x8xf32> to vector<4x8xf32>
      %170 = vector.shape_cast %169 : vector<4x8xf32> to vector<4x8x1xf32>
      %171 = arith.addf %168, %170 : vector<4x8x1xf32>
      %172 = vector.broadcast %164 : vector<4x8x1xf32> to vector<4x8x8xf32>
      %173 = arith.mulf %172, %arg25 : vector<4x8x8xf32>
      %174 = arith.truncf %167 : vector<4x8x8xf32> to vector<4x8x8xbf16>
      "tpu.trace_start"() <{level = 10 : i32, message = "nqk,nkd->nqd"}> : () -> ()
      %cst_80 = arith.constant dense<0.000000e+00> : vector<4x8x8xf32>
      %175 = tpu.matmul %174, %150, %cst_80 {dimension_numbers = #tpu.dot_dimension_numbers<[2], [1], [1], [2], [0, 0, 0, 1, 1, 2], [0], [0]>} : vector<4x8x8xbf16>, vector<4x8x8xbf16>, vector<4x8x8xf32> -> vector<4x8x8xf32>
      "tpu.trace_stop"() : () -> ()
      %176 = arith.addf %173, %175 : vector<4x8x8xf32>
      scf.yield %162, %171, %176 : vector<4x8x1xf32>, vector<4x8x1xf32>, vector<4x8x8xf32>
    }
    %69 = tpu.reciprocal %68#1 {approx = true} : vector<4x8x1xf32> -> vector<4x8x1xf32>
    %70 = vector.broadcast %69 : vector<4x8x1xf32> to vector<4x8x8xf32>
    %71 = arith.mulf %68#2, %70 : vector<4x8x8xf32>
    %72 = arith.truncf %71 : vector<4x8x8xf32> to vector<4x8x8xbf16>
    %73 = vector.extract_strided_slice %72 {offsets = [0, 0, 0], sizes = [1, 8, 8], strides = [1, 1, 1]} : vector<4x8x8xbf16> to vector<1x8x8xbf16>
    %74 = vector.shape_cast %73 : vector<1x8x8xbf16> to vector<8x8xbf16>
    %c0_34 = arith.constant 0 : index
    %c0_35 = arith.constant 0 : index
    %75 = vector.load %arg21[%c0_34, %c0_35] : memref<8x32xbf16, #tpu.memory_space<vmem>>, vector<8x8xbf16>
    tpu.vector_store %arg21[%c0_34, %c0_35], %74 {strides = array<i32>} : memref<8x32xbf16, #tpu.memory_space<vmem>>, vector<8x8xbf16>,
    %76 = vector.extract_strided_slice %72 {offsets = [1, 0, 0], sizes = [1, 8, 8], strides = [1, 1, 1]} : vector<4x8x8xbf16> to vector<1x8x8xbf16>
    %77 = vector.shape_cast %76 : vector<1x8x8xbf16> to vector<8x8xbf16>
    %c0_36 = arith.constant 0 : index
    %c8 = arith.constant 8 : index
    %78 = vector.load %arg21[%c0_36, %c8] : memref<8x32xbf16, #tpu.memory_space<vmem>>, vector<8x8xbf16>
    tpu.vector_store %arg21[%c0_36, %c8], %77 {strides = array<i32>} : memref<8x32xbf16, #tpu.memory_space<vmem>>, vector<8x8xbf16>,
    %79 = vector.extract_strided_slice %72 {offsets = [2, 0, 0], sizes = [1, 8, 8], strides = [1, 1, 1]} : vector<4x8x8xbf16> to vector<1x8x8xbf16>
    %80 = vector.shape_cast %79 : vector<1x8x8xbf16> to vector<8x8xbf16>
    %c0_37 = arith.constant 0 : index
    %c16 = arith.constant 16 : index
    %81 = vector.load %arg21[%c0_37, %c16] : memref<8x32xbf16, #tpu.memory_space<vmem>>, vector<8x8xbf16>
    tpu.vector_store %arg21[%c0_37, %c16], %80 {strides = array<i32>} : memref<8x32xbf16, #tpu.memory_space<vmem>>, vector<8x8xbf16>,
    %82 = vector.extract_strided_slice %72 {offsets = [3, 0, 0], sizes = [1, 8, 8], strides = [1, 1, 1]} : vector<4x8x8xbf16> to vector<1x8x8xbf16>
    %83 = vector.shape_cast %82 : vector<1x8x8xbf16> to vector<8x8xbf16>
    %c0_38 = arith.constant 0 : index
    %c24 = arith.constant 24 : index
    %84 = vector.load %arg21[%c0_38, %c24] : memref<8x32xbf16, #tpu.memory_space<vmem>>, vector<8x8xbf16>
    tpu.vector_store %arg21[%c0_38, %c24], %83 {strides = array<i32>} : memref<8x32xbf16, #tpu.memory_space<vmem>>, vector<8x8xbf16>,
    %c0_39 = arith.constant 0 : index
    %c0_40 = arith.constant 0 : index
    %85 = vector.load %arg21[%c0_39, %c0_40] : memref<8x32xbf16, #tpu.memory_space<vmem>>, vector<8x32xbf16>
    %c0_41 = arith.constant 0 : index
    %c0_42 = arith.constant 0 : index
    %86 = vector.load %arg9[%c0_41, %c0_42] : memref<32x32xbf16, #tpu.memory_space<vmem>>, vector<32x32xbf16>
    %cst_43 = arith.constant dense<0.000000e+00> : vector<8x32xf32>
    %87 = tpu.matmul %85, %86, %cst_43 {dimension_numbers = #tpu.dot_dimension_numbers<[1], [0], [0], [1], [0, 0, 1, 1], [], []>} : vector<8x32xbf16>, vector<32x32xbf16>, vector<8x32xf32> -> vector<8x32xf32>
    %c0_44 = arith.constant 0 : index
    %c0_45 = arith.constant 0 : index
    %88 = vector.load %arg10[%c0_44, %c0_45] : memref<1x32xf32, #tpu.memory_space<vmem>>, vector<1x32xf32>
    %89 = vector.broadcast %88 : vector<1x32xf32> to vector<8x32xf32>
    %90 = arith.addf %87, %89 : vector<8x32xf32>
    %91 = arith.addf %7, %90 : vector<8x32xf32>
    %c0_46 = arith.constant 0 : index
    %c0_47 = arith.constant 0 : index
    %92 = vector.load %arg11[%c0_46, %c0_47] : memref<1x32xf32, #tpu.memory_space<vmem>>, vector<1x32xf32>
    %c0_48 = arith.constant 0 : index
    %c0_49 = arith.constant 0 : index
    %93 = vector.load %arg12[%c0_48, %c0_49] : memref<1x32xf32, #tpu.memory_space<vmem>>, vector<1x32xf32>
    %cst_50 = arith.constant dense<0.000000e+00> : vector<8xf32>
    %94 = vector.multi_reduction <add>, %91, %cst_50 [1] : vector<8x32xf32> to vector<8xf32>
    %95 = vector.shape_cast %94 : vector<8xf32> to vector<8x1xf32>
    %cst_51 = arith.constant 3.200000e+01 : f32
    %96 = vector.broadcast %cst_51 : f32 to vector<8x1xf32>
    %97 = arith.divf %95, %96 : vector<8x1xf32>
    %98 = vector.broadcast %97 : vector<8x1xf32> to vector<8x32xf32>
    %99 = arith.subf %91, %98 : vector<8x32xf32>
    %100 = arith.mulf %99, %99 : vector<8x32xf32>
    %cst_52 = arith.constant dense<0.000000e+00> : vector<8xf32>
    %101 = vector.multi_reduction <add>, %100, %cst_52 [1] : vector<8x32xf32> to vector<8xf32>
    %102 = vector.shape_cast %101 : vector<8xf32> to vector<8x1xf32>
    %cst_53 = arith.constant 3.200000e+01 : f32
    %103 = vector.broadcast %cst_53 : f32 to vector<8x1xf32>
    %104 = arith.divf %102, %103 : vector<8x1xf32>
    %105 = vector.broadcast %97 : vector<8x1xf32> to vector<8x32xf32>
    %106 = arith.subf %91, %105 : vector<8x32xf32>
    %cst_54 = arith.constant 9.99999974E-6 : f32
    %107 = vector.broadcast %cst_54 : f32 to vector<8x1xf32>
    %108 = arith.addf %104, %107 : vector<8x1xf32>
    %109 = math.rsqrt %108 : vector<8x1xf32>
    %110 = vector.broadcast %109 : vector<8x1xf32> to vector<8x32xf32>
    %111 = arith.mulf %106, %110 : vector<8x32xf32>
    %112 = vector.broadcast %92 : vector<1x32xf32> to vector<8x32xf32>
    %113 = arith.mulf %111, %112 : vector<8x32xf32>
    %114 = vector.broadcast %93 : vector<1x32xf32> to vector<8x32xf32>
    %115 = arith.addf %113, %114 : vector<8x32xf32>
    %116 = arith.truncf %115 : vector<8x32xf32> to vector<8x32xbf16>
    %c0_55 = arith.constant 0 : index
    %c0_56 = arith.constant 0 : index
    %117 = vector.load %arg13[%c0_55, %c0_56] : memref<32x128xbf16, #tpu.memory_space<vmem>>, vector<32x128xbf16>
    %cst_57 = arith.constant dense<0.000000e+00> : vector<8x128xf32>
    %118 = tpu.matmul %116, %117, %cst_57 {dimension_numbers = #tpu.dot_dimension_numbers<[1], [0], [0], [1], [0, 0, 1, 1], [], []>} : vector<8x32xbf16>, vector<32x128xbf16>, vector<8x128xf32> -> vector<8x128xf32>
    %c0_58 = arith.constant 0 : index
    %c0_59 = arith.constant 0 : index
    %119 = vector.load %arg14[%c0_58, %c0_59] : memref<1x128xf32, #tpu.memory_space<vmem>>, vector<1x128xf32>
    %120 = vector.broadcast %119 : vector<1x128xf32> to vector<8x128xf32>
    %121 = arith.addf %118, %120 : vector<8x128xf32>
    %cst_60 = arith.constant 5.000000e-01 : f32
    %122 = vector.broadcast %cst_60 : f32 to vector<8x128xf32>
    %123 = arith.mulf %122, %121 : vector<8x128xf32>
    %cst_61 = arith.constant 4.471500e-02 : f32
    %124 = vector.broadcast %cst_61 : f32 to vector<8x128xf32>
    %125 = arith.mulf %124, %121 : vector<8x128xf32>
    %126 = arith.mulf %125, %121 : vector<8x128xf32>
    %127 = arith.mulf %126, %121 : vector<8x128xf32>
    %128 = arith.addf %121, %127 : vector<8x128xf32>
    %cst_62 = arith.constant 0.797884583 : f32
    %129 = vector.broadcast %cst_62 : f32 to vector<8x128xf32>
    %130 = arith.mulf %129, %128 : vector<8x128xf32>
    %131 = math.tanh %130 : vector<8x128xf32>
    %cst_63 = arith.constant 1.000000e+00 : f32
    %132 = vector.broadcast %cst_63 : f32 to vector<8x128xf32>
    %133 = arith.addf %132, %131 : vector<8x128xf32>
    %134 = arith.mulf %123, %133 : vector<8x128xf32>
    %135 = arith.truncf %134 : vector<8x128xf32> to vector<8x128xbf16>
    %c0_64 = arith.constant 0 : index
    %c0_65 = arith.constant 0 : index
    %136 = vector.load %arg15[%c0_64, %c0_65] : memref<128x32xbf16, #tpu.memory_space<vmem>>, vector<128x32xbf16>
    %cst_66 = arith.constant dense<0.000000e+00> : vector<8x32xf32>
    %137 = tpu.matmul %135, %136, %cst_66 {dimension_numbers = #tpu.dot_dimension_numbers<[1], [0], [0], [1], [0, 0, 1, 1], [], []>} : vector<8x128xbf16>, vector<128x32xbf16>, vector<8x32xf32> -> vector<8x32xf32>
    %c0_67 = arith.constant 0 : index
    %c0_68 = arith.constant 0 : index
    %138 = vector.load %arg16[%c0_67, %c0_68] : memref<1x32xf32, #tpu.memory_space<vmem>>, vector<1x32xf32>
    %139 = vector.broadcast %138 : vector<1x32xf32> to vector<8x32xf32>
    %140 = arith.addf %137, %139 : vector<8x32xf32>
    %141 = arith.addf %91, %140 : vector<8x32xf32>
    %c0_69 = arith.constant 0 : index
    %c0_70 = arith.constant 0 : index
    %c0_71 = arith.constant 0 : index
    %142 = vector.load %arg17[%c0_69, %c0_70, %c0_71] : memref<1x8x32xf32, #tpu.memory_space<vmem>>, vector<1x8x32xf32>
    %143 = vector.shape_cast %142 : vector<1x8x32xf32> to vector<8x32xf32>
    %144 = vector.shape_cast %141 : vector<8x32xf32> to vector<1x8x32xf32>
    tpu.vector_store %arg17[%c0_69, %c0_70, %c0_71], %144 {strides = array<i32>} : memref<1x8x32xf32, #tpu.memory_space<vmem>>, vector<1x8x32xf32>,
    return
  }
  func.func @transform_0(%arg0: i32, %arg1: i32) -> (i32, i32, i32) {
    %c0_i32 = arith.constant 0 : i32
    %c0_i32_0 = arith.constant 0 : i32
    %c0_i32_1 = arith.constant 0 : i32
    return %arg0, %c0_i32, %c0_i32_0 : i32, i32, i32
  }
  func.func @transform_1(%arg0: i32, %arg1: i32) -> (i32, i32) {
    %c0_i32 = arith.constant 0 : i32
    %c0_i32_0 = arith.constant 0 : i32
    %c0_i32_1 = arith.constant 0 : i32
    return %c0_i32, %c0_i32_0 : i32, i32
  }
  func.func @transform_2(%arg0: i32, %arg1: i32) -> (i32, i32) {
    %c0_i32 = arith.constant 0 : i32
    %c0_i32_0 = arith.constant 0 : i32
    %c0_i32_1 = arith.constant 0 : i32
    return %c0_i32, %c0_i32_0 : i32, i32
  }
  func.func @transform_3(%arg0: i32, %arg1: i32) -> (i32, i32) {
    %c0_i32 = arith.constant 0 : i32
    %c0_i32_0 = arith.constant 0 : i32
    %c0_i32_1 = arith.constant 0 : i32
    return %c0_i32, %c0_i32_0 : i32, i32
  }
  func.func @transform_4(%arg0: i32, %arg1: i32) -> (i32, i32) {
    %c0_i32 = arith.constant 0 : i32
    %c0_i32_0 = arith.constant 0 : i32
    %c0_i32_1 = arith.constant 0 : i32
    return %c0_i32, %c0_i32_0 : i32, i32
  }
  func.func @transform_5(%arg0: i32, %arg1: i32) -> (i32, i32) {
    %c0_i32 = arith.constant 0 : i32
    %c0_i32_0 = arith.constant 0 : i32
    %c0_i32_1 = arith.constant 0 : i32
    return %c0_i32, %c0_i32_0 : i32, i32
  }
  func.func @transform_6(%arg0: i32, %arg1: i32) -> (i32, i32) {
    %c0_i32 = arith.constant 0 : i32
    %c0_i32_0 = arith.constant 0 : i32
    %c0_i32_1 = arith.constant 0 : i32
    return %c0_i32, %c0_i32_0 : i32, i32
  }
  func.func @transform_7(%arg0: i32, %arg1: i32) -> (i32, i32) {
    %c0_i32 = arith.constant 0 : i32
    %c0_i32_0 = arith.constant 0 : i32
    %c0_i32_1 = arith.constant 0 : i32
    return %c0_i32, %c0_i32_0 : i32, i32
  }
  func.func @transform_8(%arg0: i32, %arg1: i32) -> (i32, i32) {
    %c0_i32 = arith.constant 0 : i32
    %c0_i32_0 = arith.constant 0 : i32
    %c0_i32_1 = arith.constant 0 : i32
    return %c0_i32, %c0_i32_0 : i32, i32
  }
  func.func @transform_9(%arg0: i32, %arg1: i32) -> (i32, i32) {
    %c0_i32 = arith.constant 0 : i32
    %c0_i32_0 = arith.constant 0 : i32
    %c0_i32_1 = arith.constant 0 : i32
    return %c0_i32, %c0_i32_0 : i32, i32
  }
  func.func @transform_10(%arg0: i32, %arg1: i32) -> (i32, i32) {
    %c0_i32 = arith.constant 0 : i32
    %c0_i32_0 = arith.constant 0 : i32
    %c0_i32_1 = arith.constant 0 : i32
    return %c0_i32, %c0_i32_0 : i32, i32
  }
  func.func @transform_11(%arg0: i32, %arg1: i32) -> (i32, i32) {
    %c0_i32 = arith.constant 0 : i32
    %c0_i32_0 = arith.constant 0 : i32
    %c0_i32_1 = arith.constant 0 : i32
    return %c0_i32, %c0_i32_0 : i32, i32
  }
  func.func @transform_12(%arg0: i32, %arg1: i32) -> (i32, i32) {
    %c0_i32 = arith.constant 0 : i32
    %c0_i32_0 = arith.constant 0 : i32
    %c0_i32_1 = arith.constant 0 : i32
    return %c0_i32, %c0_i32_0 : i32, i32
  }
  func.func @transform_13(%arg0: i32, %arg1: i32) -> (i32, i32) {
    %c0_i32 = arith.constant 0 : i32
    %c0_i32_0 = arith.constant 0 : i32
    %c0_i32_1 = arith.constant 0 : i32
    return %c0_i32, %c0_i32_0 : i32, i32
  }
  func.func @transform_14(%arg0: i32, %arg1: i32) -> (i32, i32) {
    %c0_i32 = arith.constant 0 : i32
    %c0_i32_0 = arith.constant 0 : i32
    %c0_i32_1 = arith.constant 0 : i32
    return %c0_i32, %c0_i32_0 : i32, i32
  }
  func.func @transform_15(%arg0: i32, %arg1: i32) -> (i32, i32, i32) {
    %c0_i32 = arith.constant 0 : i32
    %c0_i32_0 = arith.constant 0 : i32
    return %arg0, %arg1, %c0_i32 : i32, i32, i32
  }
}

module attributes {stable_mosaic.version = 11 : i64} {
  func.func @gpt2_block_kernel(%arg0: i32, %arg1: i32, %arg2: memref<1x8x32xf32, #tpu.memory_space<vmem>>, %arg3: memref<1x32xf32, #tpu.memory_space<vmem>>, %arg4: memref<1x32xf32, #tpu.memory_space<vmem>>, %arg5: memref<32x32xbf16, #tpu.memory_space<vmem>>, %arg6: memref<1x32xf32, #tpu.memory_space<vmem>>, %arg7: memref<32x64xbf16, #tpu.memory_space<vmem>>, %arg8: memref<1x64xf32, #tpu.memory_space<vmem>>, %arg9: memref<32x32xbf16, #tpu.memory_space<vmem>>, %arg10: memref<1x32xf32, #tpu.memory_space<vmem>>, %arg11: memref<1x32xf32, #tpu.memory_space<vmem>>, %arg12: memref<1x32xf32, #tpu.memory_space<vmem>>, %arg13: memref<32x128xbf16, #tpu.memory_space<vmem>>, %arg14: memref<1x128xf32, #tpu.memory_space<vmem>>, %arg15: memref<128x32xbf16, #tpu.memory_space<vmem>>, %arg16: memref<1x32xf32, #tpu.memory_space<vmem>>, %arg17: memref<1x8x32xf32, #tpu.memory_space<vmem>>, %arg18: memref<4x8x8xbf16, #tpu.memory_space<vmem>>, %arg19: memref<4x8x8xbf16, #tpu.memory_space<vmem>>, %arg20: memref<4x8x8xbf16, #tpu.memory_space<vmem>>, %arg21: memref<8x32xbf16, #tpu.memory_space<vmem>>) attributes {dimension_semantics = [#tpu.dimension_semantics<parallel>, #tpu.dimension_semantics<arbitrary>], iteration_bounds = array<i64: 2, 1>, scalar_prefetch = 0 : i64, scratch_operands = 4 : i64, tpu.core_type = #tpu.core_type<tc>, window_params = [{transform_indices = @transform_0, window_bounds = array<i64: 1, 8, 32>}, {pipeline_mode = #tpu.pipeline_mode<synchronous>, transform_indices = @transform_1, window_bounds = array<i64: 1, 32>}, {pipeline_mode = #tpu.pipeline_mode<synchronous>, transform_indices = @transform_2, window_bounds = array<i64: 1, 32>}, {pipeline_mode = #tpu.pipeline_mode<synchronous>, transform_indices = @transform_3, window_bounds = array<i64: 32, 32>}, {pipeline_mode = #tpu.pipeline_mode<synchronous>, transform_indices = @transform_4, window_bounds = array<i64: 1, 32>}, {pipeline_mode = #tpu.pipeline_mode<synchronous>, transform_indices = @transform_5, window_bounds = array<i64: 32, 64>}, {pipeline_mode = #tpu.pipeline_mode<synchronous>, transform_indices = @transform_6, window_bounds = array<i64: 1, 64>}, {pipeline_mode = #tpu.pipeline_mode<synchronous>, transform_indices = @transform_7, window_bounds = array<i64: 32, 32>}, {pipeline_mode = #tpu.pipeline_mode<synchronous>, transform_indices = @transform_8, window_bounds = array<i64: 1, 32>}, {pipeline_mode = #tpu.pipeline_mode<synchronous>, transform_indices = @transform_9, window_bounds = array<i64: 1, 32>}, {pipeline_mode = #tpu.pipeline_mode<synchronous>, transform_indices = @transform_10, window_bounds = array<i64: 1, 32>}, {pipeline_mode = #tpu.pipeline_mode<synchronous>, transform_indices = @transform_11, window_bounds = array<i64: 32, 128>}, {pipeline_mode = #tpu.pipeline_mode<synchronous>, transform_indices = @transform_12, window_bounds = array<i64: 1, 128>}, {pipeline_mode = #tpu.pipeline_mode<synchronous>, transform_indices = @transform_13, window_bounds = array<i64: 128, 32>}, {pipeline_mode = #tpu.pipeline_mode<synchronous>, transform_indices = @transform_14, window_bounds = array<i64: 1, 32>}, {transform_indices = @transform_15, window_bounds = array<i64: 1, 8, 32>}]} {
    %c0_i32 = arith.constant 0 : i32
    %0 = arith.cmpi eq, %arg1, %c0_i32 : i32
    %1 = arith.extui %0 : i1 to i32
    %c0_i32_0 = arith.constant 0 : i32
    %2 = arith.cmpi ne, %1, %c0_i32_0 : i32
    scf.if %2 {
      %c0_i32_72 = arith.constant 0 : i32
      %c8_i32_73 = arith.constant 8 : i32
      %145 = arith.muli %c0_i32_72, %c8_i32_73 : i32
      %146 = tpu.assume_multiple %145, 8 : i32
      %c0_74 = arith.constant 0 : index
      %147 = arith.index_cast %146 : i32 to index
      %c0_75 = arith.constant 0 : index
      %148 = vector.load %arg2[%c0_74, %147, %c0_75] : memref<1x8x32xf32, #tpu.memory_space<vmem>>, vector<1x8x32xf32>
      %149 = vector.shape_cast %148 : vector<1x8x32xf32> to vector<8x32xf32>
      %c0_76 = arith.constant 0 : index
      %c0_77 = arith.constant 0 : index
      %150 = vector.load %arg3[%c0_76, %c0_77] : memref<1x32xf32, #tpu.memory_space<vmem>>, vector<1x32xf32>
      %c0_78 = arith.constant 0 : index
      %c0_79 = arith.constant 0 : index
      %151 = vector.load %arg4[%c0_78, %c0_79] : memref<1x32xf32, #tpu.memory_space<vmem>>, vector<1x32xf32>
      %cst_80 = arith.constant dense<0.000000e+00> : vector<8xf32>
      %152 = vector.multi_reduction <add>, %149, %cst_80 [1] : vector<8x32xf32> to vector<8xf32>
      %153 = vector.shape_cast %152 : vector<8xf32> to vector<8x1xf32>
      %cst_81 = arith.constant 3.200000e+01 : f32
      %154 = vector.broadcast %cst_81 : f32 to vector<8x1xf32>
      %155 = arith.divf %153, %154 : vector<8x1xf32>
      %156 = vector.broadcast %155 : vector<8x1xf32> to vector<8x32xf32>
      %157 = arith.subf %149, %156 : vector<8x32xf32>
      %158 = arith.mulf %157, %157 : vector<8x32xf32>
      %cst_82 = arith.constant dense<0.000000e+00> : vector<8xf32>
      %159 = vector.multi_reduction <add>, %158, %cst_82 [1] : vector<8x32xf32> to vector<8xf32>
      %160 = vector.shape_cast %159 : vector<8xf32> to vector<8x1xf32>
      %cst_83 = arith.constant 3.200000e+01 : f32
      %161 = vector.broadcast %cst_83 : f32 to vector<8x1xf32>
      %162 = arith.divf %160, %161 : vector<8x1xf32>
      %163 = vector.broadcast %155 : vector<8x1xf32> to vector<8x32xf32>
      %164 = arith.subf %149, %163 : vector<8x32xf32>
      %cst_84 = arith.constant 9.99999974E-6 : f32
      %165 = vector.broadcast %cst_84 : f32 to vector<8x1xf32>
      %166 = arith.addf %162, %165 : vector<8x1xf32>
      %167 = math.rsqrt %166 : vector<8x1xf32>
      %168 = vector.broadcast %167 : vector<8x1xf32> to vector<8x32xf32>
      %169 = arith.mulf %164, %168 : vector<8x32xf32>
      %170 = vector.broadcast %150 : vector<1x32xf32> to vector<8x32xf32>
      %171 = arith.mulf %169, %170 : vector<8x32xf32>
      %172 = vector.broadcast %151 : vector<1x32xf32> to vector<8x32xf32>
      %173 = arith.addf %171, %172 : vector<8x32xf32>
      %174 = arith.truncf %173 : vector<8x32xf32> to vector<8x32xbf16>
      %c0_85 = arith.constant 0 : index
      %c0_86 = arith.constant 0 : index
      %175 = vector.load %arg7[%c0_85, %c0_86] : memref<32x64xbf16, #tpu.memory_space<vmem>>, vector<32x64xbf16>
      %cst_87 = arith.constant dense<0.000000e+00> : vector<8x64xf32>
      %176 = tpu.matmul %174, %175, %cst_87 {dimension_numbers = #tpu.dot_dimension_numbers<[1], [0], [0], [1], [0, 0, 1, 1], [], []>} : vector<8x32xbf16>, vector<32x64xbf16>, vector<8x64xf32> -> vector<8x64xf32>
      %c0_88 = arith.constant 0 : index
      %c0_89 = arith.constant 0 : index
      %177 = vector.load %arg8[%c0_88, %c0_89] : memref<1x64xf32, #tpu.memory_space<vmem>>, vector<1x64xf32>
      %178 = vector.broadcast %177 : vector<1x64xf32> to vector<8x64xf32>
      %179 = arith.addf %176, %178 : vector<8x64xf32>
      %180 = arith.truncf %179 : vector<8x64xf32> to vector<8x64xbf16>
      %181 = vector.extract_strided_slice %180 {offsets = [0, 0], sizes = [8, 8], strides = [1, 1]} : vector<8x64xbf16> to vector<8x8xbf16>
      %c0_90 = arith.constant 0 : index
      %182 = arith.index_cast %146 : i32 to index
      %c0_91 = arith.constant 0 : index
      %183 = vector.load %arg18[%c0_90, %182, %c0_91] : memref<4x8x8xbf16, #tpu.memory_space<vmem>>, vector<1x8x8xbf16>
      %184 = vector.shape_cast %183 : vector<1x8x8xbf16> to vector<8x8xbf16>
      %185 = vector.shape_cast %181 : vector<8x8xbf16> to vector<1x8x8xbf16>
      tpu.vector_store %arg18[%c0_90, %182, %c0_91], %185 {strides = array<i32>} : memref<4x8x8xbf16, #tpu.memory_space<vmem>>, vector<1x8x8xbf16>,
      %186 = vector.extract_strided_slice %180 {offsets = [0, 32], sizes = [8, 8], strides = [1, 1]} : vector<8x64xbf16> to vector<8x8xbf16>
      %c0_92 = arith.constant 0 : index
      %187 = arith.index_cast %146 : i32 to index
      %c0_93 = arith.constant 0 : index
      %188 = vector.load %arg19[%c0_92, %187, %c0_93] : memref<4x8x8xbf16, #tpu.memory_space<vmem>>, vector<1x8x8xbf16>
      %189 = vector.shape_cast %188 : vector<1x8x8xbf16> to vector<8x8xbf16>
      %190 = vector.shape_cast %186 : vector<8x8xbf16> to vector<1x8x8xbf16>
      tpu.vector_store %arg19[%c0_92, %187, %c0_93], %190 {strides = array<i32>} : memref<4x8x8xbf16, #tpu.memory_space<vmem>>, vector<1x8x8xbf16>,
      %191 = vector.extract_strided_slice %180 {offsets = [0, 8], sizes = [8, 8], strides = [1, 1]} : vector<8x64xbf16> to vector<8x8xbf16>
      %c1_94 = arith.constant 1 : index
      %192 = arith.index_cast %146 : i32 to index
      %c0_95 = arith.constant 0 : index
      %193 = vector.load %arg18[%c1_94, %192, %c0_95] : memref<4x8x8xbf16, #tpu.memory_space<vmem>>, vector<1x8x8xbf16>
      %194 = vector.shape_cast %193 : vector<1x8x8xbf16> to vector<8x8xbf16>
      %195 = vector.shape_cast %191 : vector<8x8xbf16> to vector<1x8x8xbf16>
      tpu.vector_store %arg18[%c1_94, %192, %c0_95], %195 {strides = array<i32>} : memref<4x8x8xbf16, #tpu.memory_space<vmem>>, vector<1x8x8xbf16>,
      %196 = vector.extract_strided_slice %180 {offsets = [0, 40], sizes = [8, 8], strides = [1, 1]} : vector<8x64xbf16> to vector<8x8xbf16>
      %c1_96 = arith.constant 1 : index
      %197 = arith.index_cast %146 : i32 to index
      %c0_97 = arith.constant 0 : index
      %198 = vector.load %arg19[%c1_96, %197, %c0_97] : memref<4x8x8xbf16, #tpu.memory_space<vmem>>, vector<1x8x8xbf16>
      %199 = vector.shape_cast %198 : vector<1x8x8xbf16> to vector<8x8xbf16>
      %200 = vector.shape_cast %196 : vector<8x8xbf16> to vector<1x8x8xbf16>
      tpu.vector_store %arg19[%c1_96, %197, %c0_97], %200 {strides = array<i32>} : memref<4x8x8xbf16, #tpu.memory_space<vmem>>, vector<1x8x8xbf16>,
      %201 = vector.extract_strided_slice %180 {offsets = [0, 16], sizes = [8, 8], strides = [1, 1]} : vector<8x64xbf16> to vector<8x8xbf16>
      %c2_98 = arith.constant 2 : index
      %202 = arith.index_cast %146 : i32 to index
      %c0_99 = arith.constant 0 : index
      %203 = vector.load %arg18[%c2_98, %202, %c0_99] : memref<4x8x8xbf16, #tpu.memory_space<vmem>>, vector<1x8x8xbf16>
      %204 = vector.shape_cast %203 : vector<1x8x8xbf16> to vector<8x8xbf16>
      %205 = vector.shape_cast %201 : vector<8x8xbf16> to vector<1x8x8xbf16>
      tpu.vector_store %arg18[%c2_98, %202, %c0_99], %205 {strides = array<i32>} : memref<4x8x8xbf16, #tpu.memory_space<vmem>>, vector<1x8x8xbf16>,
      %206 = vector.extract_strided_slice %180 {offsets = [0, 48], sizes = [8, 8], strides = [1, 1]} : vector<8x64xbf16> to vector<8x8xbf16>
      %c2_100 = arith.constant 2 : index
      %207 = arith.index_cast %146 : i32 to index
      %c0_101 = arith.constant 0 : index
      %208 = vector.load %arg19[%c2_100, %207, %c0_101] : memref<4x8x8xbf16, #tpu.memory_space<vmem>>, vector<1x8x8xbf16>
      %209 = vector.shape_cast %208 : vector<1x8x8xbf16> to vector<8x8xbf16>
      %210 = vector.shape_cast %206 : vector<8x8xbf16> to vector<1x8x8xbf16>
      tpu.vector_store %arg19[%c2_100, %207, %c0_101], %210 {strides = array<i32>} : memref<4x8x8xbf16, #tpu.memory_space<vmem>>, vector<1x8x8xbf16>,
      %211 = vector.extract_strided_slice %180 {offsets = [0, 24], sizes = [8, 8], strides = [1, 1]} : vector<8x64xbf16> to vector<8x8xbf16>
      %c3_102 = arith.constant 3 : index
      %212 = arith.index_cast %146 : i32 to index
      %c0_103 = arith.constant 0 : index
      %213 = vector.load %arg18[%c3_102, %212, %c0_103] : memref<4x8x8xbf16, #tpu.memory_space<vmem>>, vector<1x8x8xbf16>
      %214 = vector.shape_cast %213 : vector<1x8x8xbf16> to vector<8x8xbf16>
      %215 = vector.shape_cast %211 : vector<8x8xbf16> to vector<1x8x8xbf16>
      tpu.vector_store %arg18[%c3_102, %212, %c0_103], %215 {strides = array<i32>} : memref<4x8x8xbf16, #tpu.memory_space<vmem>>, vector<1x8x8xbf16>,
      %216 = vector.extract_strided_slice %180 {offsets = [0, 56], sizes = [8, 8], strides = [1, 1]} : vector<8x64xbf16> to vector<8x8xbf16>
      %c3_104 = arith.constant 3 : index
      %217 = arith.index_cast %146 : i32 to index
      %c0_105 = arith.constant 0 : index
      %218 = vector.load %arg19[%c3_104, %217, %c0_105] : memref<4x8x8xbf16, #tpu.memory_space<vmem>>, vector<1x8x8xbf16>
      %219 = vector.shape_cast %218 : vector<1x8x8xbf16> to vector<8x8xbf16>
      %220 = vector.shape_cast %216 : vector<8x8xbf16> to vector<1x8x8xbf16>
      tpu.vector_store %arg19[%c3_104, %217, %c0_105], %220 {strides = array<i32>} : memref<4x8x8xbf16, #tpu.memory_space<vmem>>, vector<1x8x8xbf16>,
      %c1_i32_106 = arith.constant 1 : i32
    } else {
    }
    %c8_i32 = arith.constant 8 : i32
    %3 = arith.muli %arg1, %c8_i32 : i32
    %4 = tpu.assume_multiple %3, 8 : i32
    %c0 = arith.constant 0 : index
    %5 = arith.index_cast %4 : i32 to index
    %c0_1 = arith.constant 0 : index
    %6 = vector.load %arg2[%c0, %5, %c0_1] : memref<1x8x32xf32, #tpu.memory_space<vmem>>, vector<1x8x32xf32>
    %7 = vector.shape_cast %6 : vector<1x8x32xf32> to vector<8x32xf32>
    %c0_2 = arith.constant 0 : index
    %c0_3 = arith.constant 0 : index
    %8 = vector.load %arg3[%c0_2, %c0_3] : memref<1x32xf32, #tpu.memory_space<vmem>>, vector<1x32xf32>
    %c0_4 = arith.constant 0 : index
    %c0_5 = arith.constant 0 : index
    %9 = vector.load %arg4[%c0_4, %c0_5] : memref<1x32xf32, #tpu.memory_space<vmem>>, vector<1x32xf32>
    %cst = arith.constant dense<0.000000e+00> : vector<8xf32>
    %10 = vector.multi_reduction <add>, %7, %cst [1] : vector<8x32xf32> to vector<8xf32>
    %11 = vector.shape_cast %10 : vector<8xf32> to vector<8x1xf32>
    %cst_6 = arith.constant 3.200000e+01 : f32
    %12 = vector.broadcast %cst_6 : f32 to vector<8x1xf32>
    %13 = arith.divf %11, %12 : vector<8x1xf32>
    %14 = vector.broadcast %13 : vector<8x1xf32> to vector<8x32xf32>
    %15 = arith.subf %7, %14 : vector<8x32xf32>
    %16 = arith.mulf %15, %15 : vector<8x32xf32>
    %cst_7 = arith.constant dense<0.000000e+00> : vector<8xf32>
    %17 = vector.multi_reduction <add>, %16, %cst_7 [1] : vector<8x32xf32> to vector<8xf32>
    %18 = vector.shape_cast %17 : vector<8xf32> to vector<8x1xf32>
    %cst_8 = arith.constant 3.200000e+01 : f32
    %19 = vector.broadcast %cst_8 : f32 to vector<8x1xf32>
    %20 = arith.divf %18, %19 : vector<8x1xf32>
    %21 = vector.broadcast %13 : vector<8x1xf32> to vector<8x32xf32>
    %22 = arith.subf %7, %21 : vector<8x32xf32>
    %cst_9 = arith.constant 9.99999974E-6 : f32
    %23 = vector.broadcast %cst_9 : f32 to vector<8x1xf32>
    %24 = arith.addf %20, %23 : vector<8x1xf32>
    %25 = math.rsqrt %24 : vector<8x1xf32>
    %26 = vector.broadcast %25 : vector<8x1xf32> to vector<8x32xf32>
    %27 = arith.mulf %22, %26 : vector<8x32xf32>
    %28 = vector.broadcast %8 : vector<1x32xf32> to vector<8x32xf32>
    %29 = arith.mulf %27, %28 : vector<8x32xf32>
    %30 = vector.broadcast %9 : vector<1x32xf32> to vector<8x32xf32>
    %31 = arith.addf %29, %30 : vector<8x32xf32>
    %32 = arith.truncf %31 : vector<8x32xf32> to vector<8x32xbf16>
    %c0_10 = arith.constant 0 : index
    %c0_11 = arith.constant 0 : index
    %33 = vector.load %arg5[%c0_10, %c0_11] : memref<32x32xbf16, #tpu.memory_space<vmem>>, vector<32x32xbf16>
    %cst_12 = arith.constant dense<0.000000e+00> : vector<8x32xf32>
    %34 = tpu.matmul %32, %33, %cst_12 {dimension_numbers = #tpu.dot_dimension_numbers<[1], [0], [0], [1], [0, 0, 1, 1], [], []>} : vector<8x32xbf16>, vector<32x32xbf16>, vector<8x32xf32> -> vector<8x32xf32>
    %c0_13 = arith.constant 0 : index
    %c0_14 = arith.constant 0 : index
    %35 = vector.load %arg6[%c0_13, %c0_14] : memref<1x32xf32, #tpu.memory_space<vmem>>, vector<1x32xf32>
    %36 = vector.broadcast %35 : vector<1x32xf32> to vector<8x32xf32>
    %37 = arith.addf %34, %36 : vector<8x32xf32>
    %38 = arith.truncf %37 : vector<8x32xf32> to vector<8x32xbf16>
    %39 = vector.extract_strided_slice %38 {offsets = [0, 0], sizes = [8, 8], strides = [1, 1]} : vector<8x32xbf16> to vector<8x8xbf16>
    %c0_15 = arith.constant 0 : index
    %c0_16 = arith.constant 0 : index
    %c0_17 = arith.constant 0 : index
    %40 = vector.load %arg20[%c0_15, %c0_16, %c0_17] : memref<4x8x8xbf16, #tpu.memory_space<vmem>>, vector<1x8x8xbf16>
    %41 = vector.shape_cast %40 : vector<1x8x8xbf16> to vector<8x8xbf16>
    %42 = vector.shape_cast %39 : vector<8x8xbf16> to vector<1x8x8xbf16>
    tpu.vector_store %arg20[%c0_15, %c0_16, %c0_17], %42 {strides = array<i32>} : memref<4x8x8xbf16, #tpu.memory_space<vmem>>, vector<1x8x8xbf16>,
    %43 = vector.extract_strided_slice %38 {offsets = [0, 8], sizes = [8, 8], strides = [1, 1]} : vector<8x32xbf16> to vector<8x8xbf16>
    %c1 = arith.constant 1 : index
    %c0_18 = arith.constant 0 : index
    %c0_19 = arith.constant 0 : index
    %44 = vector.load %arg20[%c1, %c0_18, %c0_19] : memref<4x8x8xbf16, #tpu.memory_space<vmem>>, vector<1x8x8xbf16>
    %45 = vector.shape_cast %44 : vector<1x8x8xbf16> to vector<8x8xbf16>
    %46 = vector.shape_cast %43 : vector<8x8xbf16> to vector<1x8x8xbf16>
    tpu.vector_store %arg20[%c1, %c0_18, %c0_19], %46 {strides = array<i32>} : memref<4x8x8xbf16, #tpu.memory_space<vmem>>, vector<1x8x8xbf16>,
    %47 = vector.extract_strided_slice %38 {offsets = [0, 16], sizes = [8, 8], strides = [1, 1]} : vector<8x32xbf16> to vector<8x8xbf16>
    %c2 = arith.constant 2 : index
    %c0_20 = arith.constant 0 : index
    %c0_21 = arith.constant 0 : index
    %48 = vector.load %arg20[%c2, %c0_20, %c0_21] : memref<4x8x8xbf16, #tpu.memory_space<vmem>>, vector<1x8x8xbf16>
    %49 = vector.shape_cast %48 : vector<1x8x8xbf16> to vector<8x8xbf16>
    %50 = vector.shape_cast %47 : vector<8x8xbf16> to vector<1x8x8xbf16>
    tpu.vector_store %arg20[%c2, %c0_20, %c0_21], %50 {strides = array<i32>} : memref<4x8x8xbf16, #tpu.memory_space<vmem>>, vector<1x8x8xbf16>,
    %51 = vector.extract_strided_slice %38 {offsets = [0, 24], sizes = [8, 8], strides = [1, 1]} : vector<8x32xbf16> to vector<8x8xbf16>
    %c3 = arith.constant 3 : index
    %c0_22 = arith.constant 0 : index
    %c0_23 = arith.constant 0 : index
    %52 = vector.load %arg20[%c3, %c0_22, %c0_23] : memref<4x8x8xbf16, #tpu.memory_space<vmem>>, vector<1x8x8xbf16>
    %53 = vector.shape_cast %52 : vector<1x8x8xbf16> to vector<8x8xbf16>
    %54 = vector.shape_cast %51 : vector<8x8xbf16> to vector<1x8x8xbf16>
    tpu.vector_store %arg20[%c3, %c0_22, %c0_23], %54 {strides = array<i32>} : memref<4x8x8xbf16, #tpu.memory_space<vmem>>, vector<1x8x8xbf16>,
    %c0_24 = arith.constant 0 : index
    %c0_25 = arith.constant 0 : index
    %c0_26 = arith.constant 0 : index
    %55 = vector.load %arg20[%c0_24, %c0_25, %c0_26] : memref<4x8x8xbf16, #tpu.memory_space<vmem>>, vector<4x8x8xbf16>
    %56 = tpu.iota {dimensions = array<i32: 0>} : vector<8x8xi32>
    %57 = tpu.iota {dimensions = array<i32: 1>} : vector<8x8xi32>
    %58 = arith.cmpi sge, %56, %57 : vector<8x8xi32>
    %cst_27 = arith.constant 0.000000e+00 : f32
    %cst_28 = arith.constant -1.000000e+30 : f32
    %59 = vector.broadcast %cst_27 : f32 to vector<8x8xf32>
    %60 = vector.broadcast %cst_28 : f32 to vector<8x8xf32>
    %61 = arith.select %58, %59, %60 : vector<8x8xi1>, vector<8x8xf32>
    %cst_29 = arith.constant 0xFF800000 : f32
    %62 = vector.broadcast %cst_29 : f32 to vector<4x8x1xf32>
    %cst_30 = arith.constant 0.000000e+00 : f32
    %63 = vector.broadcast %cst_30 : f32 to vector<4x8x1xf32>
    %cst_31 = arith.constant 0.000000e+00 : f32
    %64 = vector.broadcast %cst_31 : f32 to vector<4x8x8xf32>
    %c1_i32 = arith.constant 1 : i32
    %65 = arith.addi %arg1, %c1_i32 : i32
    %c0_i32_32 = arith.constant 0 : i32
    %66 = arith.subi %65, %c0_i32_32 : i32
    %67 = arith.addi %c0_i32_32, %66 : i32
    %c1_i32_33 = arith.constant 1 : i32
    %68:3 = scf.for %arg22 = %c0_i32_32 to %67 step %c1_i32_33 iter_args(%arg23 = %62, %arg24 = %63, %arg25 = %64) -> (vector<4x8x1xf32>, vector<4x8x1xf32>, vector<4x8x8xf32>)  : i32 {
      %c8_i32_72 = arith.constant 8 : i32
      %145 = arith.muli %arg22, %c8_i32_72 : i32
      %146 = tpu.assume_multiple %145, 8 : i32
      %c0_73 = arith.constant 0 : index
      %147 = arith.index_cast %146 : i32 to index
      %c0_74 = arith.constant 0 : index
      %148 = vector.load %arg18[%c0_73, %147, %c0_74] : memref<4x8x8xbf16, #tpu.memory_space<vmem>>, vector<4x8x8xbf16>
      %c0_75 = arith.constant 0 : index
      %149 = arith.index_cast %146 : i32 to index
      %c0_76 = arith.constant 0 : index
      %150 = vector.load %arg19[%c0_75, %149, %c0_76] : memref<4x8x8xbf16, #tpu.memory_space<vmem>>, vector<4x8x8xbf16>
      "tpu.trace_start"() <{level = 10 : i32, message = "nqd,nkd->nqk"}> : () -> ()
      %cst_77 = arith.constant dense<0.000000e+00> : vector<4x8x8xf32>
      %151 = tpu.matmul %55, %148, %cst_77 {dimension_numbers = #tpu.dot_dimension_numbers<[2], [2], [1], [1], [0, 0, 0, 1, 1, 1], [0], [0]>} : vector<4x8x8xbf16>, vector<4x8x8xbf16>, vector<4x8x8xf32> -> vector<4x8x8xf32>
      "tpu.trace_stop"() : () -> ()
      %152 = arith.cmpi eq, %arg22, %arg1 : i32
      %153 = arith.extui %152 : i1 to i32
      %154 = arith.sitofp %153 : i32 to f32
      %155 = vector.broadcast %154 : f32 to vector<8x8xf32>
      %156 = arith.mulf %61, %155 : vector<8x8xf32>
      %157 = vector.shape_cast %156 : vector<8x8xf32> to vector<1x8x8xf32>
      %158 = vector.broadcast %157 : vector<1x8x8xf32> to vector<4x8x8xf32>
      %159 = arith.addf %151, %158 : vector<4x8x8xf32>
      %cst_78 = arith.constant dense<0xFF800000> : vector<4x8xf32>
      %160 = vector.multi_reduction <maximumf>, %159, %cst_78 [2] : vector<4x8x8xf32> to vector<4x8xf32>
      %161 = vector.shape_cast %160 : vector<4x8xf32> to vector<4x8x1xf32>
      %162 = arith.maximumf %arg23, %161 : vector<4x8x1xf32>
      %163 = arith.subf %arg23, %162 : vector<4x8x1xf32>
      %164 = math.exp %163 : vector<4x8x1xf32>
      %165 = vector.broadcast %162 : vector<4x8x1xf32> to vector<4x8x8xf32>
      %166 = arith.subf %159, %165 : vector<4x8x8xf32>
      %167 = math.exp %166 : vector<4x8x8xf32>
      %168 = arith.mulf %164, %arg24 : vector<4x8x1xf32>
      %cst_79 = arith.constant dense<0.000000e+00> : vector<4x8xf32>
      %169 = vector.multi_reduction <add>, %167, %cst_79 [2] : vector<4x8x8xf32> to vector<4x8xf32>
      %170 = vector.shape_cast %169 : vector<4x8xf32> to vector<4x8x1xf32>
      %171 = arith.addf %168, %170 : vector<4x8x1xf32>
      %172 = vector.broadcast %164 : vector<4x8x1xf32> to vector<4x8x8xf32>
      %173 = arith.mulf %172, %arg25 : vector<4x8x8xf32>
      %174 = arith.truncf %167 : vector<4x8x8xf32> to vector<4x8x8xbf16>
      "tpu.trace_start"() <{level = 10 : i32, message = "nqk,nkd->nqd"}> : () -> ()
      %cst_80 = arith.constant dense<0.000000e+00> : vector<4x8x8xf32>
      %175 = tpu.matmul %174, %150, %cst_80 {dimension_numbers = #tpu.dot_dimension_numbers<[2], [1], [1], [2], [0, 0, 0, 1, 1, 2], [0], [0]>} : vector<4x8x8xbf16>, vector<4x8x8xbf16>, vector<4x8x8xf32> -> vector<4x8x8xf32>
      "tpu.trace_stop"() : () -> ()
      %176 = arith.addf %173, %175 : vector<4x8x8xf32>
      scf.yield %162, %171, %176 : vector<4x8x1xf32>, vector<4x8x1xf32>, vector<4x8x8xf32>
    }
    %69 = tpu.reciprocal %68#1 {approx = true} : vector<4x8x1xf32> -> vector<4x8x1xf32>
    %70 = vector.broadcast %69 : vector<4x8x1xf32> to vector<4x8x8xf32>
    %71 = arith.mulf %68#2, %70 : vector<4x8x8xf32>
    %72 = arith.truncf %71 : vector<4x8x8xf32> to vector<4x8x8xbf16>
    %73 = vector.extract_strided_slice %72 {offsets = [0, 0, 0], sizes = [1, 8, 8], strides = [1, 1, 1]} : vector<4x8x8xbf16> to vector<1x8x8xbf16>
    %74 = vector.shape_cast %73 : vector<1x8x8xbf16> to vector<8x8xbf16>
    %c0_34 = arith.constant 0 : index
    %c0_35 = arith.constant 0 : index
    %75 = vector.load %arg21[%c0_34, %c0_35] : memref<8x32xbf16, #tpu.memory_space<vmem>>, vector<8x8xbf16>
    tpu.vector_store %arg21[%c0_34, %c0_35], %74 {strides = array<i32>} : memref<8x32xbf16, #tpu.memory_space<vmem>>, vector<8x8xbf16>,
    %76 = vector.extract_strided_slice %72 {offsets = [1, 0, 0], sizes = [1, 8, 8], strides = [1, 1, 1]} : vector<4x8x8xbf16> to vector<1x8x8xbf16>
    %77 = vector.shape_cast %76 : vector<1x8x8xbf16> to vector<8x8xbf16>
    %c0_36 = arith.constant 0 : index
    %c8 = arith.constant 8 : index
    %78 = vector.load %arg21[%c0_36, %c8] : memref<8x32xbf16, #tpu.memory_space<vmem>>, vector<8x8xbf16>
    tpu.vector_store %arg21[%c0_36, %c8], %77 {strides = array<i32>} : memref<8x32xbf16, #tpu.memory_space<vmem>>, vector<8x8xbf16>,
    %79 = vector.extract_strided_slice %72 {offsets = [2, 0, 0], sizes = [1, 8, 8], strides = [1, 1, 1]} : vector<4x8x8xbf16> to vector<1x8x8xbf16>
    %80 = vector.shape_cast %79 : vector<1x8x8xbf16> to vector<8x8xbf16>
    %c0_37 = arith.constant 0 : index
    %c16 = arith.constant 16 : index
    %81 = vector.load %arg21[%c0_37, %c16] : memref<8x32xbf16, #tpu.memory_space<vmem>>, vector<8x8xbf16>
    tpu.vector_store %arg21[%c0_37, %c16], %80 {strides = array<i32>} : memref<8x32xbf16, #tpu.memory_space<vmem>>, vector<8x8xbf16>,
    %82 = vector.extract_strided_slice %72 {offsets = [3, 0, 0], sizes = [1, 8, 8], strides = [1, 1, 1]} : vector<4x8x8xbf16> to vector<1x8x8xbf16>
    %83 = vector.shape_cast %82 : vector<1x8x8xbf16> to vector<8x8xbf16>
    %c0_38 = arith.constant 0 : index
    %c24 = arith.constant 24 : index
    %84 = vector.load %arg21[%c0_38, %c24] : memref<8x32xbf16, #tpu.memory_space<vmem>>, vector<8x8xbf16>
    tpu.vector_store %arg21[%c0_38, %c24], %83 {strides = array<i32>} : memref<8x32xbf16, #tpu.memory_space<vmem>>, vector<8x8xbf16>,
    %c0_39 = arith.constant 0 : index
    %c0_40 = arith.constant 0 : index
    %85 = vector.load %arg21[%c0_39, %c0_40] : memref<8x32xbf16, #tpu.memory_space<vmem>>, vector<8x32xbf16>
    %c0_41 = arith.constant 0 : index
    %c0_42 = arith.constant 0 : index
    %86 = vector.load %arg9[%c0_41, %c0_42] : memref<32x32xbf16, #tpu.memory_space<vmem>>, vector<32x32xbf16>
    %cst_43 = arith.constant dense<0.000000e+00> : vector<8x32xf32>
    %87 = tpu.matmul %85, %86, %cst_43 {dimension_numbers = #tpu.dot_dimension_numbers<[1], [0], [0], [1], [0, 0, 1, 1], [], []>} : vector<8x32xbf16>, vector<32x32xbf16>, vector<8x32xf32> -> vector<8x32xf32>
    %c0_44 = arith.constant 0 : index
    %c0_45 = arith.constant 0 : index
    %88 = vector.load %arg10[%c0_44, %c0_45] : memref<1x32xf32, #tpu.memory_space<vmem>>, vector<1x32xf32>
    %89 = vector.broadcast %88 : vector<1x32xf32> to vector<8x32xf32>
    %90 = arith.addf %87, %89 : vector<8x32xf32>
    %91 = arith.addf %7, %90 : vector<8x32xf32>
    %c0_46 = arith.constant 0 : index
    %c0_47 = arith.constant 0 : index
    %92 = vector.load %arg11[%c0_46, %c0_47] : memref<1x32xf32, #tpu.memory_space<vmem>>, vector<1x32xf32>
    %c0_48 = arith.constant 0 : index
    %c0_49 = arith.constant 0 : index
    %93 = vector.load %arg12[%c0_48, %c0_49] : memref<1x32xf32, #tpu.memory_space<vmem>>, vector<1x32xf32>
    %cst_50 = arith.constant dense<0.000000e+00> : vector<8xf32>
    %94 = vector.multi_reduction <add>, %91, %cst_50 [1] : vector<8x32xf32> to vector<8xf32>
    %95 = vector.shape_cast %94 : vector<8xf32> to vector<8x1xf32>
    %cst_51 = arith.constant 3.200000e+01 : f32
    %96 = vector.broadcast %cst_51 : f32 to vector<8x1xf32>
    %97 = arith.divf %95, %96 : vector<8x1xf32>
    %98 = vector.broadcast %97 : vector<8x1xf32> to vector<8x32xf32>
    %99 = arith.subf %91, %98 : vector<8x32xf32>
    %100 = arith.mulf %99, %99 : vector<8x32xf32>
    %cst_52 = arith.constant dense<0.000000e+00> : vector<8xf32>
    %101 = vector.multi_reduction <add>, %100, %cst_52 [1] : vector<8x32xf32> to vector<8xf32>
    %102 = vector.shape_cast %101 : vector<8xf32> to vector<8x1xf32>
    %cst_53 = arith.constant 3.200000e+01 : f32
    %103 = vector.broadcast %cst_53 : f32 to vector<8x1xf32>
    %104 = arith.divf %102, %103 : vector<8x1xf32>
    %105 = vector.broadcast %97 : vector<8x1xf32> to vector<8x32xf32>
    %106 = arith.subf %91, %105 : vector<8x32xf32>
    %cst_54 = arith.constant 9.99999974E-6 : f32
    %107 = vector.broadcast %cst_54 : f32 to vector<8x1xf32>
    %108 = arith.addf %104, %107 : vector<8x1xf32>
    %109 = math.rsqrt %108 : vector<8x1xf32>
    %110 = vector.broadcast %109 : vector<8x1xf32> to vector<8x32xf32>
    %111 = arith.mulf %106, %110 : vector<8x32xf32>
    %112 = vector.broadcast %92 : vector<1x32xf32> to vector<8x32xf32>
    %113 = arith.mulf %111, %112 : vector<8x32xf32>
    %114 = vector.broadcast %93 : vector<1x32xf32> to vector<8x32xf32>
    %115 = arith.addf %113, %114 : vector<8x32xf32>
    %116 = arith.truncf %115 : vector<8x32xf32> to vector<8x32xbf16>
    %c0_55 = arith.constant 0 : index
    %c0_56 = arith.constant 0 : index
    %117 = vector.load %arg13[%c0_55, %c0_56] : memref<32x128xbf16, #tpu.memory_space<vmem>>, vector<32x128xbf16>
    %cst_57 = arith.constant dense<0.000000e+00> : vector<8x128xf32>
    %118 = tpu.matmul %116, %117, %cst_57 {dimension_numbers = #tpu.dot_dimension_numbers<[1], [0], [0], [1], [0, 0, 1, 1], [], []>} : vector<8x32xbf16>, vector<32x128xbf16>, vector<8x128xf32> -> vector<8x128xf32>
    %c0_58 = arith.constant 0 : index
    %c0_59 = arith.constant 0 : index
    %119 = vector.load %arg14[%c0_58, %c0_59] : memref<1x128xf32, #tpu.memory_space<vmem>>, vector<1x128xf32>
    %120 = vector.broadcast %119 : vector<1x128xf32> to vector<8x128xf32>
    %121 = arith.addf %118, %120 : vector<8x128xf32>
    %cst_60 = arith.constant 5.000000e-01 : f32
    %122 = vector.broadcast %cst_60 : f32 to vector<8x128xf32>
    %123 = arith.mulf %122, %121 : vector<8x128xf32>
    %cst_61 = arith.constant 4.471500e-02 : f32
    %124 = vector.broadcast %cst_61 : f32 to vector<8x128xf32>
    %125 = arith.mulf %124, %121 : vector<8x128xf32>
    %126 = arith.mulf %125, %121 : vector<8x128xf32>
    %127 = arith.mulf %126, %121 : vector<8x128xf32>
    %128 = arith.addf %121, %127 : vector<8x128xf32>
    %cst_62 = arith.constant 0.797884583 : f32
    %129 = vector.broadcast %cst_62 : f32 to vector<8x128xf32>
    %130 = arith.mulf %129, %128 : vector<8x128xf32>
    %131 = math.tanh %130 : vector<8x128xf32>
    %cst_63 = arith.constant 1.000000e+00 : f32
    %132 = vector.broadcast %cst_63 : f32 to vector<8x128xf32>
    %133 = arith.addf %132, %131 : vector<8x128xf32>
    %134 = arith.mulf %123, %133 : vector<8x128xf32>
    %135 = arith.truncf %134 : vector<8x128xf32> to vector<8x128xbf16>
    %c0_64 = arith.constant 0 : index
    %c0_65 = arith.constant 0 : index
    %136 = vector.load %arg15[%c0_64, %c0_65] : memref<128x32xbf16, #tpu.memory_space<vmem>>, vector<128x32xbf16>
    %cst_66 = arith.constant dense<0.000000e+00> : vector<8x32xf32>
    %137 = tpu.matmul %135, %136, %cst_66 {dimension_numbers = #tpu.dot_dimension_numbers<[1], [0], [0], [1], [0, 0, 1, 1], [], []>} : vector<8x128xbf16>, vector<128x32xbf16>, vector<8x32xf32> -> vector<8x32xf32>
    %c0_67 = arith.constant 0 : index
    %c0_68 = arith.constant 0 : index
    %138 = vector.load %arg16[%c0_67, %c0_68] : memref<1x32xf32, #tpu.memory_space<vmem>>, vector<1x32xf32>
    %139 = vector.broadcast %138 : vector<1x32xf32> to vector<8x32xf32>
    %140 = arith.addf %137, %139 : vector<8x32xf32>
    %141 = arith.addf %91, %140 : vector<8x32xf32>
    %c0_69 = arith.constant 0 : index
    %c0_70 = arith.constant 0 : index
    %c0_71 = arith.constant 0 : index
    %142 = vector.load %arg17[%c0_69, %c0_70, %c0_71] : memref<1x8x32xf32, #tpu.memory_space<vmem>>, vector<1x8x32xf32>
    %143 = vector.shape_cast %142 : vector<1x8x32xf32> to vector<8x32xf32>
    %144 = vector.shape_cast %141 : vector<8x32xf32> to vector<1x8x32xf32>
    tpu.vector_store %arg17[%c0_69, %c0_70, %c0_71], %144 {strides = array<i32>} : memref<1x8x32xf32, #tpu.memory_space<vmem>>, vector<1x8x32xf32>,
    return
  }
  func.func @transform_0(%arg0: i32, %arg1: i32) -> (i32, i32, i32) {
    %c0_i32 = arith.constant 0 : i32
    %c0_i32_0 = arith.constant 0 : i32
    %c0_i32_1 = arith.constant 0 : i32
    return %arg0, %c0_i32, %c0_i32_0 : i32, i32, i32
  }
  func.func @transform_1(%arg0: i32, %arg1: i32) -> (i32, i32) {
    %c0_i32 = arith.constant 0 : i32
    %c0_i32_0 = arith.constant 0 : i32
    %c0_i32_1 = arith.constant 0 : i32
    return %c0_i32, %c0_i32_0 : i32, i32
  }
  func.func @transform_2(%arg0: i32, %arg1: i32) -> (i32, i32) {
    %c0_i32 = arith.constant 0 : i32
    %c0_i32_0 = arith.constant 0 : i32
    %c0_i32_1 = arith.constant 0 : i32
    return %c0_i32, %c0_i32_0 : i32, i32
  }
  func.func @transform_3(%arg0: i32, %arg1: i32) -> (i32, i32) {
    %c0_i32 = arith.constant 0 : i32
    %c0_i32_0 = arith.constant 0 : i32
    %c0_i32_1 = arith.constant 0 : i32
    return %c0_i32, %c0_i32_0 : i32, i32
  }
  func.func @transform_4(%arg0: i32, %arg1: i32) -> (i32, i32) {
    %c0_i32 = arith.constant 0 : i32
    %c0_i32_0 = arith.constant 0 : i32
    %c0_i32_1 = arith.constant 0 : i32
    return %c0_i32, %c0_i32_0 : i32, i32
  }
  func.func @transform_5(%arg0: i32, %arg1: i32) -> (i32, i32) {
    %c0_i32 = arith.constant 0 : i32
    %c0_i32_0 = arith.constant 0 : i32
    %c0_i32_1 = arith.constant 0 : i32
    return %c0_i32, %c0_i32_0 : i32, i32
  }
  func.func @transform_6(%arg0: i32, %arg1: i32) -> (i32, i32) {
    %c0_i32 = arith.constant 0 : i32
    %c0_i32_0 = arith.constant 0 : i32
    %c0_i32_1 = arith.constant 0 : i32
    return %c0_i32, %c0_i32_0 : i32, i32
  }
  func.func @transform_7(%arg0: i32, %arg1: i32) -> (i32, i32) {
    %c0_i32 = arith.constant 0 : i32
    %c0_i32_0 = arith.constant 0 : i32
    %c0_i32_1 = arith.constant 0 : i32
    return %c0_i32, %c0_i32_0 : i32, i32
  }
  func.func @transform_8(%arg0: i32, %arg1: i32) -> (i32, i32) {
    %c0_i32 = arith.constant 0 : i32
    %c0_i32_0 = arith.constant 0 : i32
    %c0_i32_1 = arith.constant 0 : i32
    return %c0_i32, %c0_i32_0 : i32, i32
  }
  func.func @transform_9(%arg0: i32, %arg1: i32) -> (i32, i32) {
    %c0_i32 = arith.constant 0 : i32
    %c0_i32_0 = arith.constant 0 : i32
    %c0_i32_1 = arith.constant 0 : i32
    return %c0_i32, %c0_i32_0 : i32, i32
  }
  func.func @transform_10(%arg0: i32, %arg1: i32) -> (i32, i32) {
    %c0_i32 = arith.constant 0 : i32
    %c0_i32_0 = arith.constant 0 : i32
    %c0_i32_1 = arith.constant 0 : i32
    return %c0_i32, %c0_i32_0 : i32, i32
  }
  func.func @transform_11(%arg0: i32, %arg1: i32) -> (i32, i32) {
    %c0_i32 = arith.constant 0 : i32
    %c0_i32_0 = arith.constant 0 : i32
    %c0_i32_1 = arith.constant 0 : i32
    return %c0_i32, %c0_i32_0 : i32, i32
  }
  func.func @transform_12(%arg0: i32, %arg1: i32) -> (i32, i32) {
    %c0_i32 = arith.constant 0 : i32
    %c0_i32_0 = arith.constant 0 : i32
    %c0_i32_1 = arith.constant 0 : i32
    return %c0_i32, %c0_i32_0 : i32, i32
  }
  func.func @transform_13(%arg0: i32, %arg1: i32) -> (i32, i32) {
    %c0_i32 = arith.constant 0 : i32
    %c0_i32_0 = arith.constant 0 : i32
    %c0_i32_1 = arith.constant 0 : i32
    return %c0_i32, %c0_i32_0 : i32, i32
  }
  func.func @transform_14(%arg0: i32, %arg1: i32) -> (i32, i32) {
    %c0_i32 = arith.constant 0 : i32
    %c0_i32_0 = arith.constant 0 : i32
    %c0_i32_1 = arith.constant 0 : i32
    return %c0_i32, %c0_i32_0 : i32, i32
  }
  func.func @transform_15(%arg0: i32, %arg1: i32) -> (i32, i32, i32) {
    %c0_i32 = arith.constant 0 : i32
    %c0_i32_0 = arith.constant 0 : i32
    return %arg0, %arg1, %c0_i32 : i32, i32, i32
  }
}

</mosaic_0001>

<bundles_post_ra>
// kernel: tpu_custom_call.1
= control target key start
LH: loop header
LB: loop body
LE: loop exit
PB: predicated region body
PF: predicated region fallthrough
CT: control target
= control target key end

     0   :  { %s2892_s0 = inlined_call_operand.vmem [shape: f32[2,8,32], index: 0, kind: input, shape index: {}]   ;;  %s2893_s1 = inlined_call_operand.vmem [shape: f32[1,32], index: 1, kind: input, shape index: {}]   ;;  %s2894_s2 = inlined_call_operand.vmem [shape: f32[1,32], index: 2, kind: input, shape index: {}]   ;;  %s2895_s3 = inlined_call_operand.vmem [shape: bf16[32,32], index: 3, kind: input, shape index: {}]   ;;  %s2896_s4 = inlined_call_operand.vmem [shape: f32[1,32], index: 4, kind: input, shape index: {}]   ;;  %s2897_s5 = inlined_call_operand.vmem [shape: bf16[32,64], index: 5, kind: input, shape index: {}]   ;;  %s2898_s6 = inlined_call_operand.vmem [shape: f32[1,64], index: 6, kind: input, shape index: {}]   ;;  %s2899_s7 = inlined_call_operand.vmem [shape: bf16[32,32], index: 7, kind: input, shape index: {}]   ;;  %s2900_s8 = inlined_call_operand.vmem [shape: f32[1,32], index: 8, kind: input, shape index: {}]   ;;  %s2901_s9 = inlined_call_operand.vmem [shape: f32[1,32], index: 9, kind: input, shape index: {}]   ;;  %s2902_s10 = inlined_call_operand.vmem [shape: f32[1,32], index: 10, kind: input, shape index: {}]   ;;  %s2903_s11 = inlined_call_operand.vmem [shape: bf16[32,128], index: 11, kind: input, shape index: {}]   ;;  %s2904_s12 = inlined_call_operand.vmem [shape: f32[1,128], index: 12, kind: input, shape index: {}]   ;;  %s2905_s13 = inlined_call_operand.vmem [shape: bf16[128,32], index: 13, kind: input, shape index: {}]   ;;  %s2906_s14 = inlined_call_operand.vmem [shape: f32[1,32], index: 14, kind: input, shape index: {}]   ;;  %s2907_s15 = inlined_call_operand.hbm [shape: f32[2,8,32], index: 15, kind: output, shape index: {}]  }
   0x1   :  { %2911 = sst [smem:[#allocation11_spill]] %s2892_s0 }
   0x2   :  { %2912 = sst [smem:[#allocation12_spill]] %s2893_s1 }
   0x3   :  { %2913 = sst [smem:[#allocation13_spill]] %s2894_s2 }
   0x4   :  { %2914 = sst [smem:[#allocation14_spill]] %s2895_s3 }
   0x5   :  { %20 = vsyncpa [#allocation7], 0 }
   0x6   :  { %22 = vsyncpa [#allocation7 + $0x1], 0  ;;  %s2432_s18 = smov 0   ;;  %s2434_s19 = smov 0  }
   0x7   :  { %s2436_s20 = smov 0   ;;  %s2438_s21 = smov 0  }
   0x8   :  { %s2440_s22 = smov 0   ;;  %s2442_s23 = smov 0  }
   0x9 LB: > { %2915 = sst [smem:[#allocation9_spill]] %s2262_s18  ;;  %s1730_s24 = sadd.s32 4294967295, %s2282_s23   ;;  %s2282_s23 = sphi %s2442_s23, %s28_s23   ;;  %s2278_s22 = sphi %s2440_s22, %s2945_s22   ;;  %s2274_s21 = sphi %s2438_s21, %s2944_s21   ;;  %s2270_s20 = sphi %s2436_s20, %s2943_s20   ;;  %s2266_s19 = sphi %s2434_s19, %s2942_s19   ;;  %s2262_s18 = sphi %s2432_s18, %s2941_s18  }
   0xa   : > { %s1731_s25 = sadd.s32 4294967294, %s2282_s23   ;;  %s40_s26 = sadd.s32 1, %s2278_s22 }
   0xb   : > { %s369_s27 = sadd.s32 1, %s2270_s20  ;;  %p42_p0 = scmp.ge.s32.totalorder %s40_s26, 2 }
   0xc   : > { %p379_p1 = scmp.ne.s32.totalorder %s2270_s20, %s2266_s19  ;;  %p380_p2 = scmp.eq.s32.totalorder %s1730_s24, 1 }
   0xd   : > { %p385_p3 = scmp.ne.s32.totalorder %s2266_s19, %s2262_s18  ;;  %s2947_s26 = smov (%p42_p0, %s40_s26), 0 }
   0xe   : > { %2916 = sst [smem:[#allocation10_spill]] %s2947_s26  ;;  %p2472_p4 = por %p380_p2, %p379_p1 }
   0xf   : > { %p386_p5 = scmp.eq.s32.totalorder %s1731_s25, 1  ;;  %s364_s29 = ssub.s32 %s2278_s22, %s2947_s26 }
  0x10   : > { %p1734_p6 = scmp.ge.s32.totalorder %s2282_s23, 1  ;;  %p367_p7 = scmp.eq.s32.totalorder %s364_s29, 0 }
  0x11   : > { %p2479_p8 = por %p386_p5, %p385_p3  ;;  %p453_p9 = scmp.lt.s32.totalorder %s2282_s23, 3 }
  0x12   : > { %s2485_s16 = scalar_select %p367_p7, %s2270_s20, %s369_s27  }
  0x13   : > { %p454_p10 = pnand %p1734_p6, %p453_p9 }
  0x14   : > { %p500_p11 = scmp.lt.s32.totalorder (!%p454_p10), %s2274_s21, 1  ;;  %vm512_vm0 = vcmask (!%p454_p10), 261120   ;;  %s2919_s0 = sld [smem:[#allocation11_spill]] (!%p454_p10)  ;;  %v2105_v13 = vld [vmem:[%s2897_s5] sm:$0xff] (!%p454_p10)   ;;  %v2336_v14 = vmov (!%p454_p10), 0.0   ;;  %vm2337_vm1 = vmmov (!%p454_p10), 0   ;;  %v783_v49 = vlaneseq (!%p454_p10) }
  0x15   : > { %457 = sbr.rel (%p454_p10) target bundleno = 2446 (0x98e), region = 80  ;;  %s2920_s3 = sld [smem:[#allocation14_spill]] (!%p454_p10)  ;;  %1838 = vmatprep.subr.bf16.mxu1 (!%p454_p10), %v2336_v14  ;;  %1830 = vmatprep.subr.bf16.mxu0 (!%p454_p10), %v2336_v14  ;;  %v2107_v16 = vld [vmem:[%s2897_s5 + $0x8] sm:$0xff] (!%p454_p10)   ;;  %v1746_v35 = vld [vmem:[%s2896_s4] ss:$0 sm:$0xff] (!%p454_p10)  ;;  %vm609_vm2 = vcmask (!%p454_p10), 60416  }
  0x16   : > { %s2910_s27 = sand.u32 (!%p454_p10), 1, %s2266_s19   ;;  %1831 = vmatpush3.bf16.msra.mxu0 (!%p454_p10), %v2105_v13  ;;  %1842 = vmatprep.mubr.msk.bf16.mxu1 (!%p454_p10), %vm2337_vm1, %v2336_v14  ;;  %s2921_s1 = sld [smem:[#allocation12_spill]] (!%p454_p10)  ;;  %v1739_v40 = vld [vmem:[%s2898_s6] ss:$0 sm:$0xff] (!%p454_p10)  ;;  %v784_v50 = vshrl.u32 (!%p454_p10), %v783_v49, 7  ;;  %v786_v51 = vand.u32 (!%p454_p10), 127, %v783_v49 }
  0x17   : > { %1832 = vmatprep.subr.bf16.mxu0 (!%p454_p10), %v2336_v14  ;;  %1834 = vmatprep.mubr.msk.bf16.mxu0 (!%p454_p10), %vm2337_vm1, %v2336_v14  ;;  %s2922_s2 = sld [smem:[#allocation13_spill]] (!%p454_p10)  ;;  %s2339_s25 = smov (!%p454_p10), 112   ;;  %v2341_v53 = vmov (!%p454_p10), -1e+30   ;;  %v2578_v13 = vmov (!%p454_p10), -inf  }
  0x18   : > { %s2340_s18 = smov (!%p454_p10), 104   ;;  %vm787_vm3 = vcmp.ge.s32.totalorder (!%p454_p10), %v784_v50, %v786_v51  ;;  %s2344_s29 = smov (!%p454_p10), 80  }
  0x19   : > { %v2543_v54 = vsel (!%p454_p10), %vm787_vm3, 0.0, %v2341_v53 }
  0x1a   : > { %1833 = vmatpush3.bf16.msra.mxu0 (!%p454_p10), %v2107_v16  ;;  %v2582_v16 = vmov (!%p454_p10), -inf  }
  0x1b   : > { %v2104_v12 = vld [vmem:[%s2920_s3] sm:$0xff] (!%p454_p10)   ;;  %v2106_v15 = vld [vmem:[%s2920_s3 + $0x8] sm:$0xff] (!%p454_p10)  }
  0x1c   : > { %s501_s17 = scalar_select %p500_p11, %s2274_s21, 1  ;;  %1839 = vmatpush3.bf16.msra.mxu1 %v2104_v12  ;;  %v1744_v24 = vld [vmem:[%s2921_s1] ss:$0 sm:$0xff]  ;;  %v2576_v12 = vmov 0.0  }
  0x1d   : > { %1840 = vmatprep.subr.bf16.mxu1 %v2336_v14  ;;  %v1745_v26 = vld [vmem:[%s2922_s2] ss:$0 sm:$0xff] }
  0x1e   : > { %s1736_s24 = sshll.u32 %s501_s17, 3  ;;  %s2338_s17 = smov 120  }
  0x1f   : > { %s503_s26 = scalar_lea.vmem %s2919_s0, %s1736_s24  ;;  %s2510_s24 = sshll.u32 %s2910_s27, 3 }
  0x20   : > { %v2492_v0 = vld [vmem:[%s503_s26] sm:$0xff]  ;;  %1841 = vmatpush3.bf16.msra.mxu1 %v2106_v15  ;;  %s2342_s26 = smov 96   ;;  %s2343_s0 = smov 88   ;;  %v2580_v15 = vmov -inf  }
  0x21   : > { %v663_v1 = vsel %vm512_vm0, %v2492_v0, 0.0  ;;  %s2345_s27 = smov 72  }
  0x22   : > { %664 = vadd.xlane.f32.xlu0 %v663_v1 }
  0x26   : > { %514 = vadd.xlane.f32.xlu0 %v663_v1 }
  0xaf   : > { %v665_v2 = vpop.xlane.xlu0 %664 }
  0xb0   : > { %v667_v3 = vmul.f32 0.03125, %v665_v2 }
  0xb2   : > { %v668_v4 = vsub.f32 %v2492_v0, %v667_v3 }
  0xb3   : > { %v515_v5 = vpop.xlane.xlu0 %514 }
  0xb4   : > { %v517_v6 = vmul.f32 0.03125, %v515_v5  ;;  %v669_v7 = vmul.f32 %v668_v4, %v668_v4  ;;  %v2562_v5 = vmov 0.0  }
  0xb6   : > { %v518_v8 = vsub.f32 %v2492_v0, %v517_v6  ;;  %v670_v9 = vsel %vm512_vm0, %v669_v7, 0.0  ;;  %v2564_v6 = vmov 0.0   ;;  %v2566_v7 = vmov 0.0  }
  0xb7   : > { %671 = vadd.xlane.f32.xlu1 %v670_v9  ;;  %v2570_v9 = vmov 0.0  }
  0xb8   : > { %v519_v10 = vmul.f32 %v518_v8, %v518_v8 }
  0xba   : > { %v520_v11 = vsel %vm512_vm0, %v519_v10, 0.0  ;;  %v2572_v10 = vmov 0.0  }
  0xbb   : > { %521 = vadd.xlane.f32.xlu1 %v520_v11  ;;  %v2574_v11 = vmov 0.0  }
 0x144   : > { %v672_v17 = vpop.xlane.xlu1 %671 }
 0x145   : > { %v673_v18 = vmul.f32 0.03125, %v672_v17  ;;  %v2584_v17 = vmov -inf  }
 0x147   : > { %v674_v19 = vadd.f32 1e-05, %v673_v18 }
 0x148   : > { %v522_v20 = vpop.xlane.xlu1 %521 }
 0x149   : > { %2108 = vrsqrt.f32 %v674_v19  ;;  %v523_v21 = vmul.f32 0.03125, %v522_v20 }
 0x14b   : > { %v524_v22 = vadd.f32 1e-05, %v523_v21 }
 0x14d   : > { %2110 = vrsqrt.f32 %v524_v22 }
 0x153   : > { %v2109_v23 = vpop.eup %2108 }
 0x154   : > { %v676_v25 = vmul.f32 %v2109_v23, %v668_v4 }
 0x156   : > { %v683_v27 = vmul.f32 %v1744_v24, %v676_v25 }
 0x157   : > { %v2111_v28 = vpop.eup %2110 }
 0x158   : > { %v690_v29 = vadd.f32 %v1745_v26, %v683_v27  ;;  %v526_v30 = vmul.f32 %v2111_v28, %v518_v8  ;;  %v2568_v8 = vmov 0.0  }
 0x15a   : > { %v691_v31 = vpack.c.bf16 %v690_v29, %v690_v29  ;;  %v533_v32 = vmul.f32 %v1744_v24, %v526_v30 }
 0x15c   : > { %1843 = vmatmul.mubr.msk.bf16.vlgmr.msra.gmra.mrb[0].mxu1 %vm512_vm0, %v691_v31  ;;  %v540_v33 = vadd.f32 %v1745_v26, %v533_v32 }
 0x15e   : > { %v541_v34 = vpack.c.bf16 %v540_v33, %v540_v33 }
 0x160   : > { %1835 = vmatmul.mubr.msk.bf16.vlgmr.msra.gmra.mrb[0].mxu0 %vm512_vm0, %v541_v34 }
 0x22f   : > { %v752_v36 = vpop.f32.mrb[0].mxu1 }
 0x230   : > { %v753_v37 = vadd.f32 %v1746_v35, %v752_v36  ;;  %v1844_v38 = vpop.f32.mrb[1].mxu1 }
 0x231   : > { %v755_v39 = vpop.f32.mrb[2].mxu1 }
 0x232   : > { %v758_v41 = vpack.c.bf16 %v753_v37, %v753_v37  ;;  %v1845_v42 = vpop.f32.mrb[3].mxu1 }
 0x233   : > { %v602_v43 = vpop.f32.mrb[0].mxu0 }
 0x234   : > { %760 = vst.msk [vmem:[#allocation4] sm:$0xf] %vm609_vm2, %v758_v41  ;;  %v603_v44 = vadd.f32 %v1739_v40, %v602_v43  ;;  %764 = vrot.lane.b32.xlu0 %v758_v41, %s2338_s17  ;;  %769 = vrot.lane.b32.xlu1 %v758_v41, %s2339_s25  ;;  %v1836_v45 = vpop.f32.mrb[1].mxu0 }
 0x235   : > { %v605_v46 = vpop.f32.mrb[2].mxu0 }
 0x236   : > { %v608_v47 = vpack.c.bf16 %v603_v44, %v603_v44  ;;  %v1837_v48 = vpop.f32.mrb[3].mxu0 }
 0x238   : > { %610 = vst.msk [vmem:[#allocation2] sm:$0xf] %vm609_vm2, %v608_v47  ;;  %774 = vrot.lane.b32.xlu1 %v758_v41, %s2340_s18  ;;  %618 = vrot.lane.b32.xlu0 %v608_v47, %s2338_s17  ;;  %s2586_s17 = smov 0  }
 0x23b   : > { %v2541_v52 = vld [vmem:[#allocation4] sm:$0xf] }
 0x23c   : > { %631 = vrot.lane.b32.xlu0 %v608_v47, %s2339_s25  ;;  %614 = vrot.lane.b32.xlu1 %v608_v47, %s2342_s26 }
 0x240   : > { %644 = vrot.lane.b32.xlu0 %v608_v47, %s2340_s18  ;;  %625 = vrot.lane.b32.xlu1 %v608_v47, %s2343_s0 }
 0x244   : > { %638 = vrot.lane.b32.xlu1 %v608_v47, %s2344_s29 }
 0x248   : > { %651 = vrot.lane.b32.xlu1 %v608_v47, %s2345_s27 }
 0x2a6   : > { %v770_v55 = vpop.permute.xlu1 %769  ;;  %v765_v56 = vpop.permute.xlu0 %764 }
 0x2a7   : > { %773 = vst.msk [vmem:[#allocation4 + $0x8] sm:$0xf] %vm609_vm2, %v770_v55  ;;  %768 = vst.msk [vmem:[#allocation4 + $0x4] sm:$0xf] %vm609_vm2, %v765_v56 }
 0x2aa   : > { %v775_v57 = vpop.permute.xlu1 %774  ;;  %v619_v58 = vpop.permute.xlu0 %618 }
 0x2ab   : > { %778 = vst.msk [vmem:[#allocation4 + $0xc] sm:$0xf] %vm609_vm2, %v775_v57  ;;  %624 = vst.msk [vmem:[#allocation2 + $0x4] sm:$0xf] %vm609_vm2, %v619_v58 }
 0x2ae   : > { %v2549_v59 = vld [vmem:[#allocation4 + $0x8] sm:$0xf]  ;;  %v2551_v60 = vld [vmem:[#allocation4 + $0x4] sm:$0xf]  ;;  %v615_v61 = vpop.permute.xlu1 %614  ;;  %v632_v62 = vpop.permute.xlu0 %631 }
 0x2af   : > { %617 = vst.msk [vmem:[#allocation3] sm:$0xf] %vm609_vm2, %v615_v61  ;;  %637 = vst.msk [vmem:[#allocation2 + $0x8] sm:$0xf] %vm609_vm2, %v632_v62 }
 0x2b2   : > { %v2555_v63 = vld [vmem:[#allocation4 + $0xc] sm:$0xf]  ;;  %v626_v1 = vpop.permute.xlu1 %625  ;;  %v645_v2 = vpop.permute.xlu0 %644 }
 0x2b3   : > { %630 = vst.msk [vmem:[#allocation3 + $0x4] sm:$0xf] %vm609_vm2, %v626_v1  ;;  %650 = vst.msk [vmem:[#allocation2 + $0xc] sm:$0xf] %vm609_vm2, %v645_v2 }
 0x2b6   : > { %v639_v3 = vpop.permute.xlu1 %638 }
 0x2b7   : > { %643 = vst.msk [vmem:[#allocation3 + $0x8] sm:$0xf] %vm609_vm2, %v639_v3 }
 0x2ba   : > { %v652_v4 = vpop.permute.xlu1 %651 }
 0x2bb   : > { %656 = vst.msk [vmem:[#allocation3 + $0xc] sm:$0xf] %vm609_vm2, %v652_v4 }
 0x2bc LB: >> { %v2346_v18 = vmov 0.0   ;;  %s1751_s25 = sshll.u32 %s2334_s17, 3  ;;  %vm2347_vm4 = vmmov 0   ;;  %vm828_vm5 = vcmask 64512   ;;  %p823_p12 = scmp.eq.s32.totalorder %s2334_s17, 0  ;;  %vm1084_vm6 = vcmask 1043456   ;;  %s2334_s17 = sphi %s2586_s17, %s793_s17   ;;  %v2330_v17 = vphi %v2584_v17, %v2935_v17   ;;  %v2326_v16 = vphi %v2582_v16, %v2934_v16   ;;  %v2322_v15 = vphi %v2580_v15, %v2933_v15   ;;  %v2318_v13 = vphi %v2578_v13, %v2932_v13   ;;  %v2314_v12 = vphi %v2576_v12, %v2931_v12   ;;  %v2310_v11 = vphi %v2574_v11, %v2930_v11   ;;  %v2306_v10 = vphi %v2572_v10, %v2929_v10   ;;  %v2302_v9 = vphi %v2570_v9, %v2928_v9   ;;  %v2298_v8 = vphi %v2568_v8, %v2927_v8   ;;  %v2294_v7 = vphi %v2566_v7, %v2926_v7   ;;  %v2290_v6 = vphi %v2564_v6, %v2925_v6   ;;  %v2286_v5 = vphi %v2562_v5, %v2924_v5  }
 0x2bd   : >> { %1846 = vmatprep.subr.bf16.mxu0 %v2346_v18  ;;  %1852 = vmatprep.subr.bf16.mxu1 %v2346_v18  ;;  %s2634_s18 = sshra.s32 %s1751_s25, 3  ;;  %s793_s17 = sadd.s32 1, %s2334_s17  }
 0x2be   : >> { %1848 = vmatprep.mubr.msk.bf16.mxu0 %vm2347_vm4, %v2346_v18  ;;  %1854 = vmatprep.mubr.msk.bf16.mxu1 %vm2347_vm4, %v2346_v18  ;;  %s1752_s26 = sshll.u32 %s2634_s18, 2  ;;  %p2718_p13 = scmp.ge.s32.totalorder %s793_s17, 1 }
 0x2bf   : >> { %s812_s0 = scalar_lea.vmem [#allocation2], %s1752_s26  ;;  %s2349_s18 = smov (%p2718_p13), 24   ;;  %vm1289_vm7 = vcmask (%p2718_p13), 126016   ;;  %vm1297_vm8 = vcmask (%p2718_p13), 191616   ;;  %vm1305_vm9 = vcmask (%p2718_p13), 257216  }
 0x2c0   : >> { %v813_v19 = vld [vmem:[%s812_s0] sm:$0xf]  ;;  %v814_v20 = vld [vmem:[%s812_s0 + $0x4] sm:$0xf]  ;;  %v815_v23 = vld [vmem:[%s812_s0 + $0x8] sm:$0xf] }
 0x2c1   : >> { %v833_v21 = vsel %vm828_vm5, %v813_v19, 0  ;;  %v879_v22 = vsel %vm828_vm5, %v814_v20, 0  ;;  %v816_v24 = vld [vmem:[%s812_s0 + $0xc] sm:$0xf]  ;;  %v925_v25 = vsel %vm828_vm5, %v815_v23, 0  ;;  %s818_s0 = scalar_lea.vmem [#allocation3], %s1752_s26 }
 0x2c2   : >> { %1847 = vmatpush3.bf16.xpose.msra.mxu0 %v833_v21  ;;  %1853 = vmatpush3.bf16.xpose.msra.mxu1 %v879_v22  ;;  %v971_v26 = vsel %vm828_vm5, %v816_v24, 0  ;;  %s824_s29 = scalar_select %p823_p12, 1, 0  ;;  %v819_v55 = vld [vmem:[%s818_s0] sm:$0xf] }
 0x2c3   : >> { %1858 = vmatprep.subr.bf16.mxu0 %v2346_v18  ;;  %1864 = vmatprep.subr.bf16.mxu1 %v2346_v18  ;;  %v1086_v56 = vsel %vm1084_vm6, %v819_v55, 0  ;;  %v820_v57 = vld [vmem:[%s818_s0 + $0x4] sm:$0xf]  ;;  %v821_v61 = vld [vmem:[%s818_s0 + $0x8] sm:$0xf]  ;;  %s2350_s26 = smov (%p2718_p13), 16  }
 0x2c4   : >> { %s825_s25 = scvt.s32.f32 %s824_s29  ;;  %v1132_v58 = vsel %vm1084_vm6, %v820_v57, 0  ;;  %v1178_v62 = vsel %vm1084_vm6, %v821_v61, 0  ;;  %v822_v1 = vld [vmem:[%s818_s0 + $0xc] sm:$0xf]  ;;  %s2348_s0 = smov (%p2718_p13), 8  }
 0x2c5   : >> { %v1224_v2 = vsel %vm1084_vm6, %v822_v1, 0  ;;  %s1785_s27 = sshll.u32 (%p2718_p13), %s2274_s21, 7  ;;  %s2938_s21 = sand.u32 (%p2718_p13), 1, %s2266_s19  }
 0x2c6   : >> { %v826_v27 = vstv %s825_s25  ;;  %s2936_s25 = scalar_lea.vmem (%p2718_p13), [#allocation6], %s2510_s24  ;;  %s1595_s17 = scalar_lea.sflag (%p2718_p13), [#allocation7], %s2938_s21 }
 0x2c7   : >> { %v827_v28 = vmul.f32 %v826_v27, %v2543_v54  ;;  %s2937_s29 = smov (%p2718_p13), %s2936_s25  ;;  %s2351_s2 = smov (%p2718_p13), [#allocation6]  }
 0x2c8   : > { %s2156_s3 = sshll.u32 (%p2718_p13), %s2351_s2, 4  ;;  %s2157_s3 = int_to_ptr.vmem [resolvable:$false] %s2156_s3 }
 0x2c9   : >> { %1849 = vmatmul.mubr.msk.bf16.vlgmr.msra.gmra.mrb[0].mxu0 %vm828_vm5, %v2541_v52  ;;  %1855 = vmatmul.mubr.msk.bf16.vlgmr.msra.gmra.mrb[0].mxu1 %vm828_vm5, %v2551_v60  ;;  %v2129_v52 = vld [vmem:[%s2899_s7 + $0x8] sm:$0xff] (%p2718_p13)  }
 0x2ca   : >> { %1859 = vmatpush3.bf16.xpose.msra.mxu0 %v925_v25  ;;  %1865 = vmatpush3.bf16.xpose.msra.mxu1 %v971_v26 }
 0x2cb   : >> { %1860 = vmatprep.mubr.msk.bf16.mxu0 %vm2347_vm4, %v2346_v18  ;;  %1866 = vmatprep.mubr.msk.bf16.mxu1 %vm2347_vm4, %v2346_v18 }
 0x2cc   : >> { %1870 = vmatprep.subr.bf16.mxu0 %v2346_v18  ;;  %1876 = vmatprep.subr.bf16.mxu1 %v2346_v18 }
 0x2d1   : >> { %1861 = vmatmul.mubr.msk.bf16.vlgmr.msra.gmra.mrb[4].mxu0 %vm828_vm5, %v2549_v59  ;;  %1867 = vmatmul.mubr.msk.bf16.vlgmr.msra.gmra.mrb[4].mxu1 %vm828_vm5, %v2555_v63 }
 0x2d2   : >> { %1872 = vmatprep.mubr.msk.bf16.mxu0 %vm2347_vm4, %v2346_v18  ;;  %1878 = vmatprep.mubr.msk.bf16.mxu1 %vm2347_vm4, %v2346_v18 }
 0x2d3   : >> { %1871 = vmatpush3.bf16.msra.mxu0 %v1086_v56  ;;  %1877 = vmatpush3.bf16.msra.mxu1 %v1132_v58 }
 0x2d4   : >> { %1882 = vmatprep.subr.bf16.mxu0 %v2346_v18  ;;  %1888 = vmatprep.subr.bf16.mxu1 %v2346_v18 }
 0x39c   : >> { %v869_v29 = vpop.f32.mrb[0].mxu0  ;;  %v915_v30 = vpop.f32.mrb[0].mxu1 }
 0x39d   : >> { %v870_v31 = vadd.f32 %v869_v29, %v827_v28  ;;  %v1850_v32 = vpop.f32.mrb[1].mxu0  ;;  %v916_v33 = vadd.f32 %v915_v30, %v827_v28  ;;  %v1856_v34 = vpop.f32.mrb[1].mxu1 }
 0x39e   : >> { %v872_v35 = vpop.f32.mrb[2].mxu0  ;;  %v918_v36 = vpop.f32.mrb[2].mxu1 }
 0x39f   : >> { %v1851_v37 = vpop.f32.mrb[3].mxu0  ;;  %v1013_v38 = vsel %vm828_vm5, %v870_v31, -inf  ;;  %v1857_v39 = vpop.f32.mrb[3].mxu1  ;;  %v1016_v40 = vsel %vm828_vm5, %v916_v33, -inf }
 0x3a0   : >> { %1014 = vmax.xlane.f32.xlu0 %v1013_v38 }
 0x3a4   : >> { %1017 = vmax.xlane.f32.xlu0 %v1016_v40  ;;  %v961_v41 = vpop.f32.mrb[4].mxu0  ;;  %v1007_v42 = vpop.f32.mrb[4].mxu1 }
 0x3a5   : >> { %v962_v43 = vadd.f32 %v961_v41, %v827_v28  ;;  %v1862_v44 = vpop.f32.mrb[5].mxu0  ;;  %v1008_v45 = vadd.f32 %v1007_v42, %v827_v28  ;;  %v1868_v46 = vpop.f32.mrb[5].mxu1 }
 0x3a6   : >> { %v964_v47 = vpop.f32.mrb[6].mxu0  ;;  %v1010_v48 = vpop.f32.mrb[6].mxu1 }
 0x3a7   : >> { %v1863_v49 = vpop.f32.mrb[7].mxu0  ;;  %v1019_v50 = vsel %vm828_vm5, %v962_v43, -inf  ;;  %v1869_v51 = vpop.f32.mrb[7].mxu1  ;;  %v1022_v53 = vsel %vm828_vm5, %v1008_v45, -inf }
 0x3a8   : >> { %1020 = vmax.xlane.f32.xlu1 %v1019_v50 }
 0x3ac   : >> { %1023 = vmax.xlane.f32.xlu1 %v1022_v53 }
 0x42d   : >> { %v1015_v3 = vpop.xlane.xlu0 %1014 }
 0x42e   : >> { %v2674_v4 = vmax.f32 %v2330_v17, %v1015_v3  }
 0x430   : >> { %v1029_v19 = vsub.f32 %v2330_v17, %v2674_v4  ;;  %v1041_v20 = vsub.f32 %v870_v31, %v2674_v4 }
 0x431   : >> { %v1018_v21 = vpop.xlane.xlu0 %1017 }
 0x432   : >> { %v1045_v22 = vmul.f32 1.442695, %v1041_v20  ;;  %v2680_v23 = vmax.f32 %v2326_v16, %v1018_v21  }
 0x434   : >> { %v1030_v24 = vsub.f32 %v2326_v16, %v2680_v23  ;;  %v1042_v25 = vsub.f32 %v916_v33, %v2680_v23  ;;  %2112 = vpow2.f32 %v1045_v22 }
 0x435   : >> { %v1021_v26 = vpop.xlane.xlu1 %1020 }
 0x436   : >> { %v1047_v27 = vmul.f32 1.442695, %v1042_v25  ;;  %v2686_v28 = vmax.f32 %v2322_v15, %v1021_v26   ;;  %v1035_v46 = vmul.f32 1.442695, %v1030_v24 }
 0x438   : >> { %v1031_v17 = vsub.f32 %v2322_v15, %v2686_v28  ;;  %v1043_v29 = vsub.f32 %v962_v43, %v2686_v28  ;;  %2114 = vpow2.f32 %v1047_v27 }
 0x439   : >> { %v1024_v30 = vpop.xlane.xlu1 %1023 }
 0x43a   : >> { %v1049_v31 = vmul.f32 1.442695, %v1043_v29  ;;  %v2692_v32 = vmax.f32 %v2318_v13, %v1024_v30   ;;  %v1037_v47 = vmul.f32 1.442695, %v1031_v17 }
 0x43c   : >> { %v1032_v16 = vsub.f32 %v2318_v13, %v2692_v32  ;;  %v1044_v33 = vsub.f32 %v1008_v45, %v2692_v32  ;;  %2116 = vpow2.f32 %v1049_v31  ;;  %v1033_v45 = vmul.f32 1.442695, %v1029_v19 }
 0x43e   : >> { %v1051_v34 = vmul.f32 1.442695, %v1044_v33  ;;  %v2113_v35 = vpop.eup %2112 }
 0x43f   : >> { %v1057_v36 = vsel %vm828_vm5, %v2113_v35, 0.0  ;;  %v1077_v37 = vpack.c.bf16 %v2113_v35, %v2113_v35 }
 0x440   : >> { %2118 = vpow2.f32 %v1051_v34  ;;  %1058 = vadd.xlane.f32.xlu0 %v1057_v36 }
 0x441   : >> { %1873 = vmatmul.mubr.msk.bf16.vlgmr.msra.gmra.mrb[8].mxu0 %vm828_vm5, %v1077_v37  ;;  %2120 = vpow2.f32 %v1033_v45  ;;  %v1765_v45 = vld [vmem:[%s2900_s8] ss:$0 sm:$0xff] (%p2718_p13) }
 0x442   : >> { %v2115_v15 = vpop.eup %2114  ;;  %1883 = vmatpush3.bf16.msra.mxu0 %v1178_v62  ;;  %1884 = vmatprep.mubr.msk.bf16.mxu0 %vm2347_vm4, %v2346_v18  ;;  %2122 = vpow2.f32 %v1035_v46 }
 0x443   : >> { %v1060_v38 = vsel %vm828_vm5, %v2115_v15, 0.0  ;;  %v1078_v13 = vpack.c.bf16 %v2115_v15, %v2115_v15  ;;  %2124 = vpow2.f32 %v1037_v47  ;;  %1910 = vmatprep.subr.bf16.mxu0 (%p2718_p13), %v2336_v14 }
 0x444   : >> { %1061 = vadd.xlane.f32.xlu1 %v1060_v38 }
 0x445   : >> { %1879 = vmatmul.mubr.msk.bf16.vlgmr.msra.gmra.mrb[8].mxu1 %vm828_vm5, %v1078_v13 }
 0x446   : >> { %v2117_v39 = vpop.eup %2116  ;;  %1889 = vmatpush3.bf16.msra.mxu1 %v1224_v2  ;;  %1890 = vmatprep.mubr.msk.bf16.mxu1 %vm2347_vm4, %v2346_v18  ;;  %v1039_v18 = vmul.f32 1.442695, %v1032_v16 }
 0x447   : >> { %v1063_v40 = vsel %vm828_vm5, %v2117_v39, 0.0  ;;  %v1079_v41 = vpack.c.bf16 %v2117_v39, %v2117_v39  ;;  %1894 = vmatprep.subr.bf16.mxu1 (%p2718_p13), %v2336_v14 }
 0x448   : >> { %1064 = vadd.xlane.f32.xlu0 %v1063_v40  ;;  %2126 = vpow2.f32 %v1039_v18 }
 0x449   : >> { %1885 = vmatmul.mubr.msk.bf16.vlgmr.msra.gmra.mrb[12].mxu0 %vm828_vm5, %v1079_v41 }
 0x44a   : >> { %v2119_v42 = vpop.eup %2118  ;;  %1926 = vmatprep.mubr.msk.bf16.mxu0 (%p2718_p13), %vm2337_vm1, %v2336_v14 }
 0x44b   : >> { %v1066_v43 = vsel %vm828_vm5, %v2119_v42, 0.0  ;;  %v1080_v44 = vpack.c.bf16 %v2119_v42, %v2119_v42  ;;  %v2121_v48 = vpop.eup %2120 }
 0x44c   : >> { %1067 = vadd.xlane.f32.xlu1 %v1066_v43  ;;  %v1053_v49 = vmul.f32 %v2314_v12, %v2121_v48  ;;  %v2123_v50 = vpop.eup %2122  ;;  %v1073_v21 = vmul.f32 %v2298_v8, %v2121_v48 }
 0x44d   : >> { %1891 = vmatmul.mubr.msk.bf16.vlgmr.msra.gmra.mrb[12].mxu1 %vm828_vm5, %v1080_v44  ;;  %v1054_v55 = vmul.f32 %v2310_v11, %v2123_v50  ;;  %v2125_v56 = vpop.eup %2124  ;;  %v1074_v11 = vmul.f32 %v2294_v7, %v2123_v50 }
 0x44e   : >> { %v1055_v61 = vmul.f32 %v2306_v10, %v2125_v56  ;;  %v1075_v31 = vmul.f32 %v2290_v6, %v2125_v56  ;;  %1898 = vmatprep.mubr.msk.bf16.mxu1 (%p2718_p13), %vm2337_vm1, %v2336_v14 }
 0x452   : >> { %v2127_v62 = vpop.eup %2126 }
 0x453   : >> { %v1056_v3 = vmul.f32 %v2302_v9, %v2127_v62  ;;  %v1076_v8 = vmul.f32 %v2286_v5, %v2127_v62  ;;  %v2132_v62 = vld [vmem:[%s2905_s13] sm:$0xff] (%p2718_p13)  }
 0x454   : > { %1911 = vmatpush3.bf16.msra.mxu0 (%p2718_p13), %v2132_v62 }
 0x455   : > { %1912 = vmatprep.subr.bf16.mxu0 (%p2718_p13), %v2336_v14 }
 0x4cd   : >> { %v1059_v51 = vpop.xlane.xlu0 %1058 }
 0x4ce   : >> { %v1069_v53 = vadd.f32 %v1059_v51, %v1053_v49  }
 0x4d1   : >> { %v1062_v57 = vpop.xlane.xlu1 %1061 }
 0x4d2   : >> { %v1070_v58 = vadd.f32 %v1062_v57, %v1054_v55  }
 0x4d4   : > { %2140 = vrcp.f32 (%p2718_p13), %v1070_v58 }
 0x4d5   : >> { %v1065_v1 = vpop.xlane.xlu0 %1064 }
 0x4d6   : >> { %v1071_v2 = vadd.f32 %v1065_v1, %v1055_v61   ;;  %v2130_v61 = vld [vmem:[%s2903_s11] sm:$0xff] (%p2718_p13)  }
 0x4d8   : > { %2142 = vrcp.f32 (%p2718_p13), %v1071_v2 }
 0x4d9   : >> { %v1068_v19 = vpop.xlane.xlu1 %1067 }
 0x4da   : >> { %v1072_v20 = vadd.f32 %v1068_v19, %v1056_v3  }
 0x4dc   : > { %2144 = vrcp.f32 (%p2718_p13), %v1072_v20 }
 0x4dd   : > { %2146 = vrcp.f32 (%p2718_p13), %v1069_v53 }
 0x4de   : > { %v2141_v54 = vpop.eup (%p2718_p13), %2140 }
 0x4e2   : > { %v2143_v59 = vpop.eup (%p2718_p13), %2142 }
 0x4e6   : > { %v2145_v63 = vpop.eup (%p2718_p13), %2144 }
 0x514   : >> { %v1122_v12 = vpop.f32.mrb[8].mxu0 }
 0x515   : >> { %v1266_v22 = vadd.f32 %v1122_v12, %v1073_v21   ;;  %v1874_v24 = vpop.f32.mrb[9].mxu0  ;;  %v2931_v12 = vmov %v1069_v53 }
 0x516   : >> { %v1125_v25 = vpop.f32.mrb[10].mxu0  ;;  %v1770_v12 = vld [vmem:[%s2902_s10] ss:$0 sm:$0xff] (%p2718_p13) }
 0x517   : >> { %v1875_v26 = vpop.f32.mrb[11].mxu0 }
 0x518   : >> { %v1168_v27 = vpop.f32.mrb[8].mxu1  ;;  %v2133_v26 = vld [vmem:[%s2905_s13 + $0x8] sm:$0xff] (%p2718_p13)  }
 0x519   : >> { %v1267_v29 = vadd.f32 %v1168_v27, %v1074_v11   ;;  %v1880_v17 = vpop.f32.mrb[9].mxu1  ;;  %v2930_v11 = vmov %v1070_v58  ;;  %1913 = vmatpush3.bf16.msra.mxu0 (%p2718_p13), %v2133_v26  ;;  %v2135_v27 = vld [vmem:[%s2905_s13 + $0x18] sm:$0xff] (%p2718_p13)  }
 0x51a   : >> { %v1171_v10 = vpop.f32.mrb[10].mxu1  ;;  %v2935_v17 = vmov %v2674_v4  ;;  %v2128_v4 = vld [vmem:[%s2899_s7] sm:$0xff] (%p2718_p13)   ;;  %1914 = vmatprep.subr.bf16.mxu0 (%p2718_p13), %v2336_v14  ;;  %v2134_v11 = vld [vmem:[%s2905_s13 + $0x10] sm:$0xff] (%p2718_p13)  }
 0x51b   : >> { %v1881_v30 = vpop.f32.mrb[11].mxu1  ;;  %v2926_v7 = vmov %v1267_v29  ;;  %v2929_v10 = vmov %v1071_v2  ;;  %1895 = vmatpush3.bf16.msra.mxu1 (%p2718_p13), %v2128_v4  ;;  %v1275_v60 = vmul.f32 (%p2718_p13), %v2141_v54, %v1267_v29  ;;  %v2136_v29 = vld [vmem:[%s2905_s13 + $0x20] sm:$0xff] (%p2718_p13)   ;;  %v2137_v17 = vld [vmem:[%s2905_s13 + $0x28] sm:$0xff] (%p2718_p13)  }
 0x51c   : >> { %v1214_v16 = vpop.f32.mrb[12].mxu0  ;;  %1896 = vmatprep.subr.bf16.mxu1 (%p2718_p13), %v2336_v14  ;;  %v2138_v10 = vld [vmem:[%s2905_s13 + $0x30] sm:$0xff] (%p2718_p13)   ;;  %v2139_v30 = vld [vmem:[%s2905_s13 + $0x38] sm:$0xff] (%p2718_p13)  }
 0x51d   : >> { %v1268_v33 = vadd.f32 %v1214_v16, %v1075_v31   ;;  %v1886_v9 = vpop.f32.mrb[13].mxu0  ;;  %v2934_v16 = vmov %v2680_v23  ;;  %v1790_v7 = vpack.c.bf16 (%p2718_p13), %v1275_v60, %v1275_v60  ;;  %1915 = vmatpush3.bf16.msra.mxu0 (%p2718_p13), %v2134_v11  ;;  %v1771_v31 = vld [vmem:[%s2904_s12] ss:$0 sm:$0xff] (%p2718_p13) }
 0x51e   : >> { %v1217_v34 = vpop.f32.mrb[14].mxu0  ;;  %v2928_v9 = vmov %v1072_v20  ;;  %795 = sbr.rel (!%p2718_p13) target bundleno = 700 (0x2bc), region = 138  ;;  %v1769_v20 = vld [vmem:[%s2901_s9] ss:$0 sm:$0xff] (%p2718_p13)  ;;  %1916 = vmatprep.subr.bf16.mxu0 (%p2718_p13), %v2336_v14 }
 0x51f   : >> { %v1887_v35 = vpop.f32.mrb[15].mxu0  ;;  %v2925_v6 = vmov %v1268_v33  ;;  %1897 = vmatpush3.bf16.msra.mxu1 (%p2718_p13), %v2129_v52  ;;  %1286 = vrot.lane.b32.xlu0 (%p2718_p13), %v1790_v7, %s2348_s0  ;;  %s1609_s0 = sshll.u32 (%p2718_p13), %s2936_s25, 4  ;;  %s2842_s0 = int_to_ptr.vmem [resolvable:$true] %s1609_s0 }
 0x520   : >> { %v1260_v36 = vpop.f32.mrb[12].mxu1  ;;  %v2147_v6 = vpop.eup (%p2718_p13), %2146  ;;  %1902 = vmatprep.subr.bf16.mxu1 (%p2718_p13), %v2336_v14  ;;  %s2152_s25 = scalar_lea.vmem (%p2718_p13), %s2842_s0, 128  ;;  %p2159_p3 = scmp.lt.s32.totalorder (%p2718_p13), %s2842_s0, %s2157_s3 }
 0x521   : >> { %v1269_v37 = vadd.f32 %v1260_v36, %v1076_v8   ;;  %v1892_v15 = vpop.f32.mrb[13].mxu1  ;;  %v2927_v8 = vmov %v1266_v22  ;;  %1917 = vmatpush3.bf16.msra.mxu0 (%p2718_p13), %v2135_v27  ;;  %p2153_p0 = scmp.ne.s32.totalorder (%p2718_p13), %s2842_s0, %s2152_s25 }
 0x522   : >> { %v1263_v38 = vpop.f32.mrb[14].mxu1  ;;  %v2933_v15 = vmov %v2686_v28  ;;  %v1274_v28 = vmul.f32 (%p2718_p13), %v2147_v6, %v1266_v22  ;;  %1918 = vmatprep.subr.bf16.mxu0 (%p2718_p13), %v2336_v14 }
 0x523   : >> { %v1893_v13 = vpop.f32.mrb[15].mxu1  ;;  %v2924_v5 = vmov %v1269_v37  ;;  %v1277_v23 = vmul.f32 (%p2718_p13), %v2145_v63, %v1269_v37  ;;  %p2154_p1 = pnand (%p2718_p13), %p2153_p0, %p2472_p4 }
 0x524   : >> { %v2932_v13 = vmov %v2692_v32  ;;  %v1276_v5 = vmul.f32 (%p2718_p13), %v2143_v59, %v1268_v33  ;;  %v1278_v40 = vpack.c.bf16 (%p2718_p13), %v1274_v28, %v1274_v28  ;;  %v1775_v59 = vld [vmem:[%s2906_s14] ss:$0 sm:$0xff] (%p2718_p13) }
 0x525   : > { %v1792_v39 = vpack.c.bf16 %v1277_v23, %v1277_v23  ;;  %1919 = vmatpush3.bf16.msra.mxu0 %v2136_v29  ;;  %p2155_p2 = pneg %p2154_p1 }
 0x526   : > { %v1791_v32 = vpack.c.bf16 %v1276_v5, %v1276_v5  ;;  %1282 = vst.msk [vmem:[#allocation5] sm:$0xf] %vm609_vm2, %v1278_v40  ;;  %1920 = vmatprep.subr.bf16.mxu0 %v2336_v14 }
 0x527   : > { %1302 = vrot.lane.b32.xlu1 %v1792_v39, %s2349_s18 }
 0x528   : > { %1294 = vrot.lane.b32.xlu0 %v1791_v32, %s2350_s26  ;;  %s2840_s26 = scalar_lea.hbm %s2907_s15, %s1785_s27  ;;  %s2158_s27 = scalar_lea.vmem %s2157_s3, 256 }
 0x529   : > { %1921 = vmatpush3.bf16.msra.mxu0 %v2137_v17  ;;  %p2160_p5 = scmp.lt.s32.totalorder %s2158_s27, %s2152_s25 }
 0x52a   : > { %1922 = vmatprep.subr.bf16.mxu0 %v2336_v14 }
 0x52b   : > { %p2161_p6 = por %p2160_p5, %p2159_p3 }
 0x52d   : > { %1923 = vmatpush3.bf16.msra.mxu0 %v2138_v10  ;;  %p2162_p7 = pnand %p2161_p6, %p2155_p2 }
 0x52e   : > { %1924 = vmatprep.subr.bf16.mxu0 %v2336_v14 }
 0x531   : > { %1925 = vmatpush3.bf16.msra.mxu0 %v2139_v30 }
 0x591   : > { %v1287_v41 = vpop.permute.xlu0 %1286 }
 0x592   : > { %1290 = vst.msk [vmem:[#allocation5] sm:$0xf] %vm1289_vm7, %v1287_v41 }
 0x599   : > { %v1303_v42 = vpop.permute.xlu1 %1302 }
 0x59a   : > { %v1295_v43 = vpop.permute.xlu0 %1294 }
 0x59b   : > { %1298 = vst.msk [vmem:[#allocation5] sm:$0xf] %vm1297_vm8, %v1295_v43 }
 0x59c   : > { %1306 = vst.msk [vmem:[#allocation5] sm:$0xf] %vm1305_vm9, %v1303_v42 }
 0x5a3   : > { %v1307_v44 = vld [vmem:[#allocation5] sm:$0xf] }
 0x5a4   : > { %1899 = vmatmul.mubr.msk.bf16.vlgmr.msra.gmra.mrb[0].mxu1 %vm512_vm0, %v1307_v44 }
 0x5a5   : > { %1906 = vmatprep.mubr.msk.bf16.mxu1 %vm2337_vm1, %v2336_v14  ;;  %1903 = vmatpush3.bf16.msra.mxu1 %v2130_v61 }
 0x5a6   : > { %1904 = vmatprep.subr.bf16.mxu1 %v2336_v14 }
 0x677   : > { %v1368_v46 = vpop.f32.mrb[0].mxu1 }
 0x678   : > { %v1369_v47 = vadd.f32 %v1765_v45, %v1368_v46  ;;  %v1900_v18 = vpop.f32.mrb[1].mxu1 }
 0x679   : > { %v1371_v48 = vpop.f32.mrb[2].mxu1 }
 0x67a   : > { %v2776_v49 = vadd.f32 %v1369_v47, %v2492_v0  ;;  %v1901_v50 = vpop.f32.mrb[3].mxu1  ;;  %v2131_v0 = vld [vmem:[%s2903_s11 + $0x8] sm:$0xff]  }
 0x67b   : > { %1905 = vmatpush3.bf16.msra.mxu1 %v2131_v0 }
 0x67c   : > { %v1377_v51 = vsel %vm512_vm0, %v2776_v49, 0.0 }
 0x67d   : > { %1378 = vadd.xlane.f32.xlu1 %v1377_v51 }
 0x70a   : > { %v1379_v53 = vpop.xlane.xlu1 %1378 }
 0x70b   : > { %v1380_v55 = vmul.f32 0.03125, %v1379_v53 }
 0x70d   : > { %v1381_v56 = vsub.f32 %v2776_v49, %v1380_v55 }
 0x70f   : > { %v1382_v57 = vmul.f32 %v1381_v56, %v1381_v56 }
 0x711   : > { %v1383_v58 = vsel %vm512_vm0, %v1382_v57, 0.0 }
 0x712   : > { %1384 = vadd.xlane.f32.xlu0 %v1383_v58 }
 0x79f   : > { %v1385_v1 = vpop.xlane.xlu0 %1384 }
 0x7a0   : > { %v1386_v2 = vmul.f32 0.03125, %v1385_v1 }
 0x7a2   : > { %v1387_v3 = vadd.f32 1e-05, %v1386_v2 }
 0x7a4   : > { %2148 = vrsqrt.f32 %v1387_v3 }
 0x7ae   : > { %v2149_v19 = vpop.eup %2148 }
 0x7af   : > { %v1389_v21 = vmul.f32 %v2149_v19, %v1381_v56 }
 0x7b1   : > { %v1396_v22 = vmul.f32 %v1769_v20, %v1389_v21 }
 0x7b3   : > { %v1403_v24 = vadd.f32 %v1770_v12, %v1396_v22 }
 0x7b5   : > { %v1404_v25 = vpack.c.bf16 %v1403_v24, %v1403_v24 }
 0x7b7   : > { %1907 = vmatmul.mubr.msk.bf16.vlgmr.msra.gmra.mrb[4].mxu1 %vm512_vm0, %v1404_v25 }
 0x88a   : > { %v1465_v16 = vpop.f32.mrb[4].mxu1 }
 0x88b   : > { %v1466_v33 = vadd.f32 %v1771_v31, %v1465_v16  ;;  %v1908_v9 = vpop.f32.mrb[5].mxu1 }
 0x88c   : > { %v1468_v34 = vpop.f32.mrb[6].mxu1 }
 0x88d   : > { %v1472_v35 = vmul.f32 0.044715, %v1466_v33  ;;  %v1909_v8 = vpop.f32.mrb[7].mxu1  ;;  %v1471_v14 = vmul.f32 0.5, %v1466_v33 }
 0x88f   : > { %v1473_v36 = vmul.f32 %v1472_v35, %v1466_v33 }
 0x891   : > { %v1474_v37 = vmul.f32 %v1473_v36, %v1466_v33 }
 0x893   : > { %v1475_v15 = vadd.f32 %v1474_v37, %v1466_v33 }
 0x895   : > { %v1476_v38 = vmul.f32 0.7978846, %v1475_v15 }
 0x897   : > { %2150 = vtanh.f32 %v1476_v38 }
 0x8a1   : > { %v2151_v13 = vpop.eup %2150 }
 0x8a2   : > { %v1478_v4 = vadd.f32 1.0, %v2151_v13 }
 0x8a4   : > { %v1479_v52 = vmul.f32 %v1478_v4, %v1471_v14 }
 0x8a6   : > { %v1480_v54 = vpack.c.bf16 %v1479_v52, %v1479_v52 }
 0x8a8   : > { %1927 = vmatmul.mubr.bf16.vlgmr.msra.gmra.mrb[0].mxu0 %v1480_v54 }
 0x97b   : > { %v1586_v60 = vpop.f32.mrb[0].mxu0 }
 0x97c   : > { %v1587_v63 = vadd.f32 %v1775_v59, %v1586_v60  ;;  %v1928_v5 = vpop.f32.mrb[1].mxu0 }
 0x97d   : > { %v1589_v6 = vpop.f32.mrb[2].mxu0 }
 0x97e   : > { %v1592_v7 = vadd.f32 %v1587_v63, %v2776_v49  ;;  %v1929_v23 = vpop.f32.mrb[3].mxu0 }
 0x980   : > { %1593 = vst.msk [vmem:[%s2937_s29] sm:$0xff] %vm512_vm0, %v1592_v7 }
 0x981   : > { %2165 = shalt.err (!%p2162_p7)
}
 0x982   : > { %s2166_s24 = scalar_lea.hbm %s2840_s26, 128  ;;  %s2170_s2 = scalar_lea.hbm %s2907_s15, 256 }
 0x983   : > { %p2167_p9 = scmp.ne.s32.totalorder %s2840_s26, %s2166_s24  ;;  %p2171_p12 = scmp.lt.u32.totalorder %s2840_s26, %s2907_s15 }
 0x984   : > { %p2172_p13 = scmp.lt.u32.totalorder %s2170_s2, %s2166_s24  ;;  %p2174_p1 = scmp.lt.u32.totalorder %s2166_s24, %s2840_s26 }
 0x985   : > { %p2168_p10 = pnand %p2167_p9, %p2472_p4 }
 0x986   : > { %p2173_p0 = por %p2172_p13, %p2171_p12 }
 0x987   : > { %p2169_p11 = pneg %p2168_p10 }
 0x988   : > { %p2175_p2 = por %p2174_p1, %p2173_p0 }
 0x98a   : > { %p2176_p3 = pnand %p2175_p2, %p2169_p11 }
 0x98c   : > { %2179 = shalt.err (!%p2176_p3)
}
 0x98d   : > { %1930 = dma.vmem_to_hbm [thread:$0]  (%p2472_p4), %s2842_s0, 128, %s2840_s26, %s1595_s17  }
 0x98e PF: > { %s2939_s21 = sld [smem:[#allocation9_spill]]  ;;  %p1936_p5 = scmp.ge.s32.totalorder %s2282_s23, 2 }
 0x990   : > { %p1933_p6 = pnand %p1936_p5, %p2479_p8 }
 0x994   : > { %s1621_s25 = sand.u32 1, %s2939_s21  }
 0x995   : > { %s1622_s27 = scalar_lea.sflag [#allocation7], %s1621_s25 }
 0x996   : > { %2257 = dma.done.wait (!%p1933_p6), %s1622_s27, 128  }
 0x997   : > { %2259 = vsyncadd (!%p1933_p6), %s1622_s27, 4294967168  ;;  %s28_s23 = sadd.s32 1, %s2282_s23   ;;  %s2940_s28 = sld [smem:[#allocation10_spill]] }
 0x998   : > { %p25_p7 = scmp.ge.s32.totalorder %s28_s23, 4   ;;  %s2941_s18 = smov %s2266_s19 }
 0x999   : > { %s2942_s19 = smov %s2270_s20  ;;  %s2943_s20 = smov %s2485_s16 }
 0x99a   : > { %s2944_s21 = smov %s2278_s22  ;;  %27 = sbr.rel (!%p25_p7) target bundleno = 9 (0x9), region = 149 }
 0x99d   : > { %s2945_s22 = smov %s2940_s28 }
 0x9a1   :  { %1627 = vsyncpa [#allocation7], 1 }
 0x9a2   :  { %1629 = vsyncpa [#allocation7 + $0x1], 1 }

// kernel: tpu_custom_call.1
= control target key start
LH: loop header
LB: loop body
LE: loop exit
PB: predicated region body
PF: predicated region fallthrough
CT: control target
= control target key end

     0   :  { %s2892_s0 = inlined_call_operand.vmem [shape: f32[2,8,32], index: 0, kind: input, shape index: {}]   ;;  %s2893_s1 = inlined_call_operand.vmem [shape: f32[1,32], index: 1, kind: input, shape index: {}]   ;;  %s2894_s2 = inlined_call_operand.vmem [shape: f32[1,32], index: 2, kind: input, shape index: {}]   ;;  %s2895_s3 = inlined_call_operand.vmem [shape: bf16[32,32], index: 3, kind: input, shape index: {}]   ;;  %s2896_s4 = inlined_call_operand.vmem [shape: f32[1,32], index: 4, kind: input, shape index: {}]   ;;  %s2897_s5 = inlined_call_operand.vmem [shape: bf16[32,64], index: 5, kind: input, shape index: {}]   ;;  %s2898_s6 = inlined_call_operand.vmem [shape: f32[1,64], index: 6, kind: input, shape index: {}]   ;;  %s2899_s7 = inlined_call_operand.vmem [shape: bf16[32,32], index: 7, kind: input, shape index: {}]   ;;  %s2900_s8 = inlined_call_operand.vmem [shape: f32[1,32], index: 8, kind: input, shape index: {}]   ;;  %s2901_s9 = inlined_call_operand.vmem [shape: f32[1,32], index: 9, kind: input, shape index: {}]   ;;  %s2902_s10 = inlined_call_operand.vmem [shape: f32[1,32], index: 10, kind: input, shape index: {}]   ;;  %s2903_s11 = inlined_call_operand.vmem [shape: bf16[32,128], index: 11, kind: input, shape index: {}]   ;;  %s2904_s12 = inlined_call_operand.vmem [shape: f32[1,128], index: 12, kind: input, shape index: {}]   ;;  %s2905_s13 = inlined_call_operand.vmem [shape: bf16[128,32], index: 13, kind: input, shape index: {}]   ;;  %s2906_s14 = inlined_call_operand.vmem [shape: f32[1,32], index: 14, kind: input, shape index: {}]   ;;  %s2907_s15 = inlined_call_operand.hbm [shape: f32[2,8,32], index: 15, kind: output, shape index: {}]  }
   0x1   :  { %2911 = sst [smem:[#allocation11_spill]] %s2892_s0 }
   0x2   :  { %2912 = sst [smem:[#allocation12_spill]] %s2893_s1 }
   0x3   :  { %2913 = sst [smem:[#allocation13_spill]] %s2894_s2 }
   0x4   :  { %2914 = sst [smem:[#allocation14_spill]] %s2895_s3 }
   0x5   :  { %20 = vsyncpa [#allocation7], 0 }
   0x6   :  { %22 = vsyncpa [#allocation7 + $0x1], 0  ;;  %s2432_s18 = smov 0   ;;  %s2434_s19 = smov 0  }
   0x7   :  { %s2436_s20 = smov 0   ;;  %s2438_s21 = smov 0  }
   0x8   :  { %s2440_s22 = smov 0   ;;  %s2442_s23 = smov 0  }
   0x9 LB: > { %2915 = sst [smem:[#allocation9_spill]] %s2262_s18  ;;  %s1730_s24 = sadd.s32 4294967295, %s2282_s23   ;;  %s2282_s23 = sphi %s2442_s23, %s28_s23   ;;  %s2278_s22 = sphi %s2440_s22, %s2945_s22   ;;  %s2274_s21 = sphi %s2438_s21, %s2944_s21   ;;  %s2270_s20 = sphi %s2436_s20, %s2943_s20   ;;  %s2266_s19 = sphi %s2434_s19, %s2942_s19   ;;  %s2262_s18 = sphi %s2432_s18, %s2941_s18  }
   0xa   : > { %s1731_s25 = sadd.s32 4294967294, %s2282_s23   ;;  %s40_s26 = sadd.s32 1, %s2278_s22 }
   0xb   : > { %s369_s27 = sadd.s32 1, %s2270_s20  ;;  %p42_p0 = scmp.ge.s32.totalorder %s40_s26, 2 }
   0xc   : > { %p379_p1 = scmp.ne.s32.totalorder %s2270_s20, %s2266_s19  ;;  %p380_p2 = scmp.eq.s32.totalorder %s1730_s24, 1 }
   0xd   : > { %p385_p3 = scmp.ne.s32.totalorder %s2266_s19, %s2262_s18  ;;  %s2947_s26 = smov (%p42_p0, %s40_s26), 0 }
   0xe   : > { %2916 = sst [smem:[#allocation10_spill]] %s2947_s26  ;;  %p2472_p4 = por %p380_p2, %p379_p1 }
   0xf   : > { %p386_p5 = scmp.eq.s32.totalorder %s1731_s25, 1  ;;  %s364_s29 = ssub.s32 %s2278_s22, %s2947_s26 }
  0x10   : > { %p1734_p6 = scmp.ge.s32.totalorder %s2282_s23, 1  ;;  %p367_p7 = scmp.eq.s32.totalorder %s364_s29, 0 }
  0x11   : > { %p2479_p8 = por %p386_p5, %p385_p3  ;;  %p453_p9 = scmp.lt.s32.totalorder %s2282_s23, 3 }
  0x12   : > { %s2485_s16 = scalar_select %p367_p7, %s2270_s20, %s369_s27  }
  0x13   : > { %p454_p10 = pnand %p1734_p6, %p453_p9 }
  0x14   : > { %p500_p11 = scmp.lt.s32.totalorder (!%p454_p10), %s2274_s21, 1  ;;  %vm512_vm0 = vcmask (!%p454_p10), 261120   ;;  %s2919_s0 = sld [smem:[#allocation11_spill]] (!%p454_p10)  ;;  %v2105_v13 = vld [vmem:[%s2897_s5] sm:$0xff] (!%p454_p10)   ;;  %v2336_v14 = vmov (!%p454_p10), 0.0   ;;  %vm2337_vm1 = vmmov (!%p454_p10), 0   ;;  %v783_v49 = vlaneseq (!%p454_p10) }
  0x15   : > { %457 = sbr.rel (%p454_p10) target bundleno = 2446 (0x98e), region = 80  ;;  %s2920_s3 = sld [smem:[#allocation14_spill]] (!%p454_p10)  ;;  %1838 = vmatprep.subr.bf16.mxu1 (!%p454_p10), %v2336_v14  ;;  %1830 = vmatprep.subr.bf16.mxu0 (!%p454_p10), %v2336_v14  ;;  %v2107_v16 = vld [vmem:[%s2897_s5 + $0x8] sm:$0xff] (!%p454_p10)   ;;  %v1746_v35 = vld [vmem:[%s2896_s4] ss:$0 sm:$0xff] (!%p454_p10)  ;;  %vm609_vm2 = vcmask (!%p454_p10), 60416  }
  0x16   : > { %s2910_s27 = sand.u32 (!%p454_p10), 1, %s2266_s19   ;;  %1831 = vmatpush3.bf16.msra.mxu0 (!%p454_p10), %v2105_v13  ;;  %1842 = vmatprep.mubr.msk.bf16.mxu1 (!%p454_p10), %vm2337_vm1, %v2336_v14  ;;  %s2921_s1 = sld [smem:[#allocation12_spill]] (!%p454_p10)  ;;  %v1739_v40 = vld [vmem:[%s2898_s6] ss:$0 sm:$0xff] (!%p454_p10)  ;;  %v784_v50 = vshrl.u32 (!%p454_p10), %v783_v49, 7  ;;  %v786_v51 = vand.u32 (!%p454_p10), 127, %v783_v49 }
  0x17   : > { %1832 = vmatprep.subr.bf16.mxu0 (!%p454_p10), %v2336_v14  ;;  %1834 = vmatprep.mubr.msk.bf16.mxu0 (!%p454_p10), %vm2337_vm1, %v2336_v14  ;;  %s2922_s2 = sld [smem:[#allocation13_spill]] (!%p454_p10)  ;;  %s2339_s25 = smov (!%p454_p10), 112   ;;  %v2341_v53 = vmov (!%p454_p10), -1e+30   ;;  %v2578_v13 = vmov (!%p454_p10), -inf  }
  0x18   : > { %s2340_s18 = smov (!%p454_p10), 104   ;;  %vm787_vm3 = vcmp.ge.s32.totalorder (!%p454_p10), %v784_v50, %v786_v51  ;;  %s2344_s29 = smov (!%p454_p10), 80  }
  0x19   : > { %v2543_v54 = vsel (!%p454_p10), %vm787_vm3, 0.0, %v2341_v53 }
  0x1a   : > { %1833 = vmatpush3.bf16.msra.mxu0 (!%p454_p10), %v2107_v16  ;;  %v2582_v16 = vmov (!%p454_p10), -inf  }
  0x1b   : > { %v2104_v12 = vld [vmem:[%s2920_s3] sm:$0xff] (!%p454_p10)   ;;  %v2106_v15 = vld [vmem:[%s2920_s3 + $0x8] sm:$0xff] (!%p454_p10)  }
  0x1c   : > { %s501_s17 = scalar_select %p500_p11, %s2274_s21, 1  ;;  %1839 = vmatpush3.bf16.msra.mxu1 %v2104_v12  ;;  %v1744_v24 = vld [vmem:[%s2921_s1] ss:$0 sm:$0xff]  ;;  %v2576_v12 = vmov 0.0  }
  0x1d   : > { %1840 = vmatprep.subr.bf16.mxu1 %v2336_v14  ;;  %v1745_v26 = vld [vmem:[%s2922_s2] ss:$0 sm:$0xff] }
  0x1e   : > { %s1736_s24 = sshll.u32 %s501_s17, 3  ;;  %s2338_s17 = smov 120  }
  0x1f   : > { %s503_s26 = scalar_lea.vmem %s2919_s0, %s1736_s24  ;;  %s2510_s24 = sshll.u32 %s2910_s27, 3 }
  0x20   : > { %v2492_v0 = vld [vmem:[%s503_s26] sm:$0xff]  ;;  %1841 = vmatpush3.bf16.msra.mxu1 %v2106_v15  ;;  %s2342_s26 = smov 96   ;;  %s2343_s0 = smov 88   ;;  %v2580_v15 = vmov -inf  }
  0x21   : > { %v663_v1 = vsel %vm512_vm0, %v2492_v0, 0.0  ;;  %s2345_s27 = smov 72  }
  0x22   : > { %664 = vadd.xlane.f32.xlu0 %v663_v1 }
  0x26   : > { %514 = vadd.xlane.f32.xlu0 %v663_v1 }
  0xaf   : > { %v665_v2 = vpop.xlane.xlu0 %664 }
  0xb0   : > { %v667_v3 = vmul.f32 0.03125, %v665_v2 }
  0xb2   : > { %v668_v4 = vsub.f32 %v2492_v0, %v667_v3 }
  0xb3   : > { %v515_v5 = vpop.xlane.xlu0 %514 }
  0xb4   : > { %v517_v6 = vmul.f32 0.03125, %v515_v5  ;;  %v669_v7 = vmul.f32 %v668_v4, %v668_v4  ;;  %v2562_v5 = vmov 0.0  }
  0xb6   : > { %v518_v8 = vsub.f32 %v2492_v0, %v517_v6  ;;  %v670_v9 = vsel %vm512_vm0, %v669_v7, 0.0  ;;  %v2564_v6 = vmov 0.0   ;;  %v2566_v7 = vmov 0.0  }
  0xb7   : > { %671 = vadd.xlane.f32.xlu1 %v670_v9  ;;  %v2570_v9 = vmov 0.0  }
  0xb8   : > { %v519_v10 = vmul.f32 %v518_v8, %v518_v8 }
  0xba   : > { %v520_v11 = vsel %vm512_vm0, %v519_v10, 0.0  ;;  %v2572_v10 = vmov 0.0  }
  0xbb   : > { %521 = vadd.xlane.f32.xlu1 %v520_v11  ;;  %v2574_v11 = vmov 0.0  }
 0x144   : > { %v672_v17 = vpop.xlane.xlu1 %671 }
 0x145   : > { %v673_v18 = vmul.f32 0.03125, %v672_v17  ;;  %v2584_v17 = vmov -inf  }
 0x147   : > { %v674_v19 = vadd.f32 1e-05, %v673_v18 }
 0x148   : > { %v522_v20 = vpop.xlane.xlu1 %521 }
 0x149   : > { %2108 = vrsqrt.f32 %v674_v19  ;;  %v523_v21 = vmul.f32 0.03125, %v522_v20 }
 0x14b   : > { %v524_v22 = vadd.f32 1e-05, %v523_v21 }
 0x14d   : > { %2110 = vrsqrt.f32 %v524_v22 }
 0x153   : > { %v2109_v23 = vpop.eup %2108 }
 0x154   : > { %v676_v25 = vmul.f32 %v2109_v23, %v668_v4 }
 0x156   : > { %v683_v27 = vmul.f32 %v1744_v24, %v676_v25 }
 0x157   : > { %v2111_v28 = vpop.eup %2110 }
 0x158   : > { %v690_v29 = vadd.f32 %v1745_v26, %v683_v27  ;;  %v526_v30 = vmul.f32 %v2111_v28, %v518_v8  ;;  %v2568_v8 = vmov 0.0  }
 0x15a   : > { %v691_v31 = vpack.c.bf16 %v690_v29, %v690_v29  ;;  %v533_v32 = vmul.f32 %v1744_v24, %v526_v30 }
 0x15c   : > { %1843 = vmatmul.mubr.msk.bf16.vlgmr.msra.gmra.mrb[0].mxu1 %vm512_vm0, %v691_v31  ;;  %v540_v33 = vadd.f32 %v1745_v26, %v533_v32 }
 0x15e   : > { %v541_v34 = vpack.c.bf16 %v540_v33, %v540_v33 }
 0x160   : > { %1835 = vmatmul.mubr.msk.bf16.vlgmr.msra.gmra.mrb[0].mxu0 %vm512_vm0, %v541_v34 }
 0x22f   : > { %v752_v36 = vpop.f32.mrb[0].mxu1 }
 0x230   : > { %v753_v37 = vadd.f32 %v1746_v35, %v752_v36  ;;  %v1844_v38 = vpop.f32.mrb[1].mxu1 }
 0x231   : > { %v755_v39 = vpop.f32.mrb[2].mxu1 }
 0x232   : > { %v758_v41 = vpack.c.bf16 %v753_v37, %v753_v37  ;;  %v1845_v42 = vpop.f32.mrb[3].mxu1 }
 0x233   : > { %v602_v43 = vpop.f32.mrb[0].mxu0 }
 0x234   : > { %760 = vst.msk [vmem:[#allocation4] sm:$0xf] %vm609_vm2, %v758_v41  ;;  %v603_v44 = vadd.f32 %v1739_v40, %v602_v43  ;;  %764 = vrot.lane.b32.xlu0 %v758_v41, %s2338_s17  ;;  %769 = vrot.lane.b32.xlu1 %v758_v41, %s2339_s25  ;;  %v1836_v45 = vpop.f32.mrb[1].mxu0 }
 0x235   : > { %v605_v46 = vpop.f32.mrb[2].mxu0 }
 0x236   : > { %v608_v47 = vpack.c.bf16 %v603_v44, %v603_v44  ;;  %v1837_v48 = vpop.f32.mrb[3].mxu0 }
 0x238   : > { %610 = vst.msk [vmem:[#allocation2] sm:$0xf] %vm609_vm2, %v608_v47  ;;  %774 = vrot.lane.b32.xlu1 %v758_v41, %s2340_s18  ;;  %618 = vrot.lane.b32.xlu0 %v608_v47, %s2338_s17  ;;  %s2586_s17 = smov 0  }
 0x23b   : > { %v2541_v52 = vld [vmem:[#allocation4] sm:$0xf] }
 0x23c   : > { %631 = vrot.lane.b32.xlu0 %v608_v47, %s2339_s25  ;;  %614 = vrot.lane.b32.xlu1 %v608_v47, %s2342_s26 }
 0x240   : > { %644 = vrot.lane.b32.xlu0 %v608_v47, %s2340_s18  ;;  %625 = vrot.lane.b32.xlu1 %v608_v47, %s2343_s0 }
 0x244   : > { %638 = vrot.lane.b32.xlu1 %v608_v47, %s2344_s29 }
 0x248   : > { %651 = vrot.lane.b32.xlu1 %v608_v47, %s2345_s27 }
 0x2a6   : > { %v770_v55 = vpop.permute.xlu1 %769  ;;  %v765_v56 = vpop.permute.xlu0 %764 }
 0x2a7   : > { %773 = vst.msk [vmem:[#allocation4 + $0x8] sm:$0xf] %vm609_vm2, %v770_v55  ;;  %768 = vst.msk [vmem:[#allocation4 + $0x4] sm:$0xf] %vm609_vm2, %v765_v56 }
 0x2aa   : > { %v775_v57 = vpop.permute.xlu1 %774  ;;  %v619_v58 = vpop.permute.xlu0 %618 }
 0x2ab   : > { %778 = vst.msk [vmem:[#allocation4 + $0xc] sm:$0xf] %vm609_vm2, %v775_v57  ;;  %624 = vst.msk [vmem:[#allocation2 + $0x4] sm:$0xf] %vm609_vm2, %v619_v58 }
 0x2ae   : > { %v2549_v59 = vld [vmem:[#allocation4 + $0x8] sm:$0xf]  ;;  %v2551_v60 = vld [vmem:[#allocation4 + $0x4] sm:$0xf]  ;;  %v615_v61 = vpop.permute.xlu1 %614  ;;  %v632_v62 = vpop.permute.xlu0 %631 }
 0x2af   : > { %617 = vst.msk [vmem:[#allocation3] sm:$0xf] %vm609_vm2, %v615_v61  ;;  %637 = vst.msk [vmem:[#allocation2 + $0x8] sm:$0xf] %vm609_vm2, %v632_v62 }
 0x2b2   : > { %v2555_v63 = vld [vmem:[#allocation4 + $0xc] sm:$0xf]  ;;  %v626_v1 = vpop.permute.xlu1 %625  ;;  %v645_v2 = vpop.permute.xlu0 %644 }
 0x2b3   : > { %630 = vst.msk [vmem:[#allocation3 + $0x4] sm:$0xf] %vm609_vm2, %v626_v1  ;;  %650 = vst.msk [vmem:[#allocation2 + $0xc] sm:$0xf] %vm609_vm2, %v645_v2 }
 0x2b6   : > { %v639_v3 = vpop.permute.xlu1 %638 }
 0x2b7   : > { %643 = vst.msk [vmem:[#allocation3 + $0x8] sm:$0xf] %vm609_vm2, %v639_v3 }
 0x2ba   : > { %v652_v4 = vpop.permute.xlu1 %651 }
 0x2bb   : > { %656 = vst.msk [vmem:[#allocation3 + $0xc] sm:$0xf] %vm609_vm2, %v652_v4 }
 0x2bc LB: >> { %v2346_v18 = vmov 0.0   ;;  %s1751_s25 = sshll.u32 %s2334_s17, 3  ;;  %vm2347_vm4 = vmmov 0   ;;  %vm828_vm5 = vcmask 64512   ;;  %p823_p12 = scmp.eq.s32.totalorder %s2334_s17, 0  ;;  %vm1084_vm6 = vcmask 1043456   ;;  %s2334_s17 = sphi %s2586_s17, %s793_s17   ;;  %v2330_v17 = vphi %v2584_v17, %v2935_v17   ;;  %v2326_v16 = vphi %v2582_v16, %v2934_v16   ;;  %v2322_v15 = vphi %v2580_v15, %v2933_v15   ;;  %v2318_v13 = vphi %v2578_v13, %v2932_v13   ;;  %v2314_v12 = vphi %v2576_v12, %v2931_v12   ;;  %v2310_v11 = vphi %v2574_v11, %v2930_v11   ;;  %v2306_v10 = vphi %v2572_v10, %v2929_v10   ;;  %v2302_v9 = vphi %v2570_v9, %v2928_v9   ;;  %v2298_v8 = vphi %v2568_v8, %v2927_v8   ;;  %v2294_v7 = vphi %v2566_v7, %v2926_v7   ;;  %v2290_v6 = vphi %v2564_v6, %v2925_v6   ;;  %v2286_v5 = vphi %v2562_v5, %v2924_v5  }
 0x2bd   : >> { %1846 = vmatprep.subr.bf16.mxu0 %v2346_v18  ;;  %1852 = vmatprep.subr.bf16.mxu1 %v2346_v18  ;;  %s2634_s18 = sshra.s32 %s1751_s25, 3  ;;  %s793_s17 = sadd.s32 1, %s2334_s17  }
 0x2be   : >> { %1848 = vmatprep.mubr.msk.bf16.mxu0 %vm2347_vm4, %v2346_v18  ;;  %1854 = vmatprep.mubr.msk.bf16.mxu1 %vm2347_vm4, %v2346_v18  ;;  %s1752_s26 = sshll.u32 %s2634_s18, 2  ;;  %p2718_p13 = scmp.ge.s32.totalorder %s793_s17, 1 }
 0x2bf   : >> { %s812_s0 = scalar_lea.vmem [#allocation2], %s1752_s26  ;;  %s2349_s18 = smov (%p2718_p13), 24   ;;  %vm1289_vm7 = vcmask (%p2718_p13), 126016   ;;  %vm1297_vm8 = vcmask (%p2718_p13), 191616   ;;  %vm1305_vm9 = vcmask (%p2718_p13), 257216  }
 0x2c0   : >> { %v813_v19 = vld [vmem:[%s812_s0] sm:$0xf]  ;;  %v814_v20 = vld [vmem:[%s812_s0 + $0x4] sm:$0xf]  ;;  %v815_v23 = vld [vmem:[%s812_s0 + $0x8] sm:$0xf] }
 0x2c1   : >> { %v833_v21 = vsel %vm828_vm5, %v813_v19, 0  ;;  %v879_v22 = vsel %vm828_vm5, %v814_v20, 0  ;;  %v816_v24 = vld [vmem:[%s812_s0 + $0xc] sm:$0xf]  ;;  %v925_v25 = vsel %vm828_vm5, %v815_v23, 0  ;;  %s818_s0 = scalar_lea.vmem [#allocation3], %s1752_s26 }
 0x2c2   : >> { %1847 = vmatpush3.bf16.xpose.msra.mxu0 %v833_v21  ;;  %1853 = vmatpush3.bf16.xpose.msra.mxu1 %v879_v22  ;;  %v971_v26 = vsel %vm828_vm5, %v816_v24, 0  ;;  %s824_s29 = scalar_select %p823_p12, 1, 0  ;;  %v819_v55 = vld [vmem:[%s818_s0] sm:$0xf] }
 0x2c3   : >> { %1858 = vmatprep.subr.bf16.mxu0 %v2346_v18  ;;  %1864 = vmatprep.subr.bf16.mxu1 %v2346_v18  ;;  %v1086_v56 = vsel %vm1084_vm6, %v819_v55, 0  ;;  %v820_v57 = vld [vmem:[%s818_s0 + $0x4] sm:$0xf]  ;;  %v821_v61 = vld [vmem:[%s818_s0 + $0x8] sm:$0xf]  ;;  %s2350_s26 = smov (%p2718_p13), 16  }
 0x2c4   : >> { %s825_s25 = scvt.s32.f32 %s824_s29  ;;  %v1132_v58 = vsel %vm1084_vm6, %v820_v57, 0  ;;  %v1178_v62 = vsel %vm1084_vm6, %v821_v61, 0  ;;  %v822_v1 = vld [vmem:[%s818_s0 + $0xc] sm:$0xf]  ;;  %s2348_s0 = smov (%p2718_p13), 8  }
 0x2c5   : >> { %v1224_v2 = vsel %vm1084_vm6, %v822_v1, 0  ;;  %s1785_s27 = sshll.u32 (%p2718_p13), %s2274_s21, 7  ;;  %s2938_s21 = sand.u32 (%p2718_p13), 1, %s2266_s19  }
 0x2c6   : >> { %v826_v27 = vstv %s825_s25  ;;  %s2936_s25 = scalar_lea.vmem (%p2718_p13), [#allocation6], %s2510_s24  ;;  %s1595_s17 = scalar_lea.sflag (%p2718_p13), [#allocation7], %s2938_s21 }
 0x2c7   : >> { %v827_v28 = vmul.f32 %v826_v27, %v2543_v54  ;;  %s2937_s29 = smov (%p2718_p13), %s2936_s25  ;;  %s2351_s2 = smov (%p2718_p13), [#allocation6]  }
 0x2c8   : > { %s2156_s3 = sshll.u32 (%p2718_p13), %s2351_s2, 4  ;;  %s2157_s3 = int_to_ptr.vmem [resolvable:$false] %s2156_s3 }
 0x2c9   : >> { %1849 = vmatmul.mubr.msk.bf16.vlgmr.msra.gmra.mrb[0].mxu0 %vm828_vm5, %v2541_v52  ;;  %1855 = vmatmul.mubr.msk.bf16.vlgmr.msra.gmra.mrb[0].mxu1 %vm828_vm5, %v2551_v60  ;;  %v2129_v52 = vld [vmem:[%s2899_s7 + $0x8] sm:$0xff] (%p2718_p13)  }
 0x2ca   : >> { %1859 = vmatpush3.bf16.xpose.msra.mxu0 %v925_v25  ;;  %1865 = vmatpush3.bf16.xpose.msra.mxu1 %v971_v26 }
 0x2cb   : >> { %1860 = vmatprep.mubr.msk.bf16.mxu0 %vm2347_vm4, %v2346_v18  ;;  %1866 = vmatprep.mubr.msk.bf16.mxu1 %vm2347_vm4, %v2346_v18 }
 0x2cc   : >> { %1870 = vmatprep.subr.bf16.mxu0 %v2346_v18  ;;  %1876 = vmatprep.subr.bf16.mxu1 %v2346_v18 }
 0x2d1   : >> { %1861 = vmatmul.mubr.msk.bf16.vlgmr.msra.gmra.mrb[4].mxu0 %vm828_vm5, %v2549_v59  ;;  %1867 = vmatmul.mubr.msk.bf16.vlgmr.msra.gmra.mrb[4].mxu1 %vm828_vm5, %v2555_v63 }
 0x2d2   : >> { %1872 = vmatprep.mubr.msk.bf16.mxu0 %vm2347_vm4, %v2346_v18  ;;  %1878 = vmatprep.mubr.msk.bf16.mxu1 %vm2347_vm4, %v2346_v18 }
 0x2d3   : >> { %1871 = vmatpush3.bf16.msra.mxu0 %v1086_v56  ;;  %1877 = vmatpush3.bf16.msra.mxu1 %v1132_v58 }
 0x2d4   : >> { %1882 = vmatprep.subr.bf16.mxu0 %v2346_v18  ;;  %1888 = vmatprep.subr.bf16.mxu1 %v2346_v18 }
 0x39c   : >> { %v869_v29 = vpop.f32.mrb[0].mxu0  ;;  %v915_v30 = vpop.f32.mrb[0].mxu1 }
 0x39d   : >> { %v870_v31 = vadd.f32 %v869_v29, %v827_v28  ;;  %v1850_v32 = vpop.f32.mrb[1].mxu0  ;;  %v916_v33 = vadd.f32 %v915_v30, %v827_v28  ;;  %v1856_v34 = vpop.f32.mrb[1].mxu1 }
 0x39e   : >> { %v872_v35 = vpop.f32.mrb[2].mxu0  ;;  %v918_v36 = vpop.f32.mrb[2].mxu1 }
 0x39f   : >> { %v1851_v37 = vpop.f32.mrb[3].mxu0  ;;  %v1013_v38 = vsel %vm828_vm5, %v870_v31, -inf  ;;  %v1857_v39 = vpop.f32.mrb[3].mxu1  ;;  %v1016_v40 = vsel %vm828_vm5, %v916_v33, -inf }
 0x3a0   : >> { %1014 = vmax.xlane.f32.xlu0 %v1013_v38 }
 0x3a4   : >> { %1017 = vmax.xlane.f32.xlu0 %v1016_v40  ;;  %v961_v41 = vpop.f32.mrb[4].mxu0  ;;  %v1007_v42 = vpop.f32.mrb[4].mxu1 }
 0x3a5   : >> { %v962_v43 = vadd.f32 %v961_v41, %v827_v28  ;;  %v1862_v44 = vpop.f32.mrb[5].mxu0  ;;  %v1008_v45 = vadd.f32 %v1007_v42, %v827_v28  ;;  %v1868_v46 = vpop.f32.mrb[5].mxu1 }
 0x3a6   : >> { %v964_v47 = vpop.f32.mrb[6].mxu0  ;;  %v1010_v48 = vpop.f32.mrb[6].mxu1 }
 0x3a7   : >> { %v1863_v49 = vpop.f32.mrb[7].mxu0  ;;  %v1019_v50 = vsel %vm828_vm5, %v962_v43, -inf  ;;  %v1869_v51 = vpop.f32.mrb[7].mxu1  ;;  %v1022_v53 = vsel %vm828_vm5, %v1008_v45, -inf }
 0x3a8   : >> { %1020 = vmax.xlane.f32.xlu1 %v1019_v50 }
 0x3ac   : >> { %1023 = vmax.xlane.f32.xlu1 %v1022_v53 }
 0x42d   : >> { %v1015_v3 = vpop.xlane.xlu0 %1014 }
 0x42e   : >> { %v2674_v4 = vmax.f32 %v2330_v17, %v1015_v3  }
 0x430   : >> { %v1029_v19 = vsub.f32 %v2330_v17, %v2674_v4  ;;  %v1041_v20 = vsub.f32 %v870_v31, %v2674_v4 }
 0x431   : >> { %v1018_v21 = vpop.xlane.xlu0 %1017 }
 0x432   : >> { %v1045_v22 = vmul.f32 1.442695, %v1041_v20  ;;  %v2680_v23 = vmax.f32 %v2326_v16, %v1018_v21  }
 0x434   : >> { %v1030_v24 = vsub.f32 %v2326_v16, %v2680_v23  ;;  %v1042_v25 = vsub.f32 %v916_v33, %v2680_v23  ;;  %2112 = vpow2.f32 %v1045_v22 }
 0x435   : >> { %v1021_v26 = vpop.xlane.xlu1 %1020 }
 0x436   : >> { %v1047_v27 = vmul.f32 1.442695, %v1042_v25  ;;  %v2686_v28 = vmax.f32 %v2322_v15, %v1021_v26   ;;  %v1035_v46 = vmul.f32 1.442695, %v1030_v24 }
 0x438   : >> { %v1031_v17 = vsub.f32 %v2322_v15, %v2686_v28  ;;  %v1043_v29 = vsub.f32 %v962_v43, %v2686_v28  ;;  %2114 = vpow2.f32 %v1047_v27 }
 0x439   : >> { %v1024_v30 = vpop.xlane.xlu1 %1023 }
 0x43a   : >> { %v1049_v31 = vmul.f32 1.442695, %v1043_v29  ;;  %v2692_v32 = vmax.f32 %v2318_v13, %v1024_v30   ;;  %v1037_v47 = vmul.f32 1.442695, %v1031_v17 }
 0x43c   : >> { %v1032_v16 = vsub.f32 %v2318_v13, %v2692_v32  ;;  %v1044_v33 = vsub.f32 %v1008_v45, %v2692_v32  ;;  %2116 = vpow2.f32 %v1049_v31  ;;  %v1033_v45 = vmul.f32 1.442695, %v1029_v19 }
 0x43e   : >> { %v1051_v34 = vmul.f32 1.442695, %v1044_v33  ;;  %v2113_v35 = vpop.eup %2112 }
 0x43f   : >> { %v1057_v36 = vsel %vm828_vm5, %v2113_v35, 0.0  ;;  %v1077_v37 = vpack.c.bf16 %v2113_v35, %v2113_v35 }
 0x440   : >> { %2118 = vpow2.f32 %v1051_v34  ;;  %1058 = vadd.xlane.f32.xlu0 %v1057_v36 }
 0x441   : >> { %1873 = vmatmul.mubr.msk.bf16.vlgmr.msra.gmra.mrb[8].mxu0 %vm828_vm5, %v1077_v37  ;;  %2120 = vpow2.f32 %v1033_v45  ;;  %v1765_v45 = vld [vmem:[%s2900_s8] ss:$0 sm:$0xff] (%p2718_p13) }
 0x442   : >> { %v2115_v15 = vpop.eup %2114  ;;  %1883 = vmatpush3.bf16.msra.mxu0 %v1178_v62  ;;  %1884 = vmatprep.mubr.msk.bf16.mxu0 %vm2347_vm4, %v2346_v18  ;;  %2122 = vpow2.f32 %v1035_v46 }
 0x443   : >> { %v1060_v38 = vsel %vm828_vm5, %v2115_v15, 0.0  ;;  %v1078_v13 = vpack.c.bf16 %v2115_v15, %v2115_v15  ;;  %2124 = vpow2.f32 %v1037_v47  ;;  %1910 = vmatprep.subr.bf16.mxu0 (%p2718_p13), %v2336_v14 }
 0x444   : >> { %1061 = vadd.xlane.f32.xlu1 %v1060_v38 }
 0x445   : >> { %1879 = vmatmul.mubr.msk.bf16.vlgmr.msra.gmra.mrb[8].mxu1 %vm828_vm5, %v1078_v13 }
 0x446   : >> { %v2117_v39 = vpop.eup %2116  ;;  %1889 = vmatpush3.bf16.msra.mxu1 %v1224_v2  ;;  %1890 = vmatprep.mubr.msk.bf16.mxu1 %vm2347_vm4, %v2346_v18  ;;  %v1039_v18 = vmul.f32 1.442695, %v1032_v16 }
 0x447   : >> { %v1063_v40 = vsel %vm828_vm5, %v2117_v39, 0.0  ;;  %v1079_v41 = vpack.c.bf16 %v2117_v39, %v2117_v39  ;;  %1894 = vmatprep.subr.bf16.mxu1 (%p2718_p13), %v2336_v14 }
 0x448   : >> { %1064 = vadd.xlane.f32.xlu0 %v1063_v40  ;;  %2126 = vpow2.f32 %v1039_v18 }
 0x449   : >> { %1885 = vmatmul.mubr.msk.bf16.vlgmr.msra.gmra.mrb[12].mxu0 %vm828_vm5, %v1079_v41 }
 0x44a   : >> { %v2119_v42 = vpop.eup %2118  ;;  %1926 = vmatprep.mubr.msk.bf16.mxu0 (%p2718_p13), %vm2337_vm1, %v2336_v14 }
 0x44b   : >> { %v1066_v43 = vsel %vm828_vm5, %v2119_v42, 0.0  ;;  %v1080_v44 = vpack.c.bf16 %v2119_v42, %v2119_v42  ;;  %v2121_v48 = vpop.eup %2120 }
 0x44c   : >> { %1067 = vadd.xlane.f32.xlu1 %v1066_v43  ;;  %v1053_v49 = vmul.f32 %v2314_v12, %v2121_v48  ;;  %v2123_v50 = vpop.eup %2122  ;;  %v1073_v21 = vmul.f32 %v2298_v8, %v2121_v48 }
 0x44d   : >> { %1891 = vmatmul.mubr.msk.bf16.vlgmr.msra.gmra.mrb[12].mxu1 %vm828_vm5, %v1080_v44  ;;  %v1054_v55 = vmul.f32 %v2310_v11, %v2123_v50  ;;  %v2125_v56 = vpop.eup %2124  ;;  %v1074_v11 = vmul.f32 %v2294_v7, %v2123_v50 }
 0x44e   : >> { %v1055_v61 = vmul.f32 %v2306_v10, %v2125_v56  ;;  %v1075_v31 = vmul.f32 %v2290_v6, %v2125_v56  ;;  %1898 = vmatprep.mubr.msk.bf16.mxu1 (%p2718_p13), %vm2337_vm1, %v2336_v14 }
 0x452   : >> { %v2127_v62 = vpop.eup %2126 }
 0x453   : >> { %v1056_v3 = vmul.f32 %v2302_v9, %v2127_v62  ;;  %v1076_v8 = vmul.f32 %v2286_v5, %v2127_v62  ;;  %v2132_v62 = vld [vmem:[%s2905_s13] sm:$0xff] (%p2718_p13)  }
 0x454   : > { %1911 = vmatpush3.bf16.msra.mxu0 (%p2718_p13), %v2132_v62 }
 0x455   : > { %1912 = vmatprep.subr.bf16.mxu0 (%p2718_p13), %v2336_v14 }
 0x4cd   : >> { %v1059_v51 = vpop.xlane.xlu0 %1058 }
 0x4ce   : >> { %v1069_v53 = vadd.f32 %v1059_v51, %v1053_v49  }
 0x4d1   : >> { %v1062_v57 = vpop.xlane.xlu1 %1061 }
 0x4d2   : >> { %v1070_v58 = vadd.f32 %v1062_v57, %v1054_v55  }
 0x4d4   : > { %2140 = vrcp.f32 (%p2718_p13), %v1070_v58 }
 0x4d5   : >> { %v1065_v1 = vpop.xlane.xlu0 %1064 }
 0x4d6   : >> { %v1071_v2 = vadd.f32 %v1065_v1, %v1055_v61   ;;  %v2130_v61 = vld [vmem:[%s2903_s11] sm:$0xff] (%p2718_p13)  }
 0x4d8   : > { %2142 = vrcp.f32 (%p2718_p13), %v1071_v2 }
 0x4d9   : >> { %v1068_v19 = vpop.xlane.xlu1 %1067 }
 0x4da   : >> { %v1072_v20 = vadd.f32 %v1068_v19, %v1056_v3  }
 0x4dc   : > { %2144 = vrcp.f32 (%p2718_p13), %v1072_v20 }
 0x4dd   : > { %2146 = vrcp.f32 (%p2718_p13), %v1069_v53 }
 0x4de   : > { %v2141_v54 = vpop.eup (%p2718_p13), %2140 }
 0x4e2   : > { %v2143_v59 = vpop.eup (%p2718_p13), %2142 }
 0x4e6   : > { %v2145_v63 = vpop.eup (%p2718_p13), %2144 }
 0x514   : >> { %v1122_v12 = vpop.f32.mrb[8].mxu0 }
 0x515   : >> { %v1266_v22 = vadd.f32 %v1122_v12, %v1073_v21   ;;  %v1874_v24 = vpop.f32.mrb[9].mxu0  ;;  %v2931_v12 = vmov %v1069_v53 }
 0x516   : >> { %v1125_v25 = vpop.f32.mrb[10].mxu0  ;;  %v1770_v12 = vld [vmem:[%s2902_s10] ss:$0 sm:$0xff] (%p2718_p13) }
 0x517   : >> { %v1875_v26 = vpop.f32.mrb[11].mxu0 }
 0x518   : >> { %v1168_v27 = vpop.f32.mrb[8].mxu1  ;;  %v2133_v26 = vld [vmem:[%s2905_s13 + $0x8] sm:$0xff] (%p2718_p13)  }
 0x519   : >> { %v1267_v29 = vadd.f32 %v1168_v27, %v1074_v11   ;;  %v1880_v17 = vpop.f32.mrb[9].mxu1  ;;  %v2930_v11 = vmov %v1070_v58  ;;  %1913 = vmatpush3.bf16.msra.mxu0 (%p2718_p13), %v2133_v26  ;;  %v2135_v27 = vld [vmem:[%s2905_s13 + $0x18] sm:$0xff] (%p2718_p13)  }
 0x51a   : >> { %v1171_v10 = vpop.f32.mrb[10].mxu1  ;;  %v2935_v17 = vmov %v2674_v4  ;;  %v2128_v4 = vld [vmem:[%s2899_s7] sm:$0xff] (%p2718_p13)   ;;  %1914 = vmatprep.subr.bf16.mxu0 (%p2718_p13), %v2336_v14  ;;  %v2134_v11 = vld [vmem:[%s2905_s13 + $0x10] sm:$0xff] (%p2718_p13)  }
 0x51b   : >> { %v1881_v30 = vpop.f32.mrb[11].mxu1  ;;  %v2926_v7 = vmov %v1267_v29  ;;  %v2929_v10 = vmov %v1071_v2  ;;  %1895 = vmatpush3.bf16.msra.mxu1 (%p2718_p13), %v2128_v4  ;;  %v1275_v60 = vmul.f32 (%p2718_p13), %v2141_v54, %v1267_v29  ;;  %v2136_v29 = vld [vmem:[%s2905_s13 + $0x20] sm:$0xff] (%p2718_p13)   ;;  %v2137_v17 = vld [vmem:[%s2905_s13 + $0x28] sm:$0xff] (%p2718_p13)  }
 0x51c   : >> { %v1214_v16 = vpop.f32.mrb[12].mxu0  ;;  %1896 = vmatprep.subr.bf16.mxu1 (%p2718_p13), %v2336_v14  ;;  %v2138_v10 = vld [vmem:[%s2905_s13 + $0x30] sm:$0xff] (%p2718_p13)   ;;  %v2139_v30 = vld [vmem:[%s2905_s13 + $0x38] sm:$0xff] (%p2718_p13)  }
 0x51d   : >> { %v1268_v33 = vadd.f32 %v1214_v16, %v1075_v31   ;;  %v1886_v9 = vpop.f32.mrb[13].mxu0  ;;  %v2934_v16 = vmov %v2680_v23  ;;  %v1790_v7 = vpack.c.bf16 (%p2718_p13), %v1275_v60, %v1275_v60  ;;  %1915 = vmatpush3.bf16.msra.mxu0 (%p2718_p13), %v2134_v11  ;;  %v1771_v31 = vld [vmem:[%s2904_s12] ss:$0 sm:$0xff] (%p2718_p13) }
 0x51e   : >> { %v1217_v34 = vpop.f32.mrb[14].mxu0  ;;  %v2928_v9 = vmov %v1072_v20  ;;  %795 = sbr.rel (!%p2718_p13) target bundleno = 700 (0x2bc), region = 138  ;;  %v1769_v20 = vld [vmem:[%s2901_s9] ss:$0 sm:$0xff] (%p2718_p13)  ;;  %1916 = vmatprep.subr.bf16.mxu0 (%p2718_p13), %v2336_v14 }
 0x51f   : >> { %v1887_v35 = vpop.f32.mrb[15].mxu0  ;;  %v2925_v6 = vmov %v1268_v33  ;;  %1897 = vmatpush3.bf16.msra.mxu1 (%p2718_p13), %v2129_v52  ;;  %1286 = vrot.lane.b32.xlu0 (%p2718_p13), %v1790_v7, %s2348_s0  ;;  %s1609_s0 = sshll.u32 (%p2718_p13), %s2936_s25, 4  ;;  %s2842_s0 = int_to_ptr.vmem [resolvable:$true] %s1609_s0 }
 0x520   : >> { %v1260_v36 = vpop.f32.mrb[12].mxu1  ;;  %v2147_v6 = vpop.eup (%p2718_p13), %2146  ;;  %1902 = vmatprep.subr.bf16.mxu1 (%p2718_p13), %v2336_v14  ;;  %s2152_s25 = scalar_lea.vmem (%p2718_p13), %s2842_s0, 128  ;;  %p2159_p3 = scmp.lt.s32.totalorder (%p2718_p13), %s2842_s0, %s2157_s3 }
 0x521   : >> { %v1269_v37 = vadd.f32 %v1260_v36, %v1076_v8   ;;  %v1892_v15 = vpop.f32.mrb[13].mxu1  ;;  %v2927_v8 = vmov %v1266_v22  ;;  %1917 = vmatpush3.bf16.msra.mxu0 (%p2718_p13), %v2135_v27  ;;  %p2153_p0 = scmp.ne.s32.totalorder (%p2718_p13), %s2842_s0, %s2152_s25 }
 0x522   : >> { %v1263_v38 = vpop.f32.mrb[14].mxu1  ;;  %v2933_v15 = vmov %v2686_v28  ;;  %v1274_v28 = vmul.f32 (%p2718_p13), %v2147_v6, %v1266_v22  ;;  %1918 = vmatprep.subr.bf16.mxu0 (%p2718_p13), %v2336_v14 }
 0x523   : >> { %v1893_v13 = vpop.f32.mrb[15].mxu1  ;;  %v2924_v5 = vmov %v1269_v37  ;;  %v1277_v23 = vmul.f32 (%p2718_p13), %v2145_v63, %v1269_v37  ;;  %p2154_p1 = pnand (%p2718_p13), %p2153_p0, %p2472_p4 }
 0x524   : >> { %v2932_v13 = vmov %v2692_v32  ;;  %v1276_v5 = vmul.f32 (%p2718_p13), %v2143_v59, %v1268_v33  ;;  %v1278_v40 = vpack.c.bf16 (%p2718_p13), %v1274_v28, %v1274_v28  ;;  %v1775_v59 = vld [vmem:[%s2906_s14] ss:$0 sm:$0xff] (%p2718_p13) }
 0x525   : > { %v1792_v39 = vpack.c.bf16 %v1277_v23, %v1277_v23  ;;  %1919 = vmatpush3.bf16.msra.mxu0 %v2136_v29  ;;  %p2155_p2 = pneg %p2154_p1 }
 0x526   : > { %v1791_v32 = vpack.c.bf16 %v1276_v5, %v1276_v5  ;;  %1282 = vst.msk [vmem:[#allocation5] sm:$0xf] %vm609_vm2, %v1278_v40  ;;  %1920 = vmatprep.subr.bf16.mxu0 %v2336_v14 }
 0x527   : > { %1302 = vrot.lane.b32.xlu1 %v1792_v39, %s2349_s18 }
 0x528   : > { %1294 = vrot.lane.b32.xlu0 %v1791_v32, %s2350_s26  ;;  %s2840_s26 = scalar_lea.hbm %s2907_s15, %s1785_s27  ;;  %s2158_s27 = scalar_lea.vmem %s2157_s3, 256 }
 0x529   : > { %1921 = vmatpush3.bf16.msra.mxu0 %v2137_v17  ;;  %p2160_p5 = scmp.lt.s32.totalorder %s2158_s27, %s2152_s25 }
 0x52a   : > { %1922 = vmatprep.subr.bf16.mxu0 %v2336_v14 }
 0x52b   : > { %p2161_p6 = por %p2160_p5, %p2159_p3 }
 0x52d   : > { %1923 = vmatpush3.bf16.msra.mxu0 %v2138_v10  ;;  %p2162_p7 = pnand %p2161_p6, %p2155_p2 }
 0x52e   : > { %1924 = vmatprep.subr.bf16.mxu0 %v2336_v14 }
 0x531   : > { %1925 = vmatpush3.bf16.msra.mxu0 %v2139_v30 }
 0x591   : > { %v1287_v41 = vpop.permute.xlu0 %1286 }
 0x592   : > { %1290 = vst.msk [vmem:[#allocation5] sm:$0xf] %vm1289_vm7, %v1287_v41 }
 0x599   : > { %v1303_v42 = vpop.permute.xlu1 %1302 }
 0x59a   : > { %v1295_v43 = vpop.permute.xlu0 %1294 }
 0x59b   : > { %1298 = vst.msk [vmem:[#allocation5] sm:$0xf] %vm1297_vm8, %v1295_v43 }
 0x59c   : > { %1306 = vst.msk [vmem:[#allocation5] sm:$0xf] %vm1305_vm9, %v1303_v42 }
 0x5a3   : > { %v1307_v44 = vld [vmem:[#allocation5] sm:$0xf] }
 0x5a4   : > { %1899 = vmatmul.mubr.msk.bf16.vlgmr.msra.gmra.mrb[0].mxu1 %vm512_vm0, %v1307_v44 }
 0x5a5   : > { %1906 = vmatprep.mubr.msk.bf16.mxu1 %vm2337_vm1, %v2336_v14  ;;  %1903 = vmatpush3.bf16.msra.mxu1 %v2130_v61 }
 0x5a6   : > { %1904 = vmatprep.subr.bf16.mxu1 %v2336_v14 }
 0x677   : > { %v1368_v46 = vpop.f32.mrb[0].mxu1 }
 0x678   : > { %v1369_v47 = vadd.f32 %v1765_v45, %v1368_v46  ;;  %v1900_v18 = vpop.f32.mrb[1].mxu1 }
 0x679   : > { %v1371_v48 = vpop.f32.mrb[2].mxu1 }
 0x67a   : > { %v2776_v49 = vadd.f32 %v1369_v47, %v2492_v0  ;;  %v1901_v50 = vpop.f32.mrb[3].mxu1  ;;  %v2131_v0 = vld [vmem:[%s2903_s11 + $0x8] sm:$0xff]  }
 0x67b   : > { %1905 = vmatpush3.bf16.msra.mxu1 %v2131_v0 }
 0x67c   : > { %v1377_v51 = vsel %vm512_vm0, %v2776_v49, 0.0 }
 0x67d   : > { %1378 = vadd.xlane.f32.xlu1 %v1377_v51 }
 0x70a   : > { %v1379_v53 = vpop.xlane.xlu1 %1378 }
 0x70b   : > { %v1380_v55 = vmul.f32 0.03125, %v1379_v53 }
 0x70d   : > { %v1381_v56 = vsub.f32 %v2776_v49, %v1380_v55 }
 0x70f   : > { %v1382_v57 = vmul.f32 %v1381_v56, %v1381_v56 }
 0x711   : > { %v1383_v58 = vsel %vm512_vm0, %v1382_v57, 0.0 }
 0x712   : > { %1384 = vadd.xlane.f32.xlu0 %v1383_v58 }
 0x79f   : > { %v1385_v1 = vpop.xlane.xlu0 %1384 }
 0x7a0   : > { %v1386_v2 = vmul.f32 0.03125, %v1385_v1 }
 0x7a2   : > { %v1387_v3 = vadd.f32 1e-05, %v1386_v2 }
 0x7a4   : > { %2148 = vrsqrt.f32 %v1387_v3 }
 0x7ae   : > { %v2149_v19 = vpop.eup %2148 }
 0x7af   : > { %v1389_v21 = vmul.f32 %v2149_v19, %v1381_v56 }
 0x7b1   : > { %v1396_v22 = vmul.f32 %v1769_v20, %v1389_v21 }
 0x7b3   : > { %v1403_v24 = vadd.f32 %v1770_v12, %v1396_v22 }
 0x7b5   : > { %v1404_v25 = vpack.c.bf16 %v1403_v24, %v1403_v24 }
 0x7b7   : > { %1907 = vmatmul.mubr.msk.bf16.vlgmr.msra.gmra.mrb[4].mxu1 %vm512_vm0, %v1404_v25 }
 0x88a   : > { %v1465_v16 = vpop.f32.mrb[4].mxu1 }
 0x88b   : > { %v1466_v33 = vadd.f32 %v1771_v31, %v1465_v16  ;;  %v1908_v9 = vpop.f32.mrb[5].mxu1 }
 0x88c   : > { %v1468_v34 = vpop.f32.mrb[6].mxu1 }
 0x88d   : > { %v1472_v35 = vmul.f32 0.044715, %v1466_v33  ;;  %v1909_v8 = vpop.f32.mrb[7].mxu1  ;;  %v1471_v14 = vmul.f32 0.5, %v1466_v33 }
 0x88f   : > { %v1473_v36 = vmul.f32 %v1472_v35, %v1466_v33 }
 0x891   : > { %v1474_v37 = vmul.f32 %v1473_v36, %v1466_v33 }
 0x893   : > { %v1475_v15 = vadd.f32 %v1474_v37, %v1466_v33 }
 0x895   : > { %v1476_v38 = vmul.f32 0.7978846, %v1475_v15 }
 0x897   : > { %2150 = vtanh.f32 %v1476_v38 }
 0x8a1   : > { %v2151_v13 = vpop.eup %2150 }
 0x8a2   : > { %v1478_v4 = vadd.f32 1.0, %v2151_v13 }
 0x8a4   : > { %v1479_v52 = vmul.f32 %v1478_v4, %v1471_v14 }
 0x8a6   : > { %v1480_v54 = vpack.c.bf16 %v1479_v52, %v1479_v52 }
 0x8a8   : > { %1927 = vmatmul.mubr.bf16.vlgmr.msra.gmra.mrb[0].mxu0 %v1480_v54 }
 0x97b   : > { %v1586_v60 = vpop.f32.mrb[0].mxu0 }
 0x97c   : > { %v1587_v63 = vadd.f32 %v1775_v59, %v1586_v60  ;;  %v1928_v5 = vpop.f32.mrb[1].mxu0 }
 0x97d   : > { %v1589_v6 = vpop.f32.mrb[2].mxu0 }
 0x97e   : > { %v1592_v7 = vadd.f32 %v1587_v63, %v2776_v49  ;;  %v1929_v23 = vpop.f32.mrb[3].mxu0 }
 0x980   : > { %1593 = vst.msk [vmem:[%s2937_s29] sm:$0xff] %vm512_vm0, %v1592_v7 }
 0x981   : > { %2165 = shalt.err (!%p2162_p7)
}
 0x982   : > { %s2166_s24 = scalar_lea.hbm %s2840_s26, 128  ;;  %s2170_s2 = scalar_lea.hbm %s2907_s15, 256 }
 0x983   : > { %p2167_p9 = scmp.ne.s32.totalorder %s2840_s26, %s2166_s24  ;;  %p2171_p12 = scmp.lt.u32.totalorder %s2840_s26, %s2907_s15 }
 0x984   : > { %p2172_p13 = scmp.lt.u32.totalorder %s2170_s2, %s2166_s24  ;;  %p2174_p1 = scmp.lt.u32.totalorder %s2166_s24, %s2840_s26 }
 0x985   : > { %p2168_p10 = pnand %p2167_p9, %p2472_p4 }
 0x986   : > { %p2173_p0 = por %p2172_p13, %p2171_p12 }
 0x987   : > { %p2169_p11 = pneg %p2168_p10 }
 0x988   : > { %p2175_p2 = por %p2174_p1, %p2173_p0 }
 0x98a   : > { %p2176_p3 = pnand %p2175_p2, %p2169_p11 }
 0x98c   : > { %2179 = shalt.err (!%p2176_p3)
}
 0x98d   : > { %1930 = dma.vmem_to_hbm [thread:$0]  (%p2472_p4), %s2842_s0, 128, %s2840_s26, %s1595_s17  }
 0x98e PF: > { %s2939_s21 = sld [smem:[#allocation9_spill]]  ;;  %p1936_p5 = scmp.ge.s32.totalorder %s2282_s23, 2 }
 0x990   : > { %p1933_p6 = pnand %p1936_p5, %p2479_p8 }
 0x994   : > { %s1621_s25 = sand.u32 1, %s2939_s21  }
 0x995   : > { %s1622_s27 = scalar_lea.sflag [#allocation7], %s1621_s25 }
 0x996   : > { %2257 = dma.done.wait (!%p1933_p6), %s1622_s27, 128  }
 0x997   : > { %2259 = vsyncadd (!%p1933_p6), %s1622_s27, 4294967168  ;;  %s28_s23 = sadd.s32 1, %s2282_s23   ;;  %s2940_s28 = sld [smem:[#allocation10_spill]] }
 0x998   : > { %p25_p7 = scmp.ge.s32.totalorder %s28_s23, 4   ;;  %s2941_s18 = smov %s2266_s19 }
 0x999   : > { %s2942_s19 = smov %s2270_s20  ;;  %s2943_s20 = smov %s2485_s16 }
 0x99a   : > { %s2944_s21 = smov %s2278_s22  ;;  %27 = sbr.rel (!%p25_p7) target bundleno = 9 (0x9), region = 149 }
 0x99d   : > { %s2945_s22 = smov %s2940_s28 }
 0x9a1   :  { %1627 = vsyncpa [#allocation7], 1 }
 0x9a2   :  { %1629 = vsyncpa [#allocation7 + $0x1], 1 }

</bundles_post_ra>
